<compile_context>
chip_gen: v7x
topology: tpu7x:2x2x1
jax: 0.10.0
libtpu: 0.0.40
codegen_flags: <defaults>
</compile_context>

<pallas_src>
import functools
import math

import jax
import jax.numpy as jnp
from jax.experimental import pallas as pl
from jax.experimental.pallas import tpu as pltpu

D_MODEL = 128
N_HEADS = 8
HEAD_DIM = D_MODEL // N_HEADS
KSIZE = 7
PAD = KSIZE // 2
LN_EPS = 1e-5


def _layernorm(v, w, b):
    mu = jnp.mean(v, axis=-1, keepdims=True)
    d = v - mu
    var = jnp.mean(d * d, axis=-1, keepdims=True)
    return d * jax.lax.rsqrt(var + LN_EPS) * w + b


def _encoder_kernel(
    x_ref,            # (M, D) f32   M = TS*B rows (TS whole seq slices, s-major / b-minor)
    pe_ref,           # (TS, 1, D) f32  positional encoding tile
    conv_ln_w_ref,    # (L, 1, D) f32
    conv_ln_b_ref,    # (L, 1, D) f32
    dw_w_ref,         # (L, K, D) f32   depthwise weights [k, c]
    dw_b_ref,         # (L, 1, D) f32
    pw_wT_ref,        # (L, D, D) bf16  pointwise weight, (in, out)
    pw_b_ref,         # (L, 1, D) f32
    attn_ln_w_ref,    # (1, D) f32
    attn_ln_b_ref,    # (1, D) f32
    wqkvT_ref,        # (D, 3D) bf16  fused [Wq^T*scale | Wk^T | Wv^T]
    bqkv_ref,         # (1, 3D) f32   (bq pre-scaled)
    woT_ref,          # (D, D) bf16
    bo_ref,           # (1, D) f32
    ff_ln_w_ref,      # (1, D) f32
    ff_ln_b_ref,      # (1, D) f32
    ff_wT_ref,        # (D, D) bf16
    ff_b_ref,         # (1, D) f32
    out_ref,          # (M, D) f32
    *,
    seq_block,        # TS (static)
    batch,            # B  (static)
):
    M, D = x_ref.shape
    TS, B = seq_block, batch
    L = conv_ln_w_ref.shape[0]
    cdt = jnp.bfloat16   # MXU-native operand dtype; accumulation stays f32

    # --- positional encoding (broadcast over B in-kernel, no HBM broadcast) --
    # TODO(synk): Dropout(p=0.1) after the PE is stochastic (training mode);
    # treated as eval-mode identity here.
    x = (x_ref[...].reshape(TS, B, D) + pe_ref[...]).reshape(M, D)

    # --- depthwise-separable conv stack (conv axis = B within each slice) ----
    # In the flat (M, D) slab, row r belongs to slice r // B at position r % B,
    # so a shift by `off` rows stays inside the slice iff 0 <= (r % B) + off < B.
    # The masks zero both the conv's zero-padding positions and any rows that a
    # pltpu.roll would wrap across slice / block boundaries; they depend only
    # on the slice position, so they are hoisted out of the layer loop.
    row_b = jax.lax.broadcasted_iota(jnp.int32, (M, 1), 0) % B
    conv_masks = [
        jnp.logical_and(row_b + (k - PAD) >= 0, row_b + (k - PAD) < B)
        for k in range(KSIZE)
    ]

    for l in range(L):
        ln_c = _layernorm(x, conv_ln_w_ref[l], conv_ln_b_ref[l])
        w_l = dw_w_ref[l]                                        # (K, D)
        acc = jnp.zeros((M, D), jnp.float32)
        for k in range(KSIZE):
            shift = (PAD - k) % M
            # XLU sublane rotate instead of pad+unaligned slice copies.
            shifted = ln_c if shift == 0 else pltpu.roll(ln_c, shift=shift, axis=0)
            acc = acc + jnp.where(conv_masks[k],
                                  w_l[k:k + 1, :] * shifted, 0.0)
        dw = acc + dw_b_ref[l]                                   # (M, D) f32
        pw = jnp.dot(dw.astype(cdt), pw_wT_ref[l],
                     preferred_element_type=jnp.float32) + pw_b_ref[l]
        x = x + jnp.maximum(pw, 0.0)

    # --- multi-head self-attention (length = B, batched over TS slices) ------
    ln_a = _layernorm(x, attn_ln_w_ref[...], attn_ln_b_ref[...])
    # 1/sqrt(head_dim) is already folded into the q columns of wqkvT / bqkv.
    qkv = jnp.dot(ln_a.astype(cdt), wqkvT_ref[...],
                  preferred_element_type=jnp.float32) + bqkv_ref[...]   # (M, 3D)
    q3 = qkv[:, :D].reshape(TS, B, D)
    k3 = qkv[:, D:2 * D].reshape(TS, B, D)
    v3 = qkv[:, 2 * D:].reshape(TS, B, D)

    # Per-head rank-3 (single batch dim) dots; head contexts are folded into
    # the output projection as (M,16)@(16,128) accumulations (no lane-packing
    # concat).  Rank-4 dual-batch dot_general is avoided for lowering safety.
    attn = jnp.zeros((M, D), jnp.float32)
    for h in range(N_HEADS):
        lo = h * HEAD_DIM
        qh = q3[:, :, lo:lo + HEAD_DIM].astype(cdt)              # (TS, B, Dh)
        kh = k3[:, :, lo:lo + HEAD_DIM].astype(cdt)
        vh = v3[:, :, lo:lo + HEAD_DIM].astype(cdt)
        s = jax.lax.dot_general(                                 # (TS, B, B)
            qh, kh, (((2,), (2,)), ((0,), (0,))),
            preferred_element_type=jnp.float32)
        m = jnp.max(s, axis=-1, keepdims=True)
        e = jnp.exp(s - m)
        den = jnp.sum(e, axis=-1, keepdims=True)
        r = pl.reciprocal(den, approx=True)                      # EUP, not VALU divide
        r = r * (2.0 - den * r)                                  # one Newton step
        p = (e * r).astype(cdt)
        ctx = jax.lax.dot_general(                               # (TS, B, Dh)
            p, vh, (((2,), (1,)), ((0,), (0,))),
            preferred_element_type=jnp.float32)
        attn = attn + jnp.dot(ctx.reshape(M, HEAD_DIM).astype(cdt),
                              woT_ref[lo:lo + HEAD_DIM, :],
                              preferred_element_type=jnp.float32)
    x = x + attn + bo_ref[...]

    # --- feed forward ---------------------------------------------------------
    ln_f = _layernorm(x, ff_ln_w_ref[...], ff_ln_b_ref[...])
    y = jnp.dot(ln_f.astype(cdt), ff_wT_ref[...],
                preferred_element_type=jnp.float32) + ff_b_ref[...]
    out_ref[...] = x + jnp.maximum(y, 0.0)


def _choose_seq_block(S, B, target_rows=1024):
    """Largest TS dividing S with TS*B rows <= target and sublane-aligned
    row blocks.  Among the fitting candidates, prefer one that gives an even
    number of grid steps (keeps v7x's 2 TensorCores balanced); otherwise take
    the largest block (fewest steps, best for single-TC v5e/v6e).
    Sweep target_rows in {512, 1024, 2048} per generation if tuning further."""
    cands = [ts for ts in range(1, S + 1)
             if S % ts == 0 and ((ts * B) % 8 == 0 or ts == S)]
    fit = [ts for ts in cands if ts * B <= target_rows]
    if not fit:
        fit = [min(cands)]
    even = [ts for ts in fit if (S // ts) % 2 == 0]
    return max(even) if even else max(fit)


def encoder_block_pallas(x, pe, params, *, seq_block=None):
    S, B, D = x.shape
    assert D == D_MODEL
    TS = seq_block if seq_block is not None else _choose_seq_block(S, B)
    assert S % TS == 0, "seq_block must divide S"
    # (8, 128) BlockSpec rule: row blocks must be sublane aligned unless the
    # block spans the whole array.
    assert TS == S or (TS * B) % 8 == 0, "TS*B must be a multiple of 8 when TS < S"
    M = TS * B

    # Flatten to a lane/sublane-dense (S*B, D) slab; each grid step owns TS
    # whole sequence slices (= M contiguous rows).  Pure layout plumbing.
    x_flat = x.reshape(S * B, D)
    pe3 = pe.reshape(S, 1, D)                     # passed untouched, tiled per step

    # Fuse the QKV projections into one (D, 3D) weight / (1, 3D) bias and fold
    # the 1/sqrt(head_dim) softmax scale into the q columns (one-time host op).
    scale = 1.0 / math.sqrt(HEAD_DIM)
    wqkvT = jnp.concatenate(
        [params["wqT"] * scale, params["wkT"], params["wvT"]], axis=1)
    bqkv = jnp.concatenate(
        [params["bq"] * scale, params["bk"], params["bv"]], axis=1)

    bf16 = jnp.bfloat16
    weights = [
        params["conv_ln_w"], params["conv_ln_b"],
        params["dw_w"], params["dw_b"],
        params["pw_wT"].astype(bf16), params["pw_b"],
        params["attn_ln_w"], params["attn_ln_b"],
        wqkvT.astype(bf16), bqkv,
        params["woT"].astype(bf16), params["bo"],
        params["ff_ln_w"], params["ff_ln_b"],
        params["ff_wT"].astype(bf16), params["ff_b"],
    ]

    def const_spec(shape):
        # Constant (grid-invariant) operand.  Default pipelining double-buffers
        # these; pl.Buffered(1) would reclaim that VMEM but the footprint at
        # d_model=128 is tiny, so keep the default (noted per review).
        zeros = (0,) * len(shape)
        return pl.BlockSpec(shape, lambda i, _z=zeros: _z)

    row_spec = pl.BlockSpec((M, D), lambda i: (i, 0))
    pe_spec = pl.BlockSpec((TS, 1, D), lambda i: (i, 0, 0))
    in_specs = [row_spec, pe_spec] + [const_spec(tuple(w.shape)) for w in weights]

    # Explicit VMEM budget: double-buffered x/out/pe blocks + resident weights
    # + headroom for compiler-managed intermediates; clamped inside v7x's
    # 64 MiB per-TC VMEM.
    io_bytes = 2 * (2 * M * D * 4 + TS * D * 4)
    weight_bytes = 2 * sum(int(math.prod(w.shape)) * w.dtype.itemsize for w in weights)
    interm_bytes = 20 * M * D * 4
    vmem_limit = int(min(64 << 20, max(32 << 20,
                                       io_bytes + weight_bytes + interm_bytes)))

    grid_spec = pltpu.PrefetchScalarGridSpec(
        num_scalar_prefetch=0,
        grid=(S // TS,),
        in_specs=in_specs,
        out_specs=row_spec,
    )
    fn = pl.pallas_call(
        functools.partial(_encoder_kernel, seq_block=TS, batch=B),
        out_shape=jax.ShapeDtypeStruct((S * B, D), jnp.float32),
        grid_spec=grid_spec,
        compiler_params=pltpu.CompilerParams(
            dimension_semantics=("parallel",),
            vmem_limit_bytes=vmem_limit,
        ),
    )
    out_flat = fn(x_flat, pe3, *weights)
    return out_flat.reshape(S, B, D)


# ----------------------- plain-JAX reference (mirrors PyTorch math) ----------
def encoder_block_reference(x, pe, params):
    hp = jax.lax.Precision.HIGHEST

    def ln(v, w, b):
        mu = v.mean(-1, keepdims=True)
        var = ((v - mu) ** 2).mean(-1, keepdims=True)
        return (v - mu) / jnp.sqrt(var + LN_EPS) * w + b

    S, B, D = x.shape
    L = params["conv_ln_w"].shape[0]
    x = x + pe
    for l in range(L):
        y = ln(x, params["conv_ln_w"][l], params["conv_ln_b"][l])
        ypad = jnp.pad(y, ((0, 0), (PAD, PAD), (0, 0)))
        dw = sum(params["dw_w"][l, k][None, None, :] * ypad[:, k:k + B, :]
                 for k in range(KSIZE)) + params["dw_b"][l]
        pw = jnp.einsum("sbc,cd->sbd", dw, params["pw_wT"][l],
                        precision=hp) + params["pw_b"][l]
        x = x + jax.nn.relu(pw)
    y = ln(x, params["attn_ln_w"], params["attn_ln_b"])
    q = jnp.einsum("sbc,cd->sbd", y, params["wqT"], precision=hp) + params["bq"]
    k = jnp.einsum("sbc,cd->sbd", y, params["wkT"], precision=hp) + params["bk"]
    v = jnp.einsum("sbc,cd->sbd", y, params["wvT"], precision=hp) + params["bv"]
    qh = q.reshape(S, B, N_HEADS, HEAD_DIM) / math.sqrt(HEAD_DIM)
    kh = k.reshape(S, B, N_HEADS, HEAD_DIM)
    vh = v.reshape(S, B, N_HEADS, HEAD_DIM)
    scores = jnp.einsum("sbhd,schd->shbc", qh, kh, precision=hp)
    p = jax.nn.softmax(scores, axis=-1)
    ctx = jnp.einsum("shbc,schd->sbhd", p, vh, precision=hp).reshape(S, B, D)
    x = x + jnp.einsum("sbc,cd->sbd", ctx, params["woT"], precision=hp) + params["bo"]
    y = ln(x, params["ff_ln_w"], params["ff_ln_b"])
    x = x + jax.nn.relu(
        jnp.einsum("sbc,cd->sbd", y, params["ff_wT"], precision=hp) + params["ff_b"])
    return x


# ----------------------- deterministic parameter / input setup ---------------
def make_pe(S, D):
    pos = jnp.arange(S, dtype=jnp.float32)[:, None]
    div = jnp.exp(jnp.arange(0, D, 2, dtype=jnp.float32) * (-math.log(10000.0) / D))
    pe = jnp.zeros((S, D), jnp.float32)
    pe = pe.at[:, 0::2].set(jnp.sin(pos * div))
    pe = pe.at[:, 1::2].set(jnp.cos(pos * div))
    return pe.reshape(S, 1, D)


def make_params(key, L):
    keys = iter(jax.random.split(key, 24))

    def nrm(shape, scale=0.1):
        return scale * jax.random.normal(next(keys), shape, dtype=jnp.float32)

    D = D_MODEL
    return {
        "conv_ln_w": 1.0 + nrm((L, 1, D), 0.05),
        "conv_ln_b": nrm((L, 1, D), 0.05),
        "dw_w": nrm((L, KSIZE, D)),
        "dw_b": nrm((L, 1, D)),
        "pw_wT": nrm((L, D, D)),
        "pw_b": nrm((L, 1, D)),
        "attn_ln_w": 1.0 + nrm((1, D), 0.05),
        "attn_ln_b": nrm((1, D), 0.05),
        "wqT": nrm((D, D)),
        "wkT": nrm((D, D)),
        "wvT": nrm((D, D)),
        "bq": nrm((1, D)),
        "bk": nrm((1, D)),
        "bv": nrm((1, D)),
        "woT": nrm((D, D)),
        "bo": nrm((1, D)),
        "ff_ln_w": 1.0 + nrm((1, D), 0.05),
        "ff_ln_b": nrm((1, D), 0.05),
        "ff_wT": nrm((D, D)),
        "ff_b": nrm((1, D)),
    }


if __name__ == "__main__":
    S, B, L = 8, 8, 2   # seq, batch, num_of_conv_layers (d_model fixed at 128)
    key = jax.random.PRNGKey(0)
    kx, kp = jax.random.split(key)
    x = jax.random.normal(kx, (S, B, D_MODEL), dtype=jnp.float32)
    params = make_params(kp, L)
    pe = make_pe(S, D_MODEL)

    out = encoder_block_pallas(x, pe, params)
    out = jax.block_until_ready(out)

    ref = encoder_block_reference(x, pe, params)
    err = float(jnp.max(jnp.abs(out - ref)))
    # bf16 matmul operands (per perf review) vs the f32 HIGHEST-precision
    # reference: expected max deviation ~1e-1 at these scales, bound 2.5e-1.
    assert out.shape == (S, B, D_MODEL) and err < 2.5e-1, f"max |err| = {err}"
    print("KERNEL_OK")
</pallas_src>

<mosaic_0001>
module attributes {stable_mosaic.version = 11 : i64} {
  func.func @_encoder_kernel(%arg0: i32, %arg1: memref<32x128xf32, #tpu.memory_space<vmem>>, %arg2: memref<4x1x128xf32, #tpu.memory_space<vmem>>, %arg3: memref<2x1x128xf32, #tpu.memory_space<vmem>>, %arg4: memref<2x1x128xf32, #tpu.memory_space<vmem>>, %arg5: memref<2x7x128xf32, #tpu.memory_space<vmem>>, %arg6: memref<2x1x128xf32, #tpu.memory_space<vmem>>, %arg7: memref<2x128x128xbf16, #tpu.memory_space<vmem>>, %arg8: memref<2x1x128xf32, #tpu.memory_space<vmem>>, %arg9: memref<1x128xf32, #tpu.memory_space<vmem>>, %arg10: memref<1x128xf32, #tpu.memory_space<vmem>>, %arg11: memref<128x384xbf16, #tpu.memory_space<vmem>>, %arg12: memref<1x384xf32, #tpu.memory_space<vmem>>, %arg13: memref<128x128xbf16, #tpu.memory_space<vmem>>, %arg14: memref<1x128xf32, #tpu.memory_space<vmem>>, %arg15: memref<1x128xf32, #tpu.memory_space<vmem>>, %arg16: memref<1x128xf32, #tpu.memory_space<vmem>>, %arg17: memref<128x128xbf16, #tpu.memory_space<vmem>>, %arg18: memref<1x128xf32, #tpu.memory_space<vmem>>, %arg19: memref<32x128xf32, #tpu.memory_space<vmem>>) attributes {dimension_semantics = [#tpu.dimension_semantics<parallel>], iteration_bounds = array<i64: 2>, scalar_prefetch = 0 : i64, scratch_operands = 0 : i64, tpu.core_type = #tpu.core_type<tc>, window_params = [{transform_indices = @transform_0, window_bounds = array<i64: 32, 128>}, {transform_indices = @transform_1, window_bounds = array<i64: 4, 1, 128>}, {pipeline_mode = #tpu.pipeline_mode<synchronous>, transform_indices = @transform_2, window_bounds = array<i64: 2, 1, 128>}, {pipeline_mode = #tpu.pipeline_mode<synchronous>, transform_indices = @transform_3, window_bounds = array<i64: 2, 1, 128>}, {pipeline_mode = #tpu.pipeline_mode<synchronous>, transform_indices = @transform_4, window_bounds = array<i64: 2, 7, 128>}, {pipeline_mode = #tpu.pipeline_mode<synchronous>, transform_indices = @transform_5, window_bounds = array<i64: 2, 1, 128>}, {pipeline_mode = #tpu.pipeline_mode<synchronous>, transform_indices = @transform_6, window_bounds = array<i64: 2, 128, 128>}, {pipeline_mode = #tpu.pipeline_mode<synchronous>, transform_indices = @transform_7, window_bounds = array<i64: 2, 1, 128>}, {pipeline_mode = #tpu.pipeline_mode<synchronous>, transform_indices = @transform_8, window_bounds = array<i64: 1, 128>}, {pipeline_mode = #tpu.pipeline_mode<synchronous>, transform_indices = @transform_9, window_bounds = array<i64: 1, 128>}, {pipeline_mode = #tpu.pipeline_mode<synchronous>, transform_indices = @transform_10, window_bounds = array<i64: 128, 384>}, {pipeline_mode = #tpu.pipeline_mode<synchronous>, transform_indices = @transform_11, window_bounds = array<i64: 1, 384>}, {pipeline_mode = #tpu.pipeline_mode<synchronous>, transform_indices = @transform_12, window_bounds = array<i64: 128, 128>}, {pipeline_mode = #tpu.pipeline_mode<synchronous>, transform_indices = @transform_13, window_bounds = array<i64: 1, 128>}, {pipeline_mode = #tpu.pipeline_mode<synchronous>, transform_indices = @transform_14, window_bounds = array<i64: 1, 128>}, {pipeline_mode = #tpu.pipeline_mode<synchronous>, transform_indices = @transform_15, window_bounds = array<i64: 1, 128>}, {pipeline_mode = #tpu.pipeline_mode<synchronous>, transform_indices = @transform_16, window_bounds = array<i64: 128, 128>}, {pipeline_mode = #tpu.pipeline_mode<synchronous>, transform_indices = @transform_17, window_bounds = array<i64: 1, 128>}, {transform_indices = @transform_18, window_bounds = array<i64: 32, 128>}]} {
    %c0 = arith.constant 0 : index
    %c0_0 = arith.constant 0 : index
    %0 = vector.load %arg1[%c0, %c0_0] : memref<32x128xf32, #tpu.memory_space<vmem>>, vector<32x128xf32>
    %1 = vector.shape_cast %0 : vector<32x128xf32> to vector<4x8x128xf32>
    %c0_1 = arith.constant 0 : index
    %c0_2 = arith.constant 0 : index
    %c0_3 = arith.constant 0 : index
    %2 = vector.load %arg2[%c0_1, %c0_2, %c0_3] : memref<4x1x128xf32, #tpu.memory_space<vmem>>, vector<4x1x128xf32>
    %3 = vector.broadcast %2 : vector<4x1x128xf32> to vector<4x8x128xf32>
    %4 = arith.addf %1, %3 : vector<4x8x128xf32>
    %5 = vector.shape_cast %4 : vector<4x8x128xf32> to vector<32x128xf32>
    %6 = tpu.iota {dimensions = array<i32: 0>} : vector<32x1xi32>
    %c8_i32 = arith.constant 8 : i32
    %c0_i32 = arith.constant 0 : i32
    %7 = arith.cmpi eq, %c8_i32, %c0_i32 : i32
    %c1_i32 = arith.constant 1 : i32
    %8 = arith.select %7, %c1_i32, %c8_i32 : i32
    %9 = vector.broadcast %8 : i32 to vector<32x1xi32>
    %10 = arith.remsi %6, %9 : vector<32x1xi32>
    %c0_i32_4 = arith.constant 0 : i32
    %11 = vector.broadcast %c0_i32_4 : i32 to vector<32x1xi32>
    %12 = arith.cmpi ne, %10, %11 : vector<32x1xi32>
    %c0_i32_5 = arith.constant 0 : i32
    %13 = vector.broadcast %c0_i32_5 : i32 to vector<32x1xi32>
    %14 = arith.cmpi slt, %10, %13 : vector<32x1xi32>
    %c0_i32_6 = arith.constant 0 : i32
    %15 = arith.cmpi slt, %8, %c0_i32_6 : i32
    %16 = vector.broadcast %15 : i1 to vector<32x1xi1>
    %17 = vector.broadcast %16 : vector<32x1xi1> to vector<32x1xi1>
    %18 = arith.xori %14, %17 : vector<32x1xi1>
    %19 = arith.andi %18, %12 : vector<32x1xi1>
    %20 = vector.broadcast %8 : i32 to vector<32x1xi32>
    %21 = arith.addi %10, %20 : vector<32x1xi32>
    %22 = arith.select %19, %21, %10 : vector<32x1xi1>, vector<32x1xi32>
    %c-3_i32 = arith.constant -3 : i32
    %23 = vector.broadcast %c-3_i32 : i32 to vector<32x1xi32>
    %24 = arith.addi %22, %23 : vector<32x1xi32>
    %c0_i32_7 = arith.constant 0 : i32
    %25 = vector.broadcast %c0_i32_7 : i32 to vector<32x1xi32>
    %26 = arith.cmpi sge, %24, %25 : vector<32x1xi32>
    %c-3_i32_8 = arith.constant -3 : i32
    %27 = vector.broadcast %c-3_i32_8 : i32 to vector<32x1xi32>
    %28 = arith.addi %22, %27 : vector<32x1xi32>
    %c8_i32_9 = arith.constant 8 : i32
    %29 = vector.broadcast %c8_i32_9 : i32 to vector<32x1xi32>
    %30 = arith.cmpi slt, %28, %29 : vector<32x1xi32>
    %31 = arith.andi %26, %30 : vector<32x1xi1>
    %c-2_i32 = arith.constant -2 : i32
    %32 = vector.broadcast %c-2_i32 : i32 to vector<32x1xi32>
    %33 = arith.addi %22, %32 : vector<32x1xi32>
    %c0_i32_10 = arith.constant 0 : i32
    %34 = vector.broadcast %c0_i32_10 : i32 to vector<32x1xi32>
    %35 = arith.cmpi sge, %33, %34 : vector<32x1xi32>
    %c-2_i32_11 = arith.constant -2 : i32
    %36 = vector.broadcast %c-2_i32_11 : i32 to vector<32x1xi32>
    %37 = arith.addi %22, %36 : vector<32x1xi32>
    %c8_i32_12 = arith.constant 8 : i32
    %38 = vector.broadcast %c8_i32_12 : i32 to vector<32x1xi32>
    %39 = arith.cmpi slt, %37, %38 : vector<32x1xi32>
    %40 = arith.andi %35, %39 : vector<32x1xi1>
    %c-1_i32 = arith.constant -1 : i32
    %41 = vector.broadcast %c-1_i32 : i32 to vector<32x1xi32>
    %42 = arith.addi %22, %41 : vector<32x1xi32>
    %c0_i32_13 = arith.constant 0 : i32
    %43 = vector.broadcast %c0_i32_13 : i32 to vector<32x1xi32>
    %44 = arith.cmpi sge, %42, %43 : vector<32x1xi32>
    %c-1_i32_14 = arith.constant -1 : i32
    %45 = vector.broadcast %c-1_i32_14 : i32 to vector<32x1xi32>
    %46 = arith.addi %22, %45 : vector<32x1xi32>
    %c8_i32_15 = arith.constant 8 : i32
    %47 = vector.broadcast %c8_i32_15 : i32 to vector<32x1xi32>
    %48 = arith.cmpi slt, %46, %47 : vector<32x1xi32>
    %49 = arith.andi %44, %48 : vector<32x1xi1>
    %c0_i32_16 = arith.constant 0 : i32
    %50 = vector.broadcast %c0_i32_16 : i32 to vector<32x1xi32>
    %51 = arith.addi %22, %50 : vector<32x1xi32>
    %c0_i32_17 = arith.constant 0 : i32
    %52 = vector.broadcast %c0_i32_17 : i32 to vector<32x1xi32>
    %53 = arith.cmpi sge, %51, %52 : vector<32x1xi32>
    %c0_i32_18 = arith.constant 0 : i32
    %54 = vector.broadcast %c0_i32_18 : i32 to vector<32x1xi32>
    %55 = arith.addi %22, %54 : vector<32x1xi32>
    %c8_i32_19 = arith.constant 8 : i32
    %56 = vector.broadcast %c8_i32_19 : i32 to vector<32x1xi32>
    %57 = arith.cmpi slt, %55, %56 : vector<32x1xi32>
    %58 = arith.andi %53, %57 : vector<32x1xi1>
    %c1_i32_20 = arith.constant 1 : i32
    %59 = vector.broadcast %c1_i32_20 : i32 to vector<32x1xi32>
    %60 = arith.addi %22, %59 : vector<32x1xi32>
    %c0_i32_21 = arith.constant 0 : i32
    %61 = vector.broadcast %c0_i32_21 : i32 to vector<32x1xi32>
    %62 = arith.cmpi sge, %60, %61 : vector<32x1xi32>
    %c1_i32_22 = arith.constant 1 : i32
    %63 = vector.broadcast %c1_i32_22 : i32 to vector<32x1xi32>
    %64 = arith.addi %22, %63 : vector<32x1xi32>
    %c8_i32_23 = arith.constant 8 : i32
    %65 = vector.broadcast %c8_i32_23 : i32 to vector<32x1xi32>
    %66 = arith.cmpi slt, %64, %65 : vector<32x1xi32>
    %67 = arith.andi %62, %66 : vector<32x1xi1>
    %c2_i32 = arith.constant 2 : i32
    %68 = vector.broadcast %c2_i32 : i32 to vector<32x1xi32>
    %69 = arith.addi %22, %68 : vector<32x1xi32>
    %c0_i32_24 = arith.constant 0 : i32
    %70 = vector.broadcast %c0_i32_24 : i32 to vector<32x1xi32>
    %71 = arith.cmpi sge, %69, %70 : vector<32x1xi32>
    %c2_i32_25 = arith.constant 2 : i32
    %72 = vector.broadcast %c2_i32_25 : i32 to vector<32x1xi32>
    %73 = arith.addi %22, %72 : vector<32x1xi32>
    %c8_i32_26 = arith.constant 8 : i32
    %74 = vector.broadcast %c8_i32_26 : i32 to vector<32x1xi32>
    %75 = arith.cmpi slt, %73, %74 : vector<32x1xi32>
    %76 = arith.andi %71, %75 : vector<32x1xi1>
    %c3_i32 = arith.constant 3 : i32
    %77 = vector.broadcast %c3_i32 : i32 to vector<32x1xi32>
    %78 = arith.addi %22, %77 : vector<32x1xi32>
    %c0_i32_27 = arith.constant 0 : i32
    %79 = vector.broadcast %c0_i32_27 : i32 to vector<32x1xi32>
    %80 = arith.cmpi sge, %78, %79 : vector<32x1xi32>
    %c3_i32_28 = arith.constant 3 : i32
    %81 = vector.broadcast %c3_i32_28 : i32 to vector<32x1xi32>
    %82 = arith.addi %22, %81 : vector<32x1xi32>
    %c8_i32_29 = arith.constant 8 : i32
    %83 = vector.broadcast %c8_i32_29 : i32 to vector<32x1xi32>
    %84 = arith.cmpi slt, %82, %83 : vector<32x1xi32>
    %85 = arith.andi %80, %84 : vector<32x1xi1>
    %c0_30 = arith.constant 0 : index
    %c0_31 = arith.constant 0 : index
    %c0_32 = arith.constant 0 : index
    %86 = vector.load %arg3[%c0_30, %c0_31, %c0_32] : memref<2x1x128xf32, #tpu.memory_space<vmem>>, vector<1x1x128xf32>
    %87 = vector.shape_cast %86 : vector<1x1x128xf32> to vector<1x128xf32>
    %c0_33 = arith.constant 0 : index
    %c0_34 = arith.constant 0 : index
    %c0_35 = arith.constant 0 : index
    %88 = vector.load %arg4[%c0_33, %c0_34, %c0_35] : memref<2x1x128xf32, #tpu.memory_space<vmem>>, vector<1x1x128xf32>
    %89 = vector.shape_cast %88 : vector<1x1x128xf32> to vector<1x128xf32>
    %cst = arith.constant dense<0.000000e+00> : vector<32xf32>
    %90 = vector.multi_reduction <add>, %5, %cst [1] : vector<32x128xf32> to vector<32xf32>
    %91 = vector.shape_cast %90 : vector<32xf32> to vector<32x1xf32>
    %cst_36 = arith.constant 1.280000e+02 : f32
    %92 = vector.broadcast %cst_36 : f32 to vector<32x1xf32>
    %93 = arith.divf %91, %92 : vector<32x1xf32>
    %94 = vector.broadcast %93 : vector<32x1xf32> to vector<32x128xf32>
    %95 = arith.subf %5, %94 : vector<32x128xf32>
    %96 = arith.mulf %95, %95 : vector<32x128xf32>
    %cst_37 = arith.constant dense<0.000000e+00> : vector<32xf32>
    %97 = vector.multi_reduction <add>, %96, %cst_37 [1] : vector<32x128xf32> to vector<32xf32>
    %98 = vector.shape_cast %97 : vector<32xf32> to vector<32x1xf32>
    %cst_38 = arith.constant 1.280000e+02 : f32
    %99 = vector.broadcast %cst_38 : f32 to vector<32x1xf32>
    %100 = arith.divf %98, %99 : vector<32x1xf32>
    %cst_39 = arith.constant 9.99999974E-6 : f32
    %101 = vector.broadcast %cst_39 : f32 to vector<32x1xf32>
    %102 = arith.addf %100, %101 : vector<32x1xf32>
    %103 = math.rsqrt %102 : vector<32x1xf32>
    %104 = vector.broadcast %103 : vector<32x1xf32> to vector<32x128xf32>
    %105 = arith.mulf %95, %104 : vector<32x128xf32>
    %106 = vector.broadcast %87 : vector<1x128xf32> to vector<32x128xf32>
    %107 = arith.mulf %105, %106 : vector<32x128xf32>
    %108 = vector.broadcast %89 : vector<1x128xf32> to vector<32x128xf32>
    %109 = arith.addf %107, %108 : vector<32x128xf32>
    %c0_40 = arith.constant 0 : index
    %c0_41 = arith.constant 0 : index
    %c0_42 = arith.constant 0 : index
    %110 = vector.load %arg5[%c0_40, %c0_41, %c0_42] : memref<2x7x128xf32, #tpu.memory_space<vmem>>, vector<1x7x128xf32>
    %111 = vector.shape_cast %110 : vector<1x7x128xf32> to vector<7x128xf32>
    %cst_43 = arith.constant 0.000000e+00 : f32
    %112 = vector.broadcast %cst_43 : f32 to vector<32x128xf32>
    %c3_i32_44 = arith.constant 3 : i32
    %113 = tpu.dynamic_rotate %109 by %c3_i32_44 dim 0 : vector<32x128xf32>, i32 -> vector<32x128xf32>
    %114 = vector.extract_strided_slice %111 {offsets = [0, 0], sizes = [1, 128], strides = [1, 1]} : vector<7x128xf32> to vector<1x128xf32>
    %115 = vector.broadcast %114 : vector<1x128xf32> to vector<32x128xf32>
    %116 = arith.mulf %115, %113 : vector<32x128xf32>
    %cst_45 = arith.constant 0.000000e+00 : f32
    %117 = vector.shape_cast %31 : vector<32x1xi1> to vector<32x1xi1>
    %118 = vector.broadcast %117 : vector<32x1xi1> to vector<32x128xi1>
    %119 = vector.broadcast %cst_45 : f32 to vector<32x128xf32>
    %120 = arith.select %118, %116, %119 : vector<32x128xi1>, vector<32x128xf32>
    %121 = arith.addf %112, %120 : vector<32x128xf32>
    %c2_i32_46 = arith.constant 2 : i32
    %122 = tpu.dynamic_rotate %109 by %c2_i32_46 dim 0 : vector<32x128xf32>, i32 -> vector<32x128xf32>
    %123 = vector.extract_strided_slice %111 {offsets = [1, 0], sizes = [1, 128], strides = [1, 1]} : vector<7x128xf32> to vector<1x128xf32>
    %124 = vector.broadcast %123 : vector<1x128xf32> to vector<32x128xf32>
    %125 = arith.mulf %124, %122 : vector<32x128xf32>
    %cst_47 = arith.constant 0.000000e+00 : f32
    %126 = vector.shape_cast %40 : vector<32x1xi1> to vector<32x1xi1>
    %127 = vector.broadcast %126 : vector<32x1xi1> to vector<32x128xi1>
    %128 = vector.broadcast %cst_47 : f32 to vector<32x128xf32>
    %129 = arith.select %127, %125, %128 : vector<32x128xi1>, vector<32x128xf32>
    %130 = arith.addf %121, %129 : vector<32x128xf32>
    %c1_i32_48 = arith.constant 1 : i32
    %131 = tpu.dynamic_rotate %109 by %c1_i32_48 dim 0 : vector<32x128xf32>, i32 -> vector<32x128xf32>
    %132 = vector.extract_strided_slice %111 {offsets = [2, 0], sizes = [1, 128], strides = [1, 1]} : vector<7x128xf32> to vector<1x128xf32>
    %133 = vector.broadcast %132 : vector<1x128xf32> to vector<32x128xf32>
    %134 = arith.mulf %133, %131 : vector<32x128xf32>
    %cst_49 = arith.constant 0.000000e+00 : f32
    %135 = vector.shape_cast %49 : vector<32x1xi1> to vector<32x1xi1>
    %136 = vector.broadcast %135 : vector<32x1xi1> to vector<32x128xi1>
    %137 = vector.broadcast %cst_49 : f32 to vector<32x128xf32>
    %138 = arith.select %136, %134, %137 : vector<32x128xi1>, vector<32x128xf32>
    %139 = arith.addf %130, %138 : vector<32x128xf32>
    %140 = vector.extract_strided_slice %111 {offsets = [3, 0], sizes = [1, 128], strides = [1, 1]} : vector<7x128xf32> to vector<1x128xf32>
    %141 = vector.broadcast %140 : vector<1x128xf32> to vector<32x128xf32>
    %142 = arith.mulf %141, %109 : vector<32x128xf32>
    %cst_50 = arith.constant 0.000000e+00 : f32
    %143 = vector.shape_cast %58 : vector<32x1xi1> to vector<32x1xi1>
    %144 = vector.broadcast %143 : vector<32x1xi1> to vector<32x128xi1>
    %145 = vector.broadcast %cst_50 : f32 to vector<32x128xf32>
    %146 = arith.select %144, %142, %145 : vector<32x128xi1>, vector<32x128xf32>
    %147 = arith.addf %139, %146 : vector<32x128xf32>
    %c31_i32 = arith.constant 31 : i32
    %148 = tpu.dynamic_rotate %109 by %c31_i32 dim 0 : vector<32x128xf32>, i32 -> vector<32x128xf32>
    %149 = vector.extract_strided_slice %111 {offsets = [4, 0], sizes = [1, 128], strides = [1, 1]} : vector<7x128xf32> to vector<1x128xf32>
    %150 = vector.broadcast %149 : vector<1x128xf32> to vector<32x128xf32>
    %151 = arith.mulf %150, %148 : vector<32x128xf32>
    %cst_51 = arith.constant 0.000000e+00 : f32
    %152 = vector.shape_cast %67 : vector<32x1xi1> to vector<32x1xi1>
    %153 = vector.broadcast %152 : vector<32x1xi1> to vector<32x128xi1>
    %154 = vector.broadcast %cst_51 : f32 to vector<32x128xf32>
    %155 = arith.select %153, %151, %154 : vector<32x128xi1>, vector<32x128xf32>
    %156 = arith.addf %147, %155 : vector<32x128xf32>
    %c30_i32 = arith.constant 30 : i32
    %157 = tpu.dynamic_rotate %109 by %c30_i32 dim 0 : vector<32x128xf32>, i32 -> vector<32x128xf32>
    %158 = vector.extract_strided_slice %111 {offsets = [5, 0], sizes = [1, 128], strides = [1, 1]} : vector<7x128xf32> to vector<1x128xf32>
    %159 = vector.broadcast %158 : vector<1x128xf32> to vector<32x128xf32>
    %160 = arith.mulf %159, %157 : vector<32x128xf32>
    %cst_52 = arith.constant 0.000000e+00 : f32
    %161 = vector.shape_cast %76 : vector<32x1xi1> to vector<32x1xi1>
    %162 = vector.broadcast %161 : vector<32x1xi1> to vector<32x128xi1>
    %163 = vector.broadcast %cst_52 : f32 to vector<32x128xf32>
    %164 = arith.select %162, %160, %163 : vector<32x128xi1>, vector<32x128xf32>
    %165 = arith.addf %156, %164 : vector<32x128xf32>
    %c29_i32 = arith.constant 29 : i32
    %166 = tpu.dynamic_rotate %109 by %c29_i32 dim 0 : vector<32x128xf32>, i32 -> vector<32x128xf32>
    %167 = vector.extract_strided_slice %111 {offsets = [6, 0], sizes = [1, 128], strides = [1, 1]} : vector<7x128xf32> to vector<1x128xf32>
    %168 = vector.broadcast %167 : vector<1x128xf32> to vector<32x128xf32>
    %169 = arith.mulf %168, %166 : vector<32x128xf32>
    %cst_53 = arith.constant 0.000000e+00 : f32
    %170 = vector.shape_cast %85 : vector<32x1xi1> to vector<32x1xi1>
    %171 = vector.broadcast %170 : vector<32x1xi1> to vector<32x128xi1>
    %172 = vector.broadcast %cst_53 : f32 to vector<32x128xf32>
    %173 = arith.select %171, %169, %172 : vector<32x128xi1>, vector<32x128xf32>
    %174 = arith.addf %165, %173 : vector<32x128xf32>
    %c0_54 = arith.constant 0 : index
    %c0_55 = arith.constant 0 : index
    %c0_56 = arith.constant 0 : index
    %175 = vector.load %arg6[%c0_54, %c0_55, %c0_56] : memref<2x1x128xf32, #tpu.memory_space<vmem>>, vector<1x1x128xf32>
    %176 = vector.shape_cast %175 : vector<1x1x128xf32> to vector<1x128xf32>
    %177 = vector.broadcast %176 : vector<1x128xf32> to vector<32x128xf32>
    %178 = arith.addf %174, %177 : vector<32x128xf32>
    %179 = arith.truncf %178 : vector<32x128xf32> to vector<32x128xbf16>
    %c0_57 = arith.constant 0 : index
    %c0_58 = arith.constant 0 : index
    %c0_59 = arith.constant 0 : index
    %180 = vector.load %arg7[%c0_57, %c0_58, %c0_59] : memref<2x128x128xbf16, #tpu.memory_space<vmem>>, vector<1x128x128xbf16>
    %181 = vector.shape_cast %180 : vector<1x128x128xbf16> to vector<128x128xbf16>
    %cst_60 = arith.constant dense<0.000000e+00> : vector<32x128xf32>
    %182 = tpu.matmul %179, %181, %cst_60 {dimension_numbers = #tpu.dot_dimension_numbers<[1], [0], [0], [1], [0, 0, 1, 1], [], []>} : vector<32x128xbf16>, vector<128x128xbf16>, vector<32x128xf32> -> vector<32x128xf32>
    %c0_61 = arith.constant 0 : index
    %c0_62 = arith.constant 0 : index
    %c0_63 = arith.constant 0 : index
    %183 = vector.load %arg8[%c0_61, %c0_62, %c0_63] : memref<2x1x128xf32, #tpu.memory_space<vmem>>, vector<1x1x128xf32>
    %184 = vector.shape_cast %183 : vector<1x1x128xf32> to vector<1x128xf32>
    %185 = vector.broadcast %184 : vector<1x128xf32> to vector<32x128xf32>
    %186 = arith.addf %182, %185 : vector<32x128xf32>
    %cst_64 = arith.constant 0.000000e+00 : f32
    %187 = vector.broadcast %cst_64 : f32 to vector<32x128xf32>
    %188 = arith.maximumf %186, %187 : vector<32x128xf32>
    %189 = arith.addf %5, %188 : vector<32x128xf32>
    %c1 = arith.constant 1 : index
    %c0_65 = arith.constant 0 : index
    %c0_66 = arith.constant 0 : index
    %190 = vector.load %arg3[%c1, %c0_65, %c0_66] : memref<2x1x128xf32, #tpu.memory_space<vmem>>, vector<1x1x128xf32>
    %191 = vector.shape_cast %190 : vector<1x1x128xf32> to vector<1x128xf32>
    %c1_67 = arith.constant 1 : index
    %c0_68 = arith.constant 0 : index
    %c0_69 = arith.constant 0 : index
    %192 = vector.load %arg4[%c1_67, %c0_68, %c0_69] : memref<2x1x128xf32, #tpu.memory_space<vmem>>, vector<1x1x128xf32>
    %193 = vector.shape_cast %192 : vector<1x1x128xf32> to vector<1x128xf32>
    %cst_70 = arith.constant dense<0.000000e+00> : vector<32xf32>
    %194 = vector.multi_reduction <add>, %189, %cst_70 [1] : vector<32x128xf32> to vector<32xf32>
    %195 = vector.shape_cast %194 : vector<32xf32> to vector<32x1xf32>
    %cst_71 = arith.constant 1.280000e+02 : f32
    %196 = vector.broadcast %cst_71 : f32 to vector<32x1xf32>
    %197 = arith.divf %195, %196 : vector<32x1xf32>
    %198 = vector.broadcast %197 : vector<32x1xf32> to vector<32x128xf32>
    %199 = arith.subf %189, %198 : vector<32x128xf32>
    %200 = arith.mulf %199, %199 : vector<32x128xf32>
    %cst_72 = arith.constant dense<0.000000e+00> : vector<32xf32>
    %201 = vector.multi_reduction <add>, %200, %cst_72 [1] : vector<32x128xf32> to vector<32xf32>
    %202 = vector.shape_cast %201 : vector<32xf32> to vector<32x1xf32>
    %cst_73 = arith.constant 1.280000e+02 : f32
    %203 = vector.broadcast %cst_73 : f32 to vector<32x1xf32>
    %204 = arith.divf %202, %203 : vector<32x1xf32>
    %cst_74 = arith.constant 9.99999974E-6 : f32
    %205 = vector.broadcast %cst_74 : f32 to vector<32x1xf32>
    %206 = arith.addf %204, %205 : vector<32x1xf32>
    %207 = math.rsqrt %206 : vector<32x1xf32>
    %208 = vector.broadcast %207 : vector<32x1xf32> to vector<32x128xf32>
    %209 = arith.mulf %199, %208 : vector<32x128xf32>
    %210 = vector.broadcast %191 : vector<1x128xf32> to vector<32x128xf32>
    %211 = arith.mulf %209, %210 : vector<32x128xf32>
    %212 = vector.broadcast %193 : vector<1x128xf32> to vector<32x128xf32>
    %213 = arith.addf %211, %212 : vector<32x128xf32>
    %c1_75 = arith.constant 1 : index
    %c0_76 = arith.constant 0 : index
    %c0_77 = arith.constant 0 : index
    %214 = vector.load %arg5[%c1_75, %c0_76, %c0_77] : memref<2x7x128xf32, #tpu.memory_space<vmem>>, vector<1x7x128xf32>
    %215 = vector.shape_cast %214 : vector<1x7x128xf32> to vector<7x128xf32>
    %cst_78 = arith.constant 0.000000e+00 : f32
    %216 = vector.broadcast %cst_78 : f32 to vector<32x128xf32>
    %c3_i32_79 = arith.constant 3 : i32
    %217 = tpu.dynamic_rotate %213 by %c3_i32_79 dim 0 : vector<32x128xf32>, i32 -> vector<32x128xf32>
    %218 = vector.extract_strided_slice %215 {offsets = [0, 0], sizes = [1, 128], strides = [1, 1]} : vector<7x128xf32> to vector<1x128xf32>
    %219 = vector.broadcast %218 : vector<1x128xf32> to vector<32x128xf32>
    %220 = arith.mulf %219, %217 : vector<32x128xf32>
    %cst_80 = arith.constant 0.000000e+00 : f32
    %221 = vector.shape_cast %31 : vector<32x1xi1> to vector<32x1xi1>
    %222 = vector.broadcast %221 : vector<32x1xi1> to vector<32x128xi1>
    %223 = vector.broadcast %cst_80 : f32 to vector<32x128xf32>
    %224 = arith.select %222, %220, %223 : vector<32x128xi1>, vector<32x128xf32>
    %225 = arith.addf %216, %224 : vector<32x128xf32>
    %c2_i32_81 = arith.constant 2 : i32
    %226 = tpu.dynamic_rotate %213 by %c2_i32_81 dim 0 : vector<32x128xf32>, i32 -> vector<32x128xf32>
    %227 = vector.extract_strided_slice %215 {offsets = [1, 0], sizes = [1, 128], strides = [1, 1]} : vector<7x128xf32> to vector<1x128xf32>
    %228 = vector.broadcast %227 : vector<1x128xf32> to vector<32x128xf32>
    %229 = arith.mulf %228, %226 : vector<32x128xf32>
    %cst_82 = arith.constant 0.000000e+00 : f32
    %230 = vector.shape_cast %40 : vector<32x1xi1> to vector<32x1xi1>
    %231 = vector.broadcast %230 : vector<32x1xi1> to vector<32x128xi1>
    %232 = vector.broadcast %cst_82 : f32 to vector<32x128xf32>
    %233 = arith.select %231, %229, %232 : vector<32x128xi1>, vector<32x128xf32>
    %234 = arith.addf %225, %233 : vector<32x128xf32>
    %c1_i32_83 = arith.constant 1 : i32
    %235 = tpu.dynamic_rotate %213 by %c1_i32_83 dim 0 : vector<32x128xf32>, i32 -> vector<32x128xf32>
    %236 = vector.extract_strided_slice %215 {offsets = [2, 0], sizes = [1, 128], strides = [1, 1]} : vector<7x128xf32> to vector<1x128xf32>
    %237 = vector.broadcast %236 : vector<1x128xf32> to vector<32x128xf32>
    %238 = arith.mulf %237, %235 : vector<32x128xf32>
    %cst_84 = arith.constant 0.000000e+00 : f32
    %239 = vector.shape_cast %49 : vector<32x1xi1> to vector<32x1xi1>
    %240 = vector.broadcast %239 : vector<32x1xi1> to vector<32x128xi1>
    %241 = vector.broadcast %cst_84 : f32 to vector<32x128xf32>
    %242 = arith.select %240, %238, %241 : vector<32x128xi1>, vector<32x128xf32>
    %243 = arith.addf %234, %242 : vector<32x128xf32>
    %244 = vector.extract_strided_slice %215 {offsets = [3, 0], sizes = [1, 128], strides = [1, 1]} : vector<7x128xf32> to vector<1x128xf32>
    %245 = vector.broadcast %244 : vector<1x128xf32> to vector<32x128xf32>
    %246 = arith.mulf %245, %213 : vector<32x128xf32>
    %cst_85 = arith.constant 0.000000e+00 : f32
    %247 = vector.shape_cast %58 : vector<32x1xi1> to vector<32x1xi1>
    %248 = vector.broadcast %247 : vector<32x1xi1> to vector<32x128xi1>
    %249 = vector.broadcast %cst_85 : f32 to vector<32x128xf32>
    %250 = arith.select %248, %246, %249 : vector<32x128xi1>, vector<32x128xf32>
    %251 = arith.addf %243, %250 : vector<32x128xf32>
    %c31_i32_86 = arith.constant 31 : i32
    %252 = tpu.dynamic_rotate %213 by %c31_i32_86 dim 0 : vector<32x128xf32>, i32 -> vector<32x128xf32>
    %253 = vector.extract_strided_slice %215 {offsets = [4, 0], sizes = [1, 128], strides = [1, 1]} : vector<7x128xf32> to vector<1x128xf32>
    %254 = vector.broadcast %253 : vector<1x128xf32> to vector<32x128xf32>
    %255 = arith.mulf %254, %252 : vector<32x128xf32>
    %cst_87 = arith.constant 0.000000e+00 : f32
    %256 = vector.shape_cast %67 : vector<32x1xi1> to vector<32x1xi1>
    %257 = vector.broadcast %256 : vector<32x1xi1> to vector<32x128xi1>
    %258 = vector.broadcast %cst_87 : f32 to vector<32x128xf32>
    %259 = arith.select %257, %255, %258 : vector<32x128xi1>, vector<32x128xf32>
    %260 = arith.addf %251, %259 : vector<32x128xf32>
    %c30_i32_88 = arith.constant 30 : i32
    %261 = tpu.dynamic_rotate %213 by %c30_i32_88 dim 0 : vector<32x128xf32>, i32 -> vector<32x128xf32>
    %262 = vector.extract_strided_slice %215 {offsets = [5, 0], sizes = [1, 128], strides = [1, 1]} : vector<7x128xf32> to vector<1x128xf32>
    %263 = vector.broadcast %262 : vector<1x128xf32> to vector<32x128xf32>
    %264 = arith.mulf %263, %261 : vector<32x128xf32>
    %cst_89 = arith.constant 0.000000e+00 : f32
    %265 = vector.shape_cast %76 : vector<32x1xi1> to vector<32x1xi1>
    %266 = vector.broadcast %265 : vector<32x1xi1> to vector<32x128xi1>
    %267 = vector.broadcast %cst_89 : f32 to vector<32x128xf32>
    %268 = arith.select %266, %264, %267 : vector<32x128xi1>, vector<32x128xf32>
    %269 = arith.addf %260, %268 : vector<32x128xf32>
    %c29_i32_90 = arith.constant 29 : i32
    %270 = tpu.dynamic_rotate %213 by %c29_i32_90 dim 0 : vector<32x128xf32>, i32 -> vector<32x128xf32>
    %271 = vector.extract_strided_slice %215 {offsets = [6, 0], sizes = [1, 128], strides = [1, 1]} : vector<7x128xf32> to vector<1x128xf32>
    %272 = vector.broadcast %271 : vector<1x128xf32> to vector<32x128xf32>
    %273 = arith.mulf %272, %270 : vector<32x128xf32>
    %cst_91 = arith.constant 0.000000e+00 : f32
    %274 = vector.shape_cast %85 : vector<32x1xi1> to vector<32x1xi1>
    %275 = vector.broadcast %274 : vector<32x1xi1> to vector<32x128xi1>
    %276 = vector.broadcast %cst_91 : f32 to vector<32x128xf32>
    %277 = arith.select %275, %273, %276 : vector<32x128xi1>, vector<32x128xf32>
    %278 = arith.addf %269, %277 : vector<32x128xf32>
    %c1_92 = arith.constant 1 : index
    %c0_93 = arith.constant 0 : index
    %c0_94 = arith.constant 0 : index
    %279 = vector.load %arg6[%c1_92, %c0_93, %c0_94] : memref<2x1x128xf32, #tpu.memory_space<vmem>>, vector<1x1x128xf32>
    %280 = vector.shape_cast %279 : vector<1x1x128xf32> to vector<1x128xf32>
    %281 = vector.broadcast %280 : vector<1x128xf32> to vector<32x128xf32>
    %282 = arith.addf %278, %281 : vector<32x128xf32>
    %283 = arith.truncf %282 : vector<32x128xf32> to vector<32x128xbf16>
    %c1_95 = arith.constant 1 : index
    %c0_96 = arith.constant 0 : index
    %c0_97 = arith.constant 0 : index
    %284 = vector.load %arg7[%c1_95, %c0_96, %c0_97] : memref<2x128x128xbf16, #tpu.memory_space<vmem>>, vector<1x128x128xbf16>
    %285 = vector.shape_cast %284 : vector<1x128x128xbf16> to vector<128x128xbf16>
    %cst_98 = arith.constant dense<0.000000e+00> : vector<32x128xf32>
    %286 = tpu.matmul %283, %285, %cst_98 {dimension_numbers = #tpu.dot_dimension_numbers<[1], [0], [0], [1], [0, 0, 1, 1], [], []>} : vector<32x128xbf16>, vector<128x128xbf16>, vector<32x128xf32> -> vector<32x128xf32>
    %c1_99 = arith.constant 1 : index
    %c0_100 = arith.constant 0 : index
    %c0_101 = arith.constant 0 : index
    %287 = vector.load %arg8[%c1_99, %c0_100, %c0_101] : memref<2x1x128xf32, #tpu.memory_space<vmem>>, vector<1x1x128xf32>
    %288 = vector.shape_cast %287 : vector<1x1x128xf32> to vector<1x128xf32>
    %289 = vector.broadcast %288 : vector<1x128xf32> to vector<32x128xf32>
    %290 = arith.addf %286, %289 : vector<32x128xf32>
    %cst_102 = arith.constant 0.000000e+00 : f32
    %291 = vector.broadcast %cst_102 : f32 to vector<32x128xf32>
    %292 = arith.maximumf %290, %291 : vector<32x128xf32>
    %293 = arith.addf %189, %292 : vector<32x128xf32>
    %c0_103 = arith.constant 0 : index
    %c0_104 = arith.constant 0 : index
    %294 = vector.load %arg9[%c0_103, %c0_104] : memref<1x128xf32, #tpu.memory_space<vmem>>, vector<1x128xf32>
    %c0_105 = arith.constant 0 : index
    %c0_106 = arith.constant 0 : index
    %295 = vector.load %arg10[%c0_105, %c0_106] : memref<1x128xf32, #tpu.memory_space<vmem>>, vector<1x128xf32>
    %cst_107 = arith.constant dense<0.000000e+00> : vector<32xf32>
    %296 = vector.multi_reduction <add>, %293, %cst_107 [1] : vector<32x128xf32> to vector<32xf32>
    %297 = vector.shape_cast %296 : vector<32xf32> to vector<32x1xf32>
    %cst_108 = arith.constant 1.280000e+02 : f32
    %298 = vector.broadcast %cst_108 : f32 to vector<32x1xf32>
    %299 = arith.divf %297, %298 : vector<32x1xf32>
    %300 = vector.broadcast %299 : vector<32x1xf32> to vector<32x128xf32>
    %301 = arith.subf %293, %300 : vector<32x128xf32>
    %302 = arith.mulf %301, %301 : vector<32x128xf32>
    %cst_109 = arith.constant dense<0.000000e+00> : vector<32xf32>
    %303 = vector.multi_reduction <add>, %302, %cst_109 [1] : vector<32x128xf32> to vector<32xf32>
    %304 = vector.shape_cast %303 : vector<32xf32> to vector<32x1xf32>
    %cst_110 = arith.constant 1.280000e+02 : f32
    %305 = vector.broadcast %cst_110 : f32 to vector<32x1xf32>
    %306 = arith.divf %304, %305 : vector<32x1xf32>
    %cst_111 = arith.constant 9.99999974E-6 : f32
    %307 = vector.broadcast %cst_111 : f32 to vector<32x1xf32>
    %308 = arith.addf %306, %307 : vector<32x1xf32>
    %309 = math.rsqrt %308 : vector<32x1xf32>
    %310 = vector.broadcast %309 : vector<32x1xf32> to vector<32x128xf32>
    %311 = arith.mulf %301, %310 : vector<32x128xf32>
    %312 = vector.broadcast %294 : vector<1x128xf32> to vector<32x128xf32>
    %313 = arith.mulf %311, %312 : vector<32x128xf32>
    %314 = vector.broadcast %295 : vector<1x128xf32> to vector<32x128xf32>
    %315 = arith.addf %313, %314 : vector<32x128xf32>
    %316 = arith.truncf %315 : vector<32x128xf32> to vector<32x128xbf16>
    %c0_112 = arith.constant 0 : index
    %c0_113 = arith.constant 0 : index
    %317 = vector.load %arg11[%c0_112, %c0_113] : memref<128x384xbf16, #tpu.memory_space<vmem>>, vector<128x384xbf16>
    %cst_114 = arith.constant dense<0.000000e+00> : vector<32x384xf32>
    %318 = tpu.matmul %316, %317, %cst_114 {dimension_numbers = #tpu.dot_dimension_numbers<[1], [0], [0], [1], [0, 0, 1, 1], [], []>} : vector<32x128xbf16>, vector<128x384xbf16>, vector<32x384xf32> -> vector<32x384xf32>
    %c0_115 = arith.constant 0 : index
    %c0_116 = arith.constant 0 : index
    %319 = vector.load %arg12[%c0_115, %c0_116] : memref<1x384xf32, #tpu.memory_space<vmem>>, vector<1x384xf32>
    %320 = vector.broadcast %319 : vector<1x384xf32> to vector<32x384xf32>
    %321 = arith.addf %318, %320 : vector<32x384xf32>
    %322 = vector.extract_strided_slice %321 {offsets = [0, 0], sizes = [32, 128], strides = [1, 1]} : vector<32x384xf32> to vector<32x128xf32>
    %323 = vector.shape_cast %322 : vector<32x128xf32> to vector<4x8x128xf32>
    %324 = vector.extract_strided_slice %321 {offsets = [0, 128], sizes = [32, 128], strides = [1, 1]} : vector<32x384xf32> to vector<32x128xf32>
    %325 = vector.shape_cast %324 : vector<32x128xf32> to vector<4x8x128xf32>
    %326 = vector.extract_strided_slice %321 {offsets = [0, 256], sizes = [32, 128], strides = [1, 1]} : vector<32x384xf32> to vector<32x128xf32>
    %327 = vector.shape_cast %326 : vector<32x128xf32> to vector<4x8x128xf32>
    %cst_117 = arith.constant 0.000000e+00 : f32
    %328 = vector.broadcast %cst_117 : f32 to vector<32x128xf32>
    %329 = vector.extract_strided_slice %323 {offsets = [0, 0, 0], sizes = [4, 8, 16], strides = [1, 1, 1]} : vector<4x8x128xf32> to vector<4x8x16xf32>
    %330 = arith.truncf %329 : vector<4x8x16xf32> to vector<4x8x16xbf16>
    %331 = vector.extract_strided_slice %325 {offsets = [0, 0, 0], sizes = [4, 8, 16], strides = [1, 1, 1]} : vector<4x8x128xf32> to vector<4x8x16xf32>
    %332 = arith.truncf %331 : vector<4x8x16xf32> to vector<4x8x16xbf16>
    %333 = vector.extract_strided_slice %327 {offsets = [0, 0, 0], sizes = [4, 8, 16], strides = [1, 1, 1]} : vector<4x8x128xf32> to vector<4x8x16xf32>
    %334 = arith.truncf %333 : vector<4x8x16xf32> to vector<4x8x16xbf16>
    %cst_118 = arith.constant dense<0.000000e+00> : vector<4x8x8xf32>
    %335 = tpu.matmul %330, %332, %cst_118 {dimension_numbers = #tpu.dot_dimension_numbers<[2], [2], [1], [1], [0, 0, 0, 1, 1, 1], [0], [0]>} : vector<4x8x16xbf16>, vector<4x8x16xbf16>, vector<4x8x8xf32> -> vector<4x8x8xf32>
    %cst_119 = arith.constant dense<0xFF800000> : vector<4x8xf32>
    %336 = vector.multi_reduction <maximumf>, %335, %cst_119 [2] : vector<4x8x8xf32> to vector<4x8xf32>
    %337 = vector.shape_cast %336 : vector<4x8xf32> to vector<4x8x1xf32>
    %338 = vector.broadcast %337 : vector<4x8x1xf32> to vector<4x8x8xf32>
    %339 = arith.subf %335, %338 : vector<4x8x8xf32>
    %340 = math.exp %339 : vector<4x8x8xf32>
    %cst_120 = arith.constant dense<0.000000e+00> : vector<4x8xf32>
    %341 = vector.multi_reduction <add>, %340, %cst_120 [2] : vector<4x8x8xf32> to vector<4x8xf32>
    %342 = vector.shape_cast %341 : vector<4x8xf32> to vector<4x8x1xf32>
    %343 = tpu.reciprocal %342 {approx = true} : vector<4x8x1xf32> -> vector<4x8x1xf32>
    %344 = arith.mulf %342, %343 : vector<4x8x1xf32>
    %cst_121 = arith.constant 2.000000e+00 : f32
    %345 = vector.broadcast %cst_121 : f32 to vector<4x8x1xf32>
    %346 = arith.subf %345, %344 : vector<4x8x1xf32>
    %347 = arith.mulf %343, %346 : vector<4x8x1xf32>
    %348 = vector.broadcast %347 : vector<4x8x1xf32> to vector<4x8x8xf32>
    %349 = arith.mulf %340, %348 : vector<4x8x8xf32>
    %350 = arith.truncf %349 : vector<4x8x8xf32> to vector<4x8x8xbf16>
    %cst_122 = arith.constant dense<0.000000e+00> : vector<4x8x16xf32>
    %351 = tpu.matmul %350, %334, %cst_122 {dimension_numbers = #tpu.dot_dimension_numbers<[2], [1], [1], [2], [0, 0, 0, 1, 1, 2], [0], [0]>} : vector<4x8x8xbf16>, vector<4x8x16xbf16>, vector<4x8x16xf32> -> vector<4x8x16xf32>
    %352 = vector.shape_cast %351 : vector<4x8x16xf32> to vector<32x16xf32>
    %353 = arith.truncf %352 : vector<32x16xf32> to vector<32x16xbf16>
    %c0_123 = arith.constant 0 : index
    %c0_124 = arith.constant 0 : index
    %354 = vector.load %arg13[%c0_123, %c0_124] : memref<128x128xbf16, #tpu.memory_space<vmem>>, vector<16x128xbf16>
    %cst_125 = arith.constant dense<0.000000e+00> : vector<32x128xf32>
    %355 = tpu.matmul %353, %354, %cst_125 {dimension_numbers = #tpu.dot_dimension_numbers<[1], [0], [0], [1], [0, 0, 1, 1], [], []>} : vector<32x16xbf16>, vector<16x128xbf16>, vector<32x128xf32> -> vector<32x128xf32>
    %356 = arith.addf %328, %355 : vector<32x128xf32>
    %357 = vector.extract_strided_slice %323 {offsets = [0, 0, 16], sizes = [4, 8, 16], strides = [1, 1, 1]} : vector<4x8x128xf32> to vector<4x8x16xf32>
    %358 = arith.truncf %357 : vector<4x8x16xf32> to vector<4x8x16xbf16>
    %359 = vector.extract_strided_slice %325 {offsets = [0, 0, 16], sizes = [4, 8, 16], strides = [1, 1, 1]} : vector<4x8x128xf32> to vector<4x8x16xf32>
    %360 = arith.truncf %359 : vector<4x8x16xf32> to vector<4x8x16xbf16>
    %361 = vector.extract_strided_slice %327 {offsets = [0, 0, 16], sizes = [4, 8, 16], strides = [1, 1, 1]} : vector<4x8x128xf32> to vector<4x8x16xf32>
    %362 = arith.truncf %361 : vector<4x8x16xf32> to vector<4x8x16xbf16>
    %cst_126 = arith.constant dense<0.000000e+00> : vector<4x8x8xf32>
    %363 = tpu.matmul %358, %360, %cst_126 {dimension_numbers = #tpu.dot_dimension_numbers<[2], [2], [1], [1], [0, 0, 0, 1, 1, 1], [0], [0]>} : vector<4x8x16xbf16>, vector<4x8x16xbf16>, vector<4x8x8xf32> -> vector<4x8x8xf32>
    %cst_127 = arith.constant dense<0xFF800000> : vector<4x8xf32>
    %364 = vector.multi_reduction <maximumf>, %363, %cst_127 [2] : vector<4x8x8xf32> to vector<4x8xf32>
    %365 = vector.shape_cast %364 : vector<4x8xf32> to vector<4x8x1xf32>
    %366 = vector.broadcast %365 : vector<4x8x1xf32> to vector<4x8x8xf32>
    %367 = arith.subf %363, %366 : vector<4x8x8xf32>
    %368 = math.exp %367 : vector<4x8x8xf32>
    %cst_128 = arith.constant dense<0.000000e+00> : vector<4x8xf32>
    %369 = vector.multi_reduction <add>, %368, %cst_128 [2] : vector<4x8x8xf32> to vector<4x8xf32>
    %370 = vector.shape_cast %369 : vector<4x8xf32> to vector<4x8x1xf32>
    %371 = tpu.reciprocal %370 {approx = true} : vector<4x8x1xf32> -> vector<4x8x1xf32>
    %372 = arith.mulf %370, %371 : vector<4x8x1xf32>
    %cst_129 = arith.constant 2.000000e+00 : f32
    %373 = vector.broadcast %cst_129 : f32 to vector<4x8x1xf32>
    %374 = arith.subf %373, %372 : vector<4x8x1xf32>
    %375 = arith.mulf %371, %374 : vector<4x8x1xf32>
    %376 = vector.broadcast %375 : vector<4x8x1xf32> to vector<4x8x8xf32>
    %377 = arith.mulf %368, %376 : vector<4x8x8xf32>
    %378 = arith.truncf %377 : vector<4x8x8xf32> to vector<4x8x8xbf16>
    %cst_130 = arith.constant dense<0.000000e+00> : vector<4x8x16xf32>
    %379 = tpu.matmul %378, %362, %cst_130 {dimension_numbers = #tpu.dot_dimension_numbers<[2], [1], [1], [2], [0, 0, 0, 1, 1, 2], [0], [0]>} : vector<4x8x8xbf16>, vector<4x8x16xbf16>, vector<4x8x16xf32> -> vector<4x8x16xf32>
    %380 = vector.shape_cast %379 : vector<4x8x16xf32> to vector<32x16xf32>
    %381 = arith.truncf %380 : vector<32x16xf32> to vector<32x16xbf16>
    %c16 = arith.constant 16 : index
    %c0_131 = arith.constant 0 : index
    %382 = vector.load %arg13[%c16, %c0_131] : memref<128x128xbf16, #tpu.memory_space<vmem>>, vector<16x128xbf16>
    %cst_132 = arith.constant dense<0.000000e+00> : vector<32x128xf32>
    %383 = tpu.matmul %381, %382, %cst_132 {dimension_numbers = #tpu.dot_dimension_numbers<[1], [0], [0], [1], [0, 0, 1, 1], [], []>} : vector<32x16xbf16>, vector<16x128xbf16>, vector<32x128xf32> -> vector<32x128xf32>
    %384 = arith.addf %356, %383 : vector<32x128xf32>
    %385 = vector.extract_strided_slice %323 {offsets = [0, 0, 32], sizes = [4, 8, 16], strides = [1, 1, 1]} : vector<4x8x128xf32> to vector<4x8x16xf32>
    %386 = arith.truncf %385 : vector<4x8x16xf32> to vector<4x8x16xbf16>
    %387 = vector.extract_strided_slice %325 {offsets = [0, 0, 32], sizes = [4, 8, 16], strides = [1, 1, 1]} : vector<4x8x128xf32> to vector<4x8x16xf32>
    %388 = arith.truncf %387 : vector<4x8x16xf32> to vector<4x8x16xbf16>
    %389 = vector.extract_strided_slice %327 {offsets = [0, 0, 32], sizes = [4, 8, 16], strides = [1, 1, 1]} : vector<4x8x128xf32> to vector<4x8x16xf32>
    %390 = arith.truncf %389 : vector<4x8x16xf32> to vector<4x8x16xbf16>
    %cst_133 = arith.constant dense<0.000000e+00> : vector<4x8x8xf32>
    %391 = tpu.matmul %386, %388, %cst_133 {dimension_numbers = #tpu.dot_dimension_numbers<[2], [2], [1], [1], [0, 0, 0, 1, 1, 1], [0], [0]>} : vector<4x8x16xbf16>, vector<4x8x16xbf16>, vector<4x8x8xf32> -> vector<4x8x8xf32>
    %cst_134 = arith.constant dense<0xFF800000> : vector<4x8xf32>
    %392 = vector.multi_reduction <maximumf>, %391, %cst_134 [2] : vector<4x8x8xf32> to vector<4x8xf32>
    %393 = vector.shape_cast %392 : vector<4x8xf32> to vector<4x8x1xf32>
    %394 = vector.broadcast %393 : vector<4x8x1xf32> to vector<4x8x8xf32>
    %395 = arith.subf %391, %394 : vector<4x8x8xf32>
    %396 = math.exp %395 : vector<4x8x8xf32>
    %cst_135 = arith.constant dense<0.000000e+00> : vector<4x8xf32>
    %397 = vector.multi_reduction <add>, %396, %cst_135 [2] : vector<4x8x8xf32> to vector<4x8xf32>
    %398 = vector.shape_cast %397 : vector<4x8xf32> to vector<4x8x1xf32>
    %399 = tpu.reciprocal %398 {approx = true} : vector<4x8x1xf32> -> vector<4x8x1xf32>
    %400 = arith.mulf %398, %399 : vector<4x8x1xf32>
    %cst_136 = arith.constant 2.000000e+00 : f32
    %401 = vector.broadcast %cst_136 : f32 to vector<4x8x1xf32>
    %402 = arith.subf %401, %400 : vector<4x8x1xf32>
    %403 = arith.mulf %399, %402 : vector<4x8x1xf32>
    %404 = vector.broadcast %403 : vector<4x8x1xf32> to vector<4x8x8xf32>
    %405 = arith.mulf %396, %404 : vector<4x8x8xf32>
    %406 = arith.truncf %405 : vector<4x8x8xf32> to vector<4x8x8xbf16>
    %cst_137 = arith.constant dense<0.000000e+00> : vector<4x8x16xf32>
    %407 = tpu.matmul %406, %390, %cst_137 {dimension_numbers = #tpu.dot_dimension_numbers<[2], [1], [1], [2], [0, 0, 0, 1, 1, 2], [0], [0]>} : vector<4x8x8xbf16>, vector<4x8x16xbf16>, vector<4x8x16xf32> -> vector<4x8x16xf32>
    %408 = vector.shape_cast %407 : vector<4x8x16xf32> to vector<32x16xf32>
    %409 = arith.truncf %408 : vector<32x16xf32> to vector<32x16xbf16>
    %c32 = arith.constant 32 : index
    %c0_138 = arith.constant 0 : index
    %410 = vector.load %arg13[%c32, %c0_138] : memref<128x128xbf16, #tpu.memory_space<vmem>>, vector<16x128xbf16>
    %cst_139 = arith.constant dense<0.000000e+00> : vector<32x128xf32>
    %411 = tpu.matmul %409, %410, %cst_139 {dimension_numbers = #tpu.dot_dimension_numbers<[1], [0], [0], [1], [0, 0, 1, 1], [], []>} : vector<32x16xbf16>, vector<16x128xbf16>, vector<32x128xf32> -> vector<32x128xf32>
    %412 = arith.addf %384, %411 : vector<32x128xf32>
    %413 = vector.extract_strided_slice %323 {offsets = [0, 0, 48], sizes = [4, 8, 16], strides = [1, 1, 1]} : vector<4x8x128xf32> to vector<4x8x16xf32>
    %414 = arith.truncf %413 : vector<4x8x16xf32> to vector<4x8x16xbf16>
    %415 = vector.extract_strided_slice %325 {offsets = [0, 0, 48], sizes = [4, 8, 16], strides = [1, 1, 1]} : vector<4x8x128xf32> to vector<4x8x16xf32>
    %416 = arith.truncf %415 : vector<4x8x16xf32> to vector<4x8x16xbf16>
    %417 = vector.extract_strided_slice %327 {offsets = [0, 0, 48], sizes = [4, 8, 16], strides = [1, 1, 1]} : vector<4x8x128xf32> to vector<4x8x16xf32>
    %418 = arith.truncf %417 : vector<4x8x16xf32> to vector<4x8x16xbf16>
    %cst_140 = arith.constant dense<0.000000e+00> : vector<4x8x8xf32>
    %419 = tpu.matmul %414, %416, %cst_140 {dimension_numbers = #tpu.dot_dimension_numbers<[2], [2], [1], [1], [0, 0, 0, 1, 1, 1], [0], [0]>} : vector<4x8x16xbf16>, vector<4x8x16xbf16>, vector<4x8x8xf32> -> vector<4x8x8xf32>
    %cst_141 = arith.constant dense<0xFF800000> : vector<4x8xf32>
    %420 = vector.multi_reduction <maximumf>, %419, %cst_141 [2] : vector<4x8x8xf32> to vector<4x8xf32>
    %421 = vector.shape_cast %420 : vector<4x8xf32> to vector<4x8x1xf32>
    %422 = vector.broadcast %421 : vector<4x8x1xf32> to vector<4x8x8xf32>
    %423 = arith.subf %419, %422 : vector<4x8x8xf32>
    %424 = math.exp %423 : vector<4x8x8xf32>
    %cst_142 = arith.constant dense<0.000000e+00> : vector<4x8xf32>
    %425 = vector.multi_reduction <add>, %424, %cst_142 [2] : vector<4x8x8xf32> to vector<4x8xf32>
    %426 = vector.shape_cast %425 : vector<4x8xf32> to vector<4x8x1xf32>
    %427 = tpu.reciprocal %426 {approx = true} : vector<4x8x1xf32> -> vector<4x8x1xf32>
    %428 = arith.mulf %426, %427 : vector<4x8x1xf32>
    %cst_143 = arith.constant 2.000000e+00 : f32
    %429 = vector.broadcast %cst_143 : f32 to vector<4x8x1xf32>
    %430 = arith.subf %429, %428 : vector<4x8x1xf32>
    %431 = arith.mulf %427, %430 : vector<4x8x1xf32>
    %432 = vector.broadcast %431 : vector<4x8x1xf32> to vector<4x8x8xf32>
    %433 = arith.mulf %424, %432 : vector<4x8x8xf32>
    %434 = arith.truncf %433 : vector<4x8x8xf32> to vector<4x8x8xbf16>
    %cst_144 = arith.constant dense<0.000000e+00> : vector<4x8x16xf32>
    %435 = tpu.matmul %434, %418, %cst_144 {dimension_numbers = #tpu.dot_dimension_numbers<[2], [1], [1], [2], [0, 0, 0, 1, 1, 2], [0], [0]>} : vector<4x8x8xbf16>, vector<4x8x16xbf16>, vector<4x8x16xf32> -> vector<4x8x16xf32>
    %436 = vector.shape_cast %435 : vector<4x8x16xf32> to vector<32x16xf32>
    %437 = arith.truncf %436 : vector<32x16xf32> to vector<32x16xbf16>
    %c48 = arith.constant 48 : index
    %c0_145 = arith.constant 0 : index
    %438 = vector.load %arg13[%c48, %c0_145] : memref<128x128xbf16, #tpu.memory_space<vmem>>, vector<16x128xbf16>
    %cst_146 = arith.constant dense<0.000000e+00> : vector<32x128xf32>
    %439 = tpu.matmul %437, %438, %cst_146 {dimension_numbers = #tpu.dot_dimension_numbers<[1], [0], [0], [1], [0, 0, 1, 1], [], []>} : vector<32x16xbf16>, vector<16x128xbf16>, vector<32x128xf32> -> vector<32x128xf32>
    %440 = arith.addf %412, %439 : vector<32x128xf32>
    %441 = vector.extract_strided_slice %323 {offsets = [0, 0, 64], sizes = [4, 8, 16], strides = [1, 1, 1]} : vector<4x8x128xf32> to vector<4x8x16xf32>
    %442 = arith.truncf %441 : vector<4x8x16xf32> to vector<4x8x16xbf16>
    %443 = vector.extract_strided_slice %325 {offsets = [0, 0, 64], sizes = [4, 8, 16], strides = [1, 1, 1]} : vector<4x8x128xf32> to vector<4x8x16xf32>
    %444 = arith.truncf %443 : vector<4x8x16xf32> to vector<4x8x16xbf16>
    %445 = vector.extract_strided_slice %327 {offsets = [0, 0, 64], sizes = [4, 8, 16], strides = [1, 1, 1]} : vector<4x8x128xf32> to vector<4x8x16xf32>
    %446 = arith.truncf %445 : vector<4x8x16xf32> to vector<4x8x16xbf16>
    %cst_147 = arith.constant dense<0.000000e+00> : vector<4x8x8xf32>
    %447 = tpu.matmul %442, %444, %cst_147 {dimension_numbers = #tpu.dot_dimension_numbers<[2], [2], [1], [1], [0, 0, 0, 1, 1, 1], [0], [0]>} : vector<4x8x16xbf16>, vector<4x8x16xbf16>, vector<4x8x8xf32> -> vector<4x8x8xf32>
    %cst_148 = arith.constant dense<0xFF800000> : vector<4x8xf32>
    %448 = vector.multi_reduction <maximumf>, %447, %cst_148 [2] : vector<4x8x8xf32> to vector<4x8xf32>
    %449 = vector.shape_cast %448 : vector<4x8xf32> to vector<4x8x1xf32>
    %450 = vector.broadcast %449 : vector<4x8x1xf32> to vector<4x8x8xf32>
    %451 = arith.subf %447, %450 : vector<4x8x8xf32>
    %452 = math.exp %451 : vector<4x8x8xf32>
    %cst_149 = arith.constant dense<0.000000e+00> : vector<4x8xf32>
    %453 = vector.multi_reduction <add>, %452, %cst_149 [2] : vector<4x8x8xf32> to vector<4x8xf32>
    %454 = vector.shape_cast %453 : vector<4x8xf32> to vector<4x8x1xf32>
    %455 = tpu.reciprocal %454 {approx = true} : vector<4x8x1xf32> -> vector<4x8x1xf32>
    %456 = arith.mulf %454, %455 : vector<4x8x1xf32>
    %cst_150 = arith.constant 2.000000e+00 : f32
    %457 = vector.broadcast %cst_150 : f32 to vector<4x8x1xf32>
    %458 = arith.subf %457, %456 : vector<4x8x1xf32>
    %459 = arith.mulf %455, %458 : vector<4x8x1xf32>
    %460 = vector.broadcast %459 : vector<4x8x1xf32> to vector<4x8x8xf32>
    %461 = arith.mulf %452, %460 : vector<4x8x8xf32>
    %462 = arith.truncf %461 : vector<4x8x8xf32> to vector<4x8x8xbf16>
    %cst_151 = arith.constant dense<0.000000e+00> : vector<4x8x16xf32>
    %463 = tpu.matmul %462, %446, %cst_151 {dimension_numbers = #tpu.dot_dimension_numbers<[2], [1], [1], [2], [0, 0, 0, 1, 1, 2], [0], [0]>} : vector<4x8x8xbf16>, vector<4x8x16xbf16>, vector<4x8x16xf32> -> vector<4x8x16xf32>
    %464 = vector.shape_cast %463 : vector<4x8x16xf32> to vector<32x16xf32>
    %465 = arith.truncf %464 : vector<32x16xf32> to vector<32x16xbf16>
    %c64 = arith.constant 64 : index
    %c0_152 = arith.constant 0 : index
    %466 = vector.load %arg13[%c64, %c0_152] : memref<128x128xbf16, #tpu.memory_space<vmem>>, vector<16x128xbf16>
    %cst_153 = arith.constant dense<0.000000e+00> : vector<32x128xf32>
    %467 = tpu.matmul %465, %466, %cst_153 {dimension_numbers = #tpu.dot_dimension_numbers<[1], [0], [0], [1], [0, 0, 1, 1], [], []>} : vector<32x16xbf16>, vector<16x128xbf16>, vector<32x128xf32> -> vector<32x128xf32>
    %468 = arith.addf %440, %467 : vector<32x128xf32>
    %469 = vector.extract_strided_slice %323 {offsets = [0, 0, 80], sizes = [4, 8, 16], strides = [1, 1, 1]} : vector<4x8x128xf32> to vector<4x8x16xf32>
    %470 = arith.truncf %469 : vector<4x8x16xf32> to vector<4x8x16xbf16>
    %471 = vector.extract_strided_slice %325 {offsets = [0, 0, 80], sizes = [4, 8, 16], strides = [1, 1, 1]} : vector<4x8x128xf32> to vector<4x8x16xf32>
    %472 = arith.truncf %471 : vector<4x8x16xf32> to vector<4x8x16xbf16>
    %473 = vector.extract_strided_slice %327 {offsets = [0, 0, 80], sizes = [4, 8, 16], strides = [1, 1, 1]} : vector<4x8x128xf32> to vector<4x8x16xf32>
    %474 = arith.truncf %473 : vector<4x8x16xf32> to vector<4x8x16xbf16>
    %cst_154 = arith.constant dense<0.000000e+00> : vector<4x8x8xf32>
    %475 = tpu.matmul %470, %472, %cst_154 {dimension_numbers = #tpu.dot_dimension_numbers<[2], [2], [1], [1], [0, 0, 0, 1, 1, 1], [0], [0]>} : vector<4x8x16xbf16>, vector<4x8x16xbf16>, vector<4x8x8xf32> -> vector<4x8x8xf32>
    %cst_155 = arith.constant dense<0xFF800000> : vector<4x8xf32>
    %476 = vector.multi_reduction <maximumf>, %475, %cst_155 [2] : vector<4x8x8xf32> to vector<4x8xf32>
    %477 = vector.shape_cast %476 : vector<4x8xf32> to vector<4x8x1xf32>
    %478 = vector.broadcast %477 : vector<4x8x1xf32> to vector<4x8x8xf32>
    %479 = arith.subf %475, %478 : vector<4x8x8xf32>
    %480 = math.exp %479 : vector<4x8x8xf32>
    %cst_156 = arith.constant dense<0.000000e+00> : vector<4x8xf32>
    %481 = vector.multi_reduction <add>, %480, %cst_156 [2] : vector<4x8x8xf32> to vector<4x8xf32>
    %482 = vector.shape_cast %481 : vector<4x8xf32> to vector<4x8x1xf32>
    %483 = tpu.reciprocal %482 {approx = true} : vector<4x8x1xf32> -> vector<4x8x1xf32>
    %484 = arith.mulf %482, %483 : vector<4x8x1xf32>
    %cst_157 = arith.constant 2.000000e+00 : f32
    %485 = vector.broadcast %cst_157 : f32 to vector<4x8x1xf32>
    %486 = arith.subf %485, %484 : vector<4x8x1xf32>
    %487 = arith.mulf %483, %486 : vector<4x8x1xf32>
    %488 = vector.broadcast %487 : vector<4x8x1xf32> to vector<4x8x8xf32>
    %489 = arith.mulf %480, %488 : vector<4x8x8xf32>
    %490 = arith.truncf %489 : vector<4x8x8xf32> to vector<4x8x8xbf16>
    %cst_158 = arith.constant dense<0.000000e+00> : vector<4x8x16xf32>
    %491 = tpu.matmul %490, %474, %cst_158 {dimension_numbers = #tpu.dot_dimension_numbers<[2], [1], [1], [2], [0, 0, 0, 1, 1, 2], [0], [0]>} : vector<4x8x8xbf16>, vector<4x8x16xbf16>, vector<4x8x16xf32> -> vector<4x8x16xf32>
    %492 = vector.shape_cast %491 : vector<4x8x16xf32> to vector<32x16xf32>
    %493 = arith.truncf %492 : vector<32x16xf32> to vector<32x16xbf16>
    %c80 = arith.constant 80 : index
    %c0_159 = arith.constant 0 : index
    %494 = vector.load %arg13[%c80, %c0_159] : memref<128x128xbf16, #tpu.memory_space<vmem>>, vector<16x128xbf16>
    %cst_160 = arith.constant dense<0.000000e+00> : vector<32x128xf32>
    %495 = tpu.matmul %493, %494, %cst_160 {dimension_numbers = #tpu.dot_dimension_numbers<[1], [0], [0], [1], [0, 0, 1, 1], [], []>} : vector<32x16xbf16>, vector<16x128xbf16>, vector<32x128xf32> -> vector<32x128xf32>
    %496 = arith.addf %468, %495 : vector<32x128xf32>
    %497 = vector.extract_strided_slice %323 {offsets = [0, 0, 96], sizes = [4, 8, 16], strides = [1, 1, 1]} : vector<4x8x128xf32> to vector<4x8x16xf32>
    %498 = arith.truncf %497 : vector<4x8x16xf32> to vector<4x8x16xbf16>
    %499 = vector.extract_strided_slice %325 {offsets = [0, 0, 96], sizes = [4, 8, 16], strides = [1, 1, 1]} : vector<4x8x128xf32> to vector<4x8x16xf32>
    %500 = arith.truncf %499 : vector<4x8x16xf32> to vector<4x8x16xbf16>
    %501 = vector.extract_strided_slice %327 {offsets = [0, 0, 96], sizes = [4, 8, 16], strides = [1, 1, 1]} : vector<4x8x128xf32> to vector<4x8x16xf32>
    %502 = arith.truncf %501 : vector<4x8x16xf32> to vector<4x8x16xbf16>
    %cst_161 = arith.constant dense<0.000000e+00> : vector<4x8x8xf32>
    %503 = tpu.matmul %498, %500, %cst_161 {dimension_numbers = #tpu.dot_dimension_numbers<[2], [2], [1], [1], [0, 0, 0, 1, 1, 1], [0], [0]>} : vector<4x8x16xbf16>, vector<4x8x16xbf16>, vector<4x8x8xf32> -> vector<4x8x8xf32>
    %cst_162 = arith.constant dense<0xFF800000> : vector<4x8xf32>
    %504 = vector.multi_reduction <maximumf>, %503, %cst_162 [2] : vector<4x8x8xf32> to vector<4x8xf32>
    %505 = vector.shape_cast %504 : vector<4x8xf32> to vector<4x8x1xf32>
    %506 = vector.broadcast %505 : vector<4x8x1xf32> to vector<4x8x8xf32>
    %507 = arith.subf %503, %506 : vector<4x8x8xf32>
    %508 = math.exp %507 : vector<4x8x8xf32>
    %cst_163 = arith.constant dense<0.000000e+00> : vector<4x8xf32>
    %509 = vector.multi_reduction <add>, %508, %cst_163 [2] : vector<4x8x8xf32> to vector<4x8xf32>
    %510 = vector.shape_cast %509 : vector<4x8xf32> to vector<4x8x1xf32>
    %511 = tpu.reciprocal %510 {approx = true} : vector<4x8x1xf32> -> vector<4x8x1xf32>
    %512 = arith.mulf %510, %511 : vector<4x8x1xf32>
    %cst_164 = arith.constant 2.000000e+00 : f32
    %513 = vector.broadcast %cst_164 : f32 to vector<4x8x1xf32>
    %514 = arith.subf %513, %512 : vector<4x8x1xf32>
    %515 = arith.mulf %511, %514 : vector<4x8x1xf32>
    %516 = vector.broadcast %515 : vector<4x8x1xf32> to vector<4x8x8xf32>
    %517 = arith.mulf %508, %516 : vector<4x8x8xf32>
    %518 = arith.truncf %517 : vector<4x8x8xf32> to vector<4x8x8xbf16>
    %cst_165 = arith.constant dense<0.000000e+00> : vector<4x8x16xf32>
    %519 = tpu.matmul %518, %502, %cst_165 {dimension_numbers = #tpu.dot_dimension_numbers<[2], [1], [1], [2], [0, 0, 0, 1, 1, 2], [0], [0]>} : vector<4x8x8xbf16>, vector<4x8x16xbf16>, vector<4x8x16xf32> -> vector<4x8x16xf32>
    %520 = vector.shape_cast %519 : vector<4x8x16xf32> to vector<32x16xf32>
    %521 = arith.truncf %520 : vector<32x16xf32> to vector<32x16xbf16>
    %c96 = arith.constant 96 : index
    %c0_166 = arith.constant 0 : index
    %522 = vector.load %arg13[%c96, %c0_166] : memref<128x128xbf16, #tpu.memory_space<vmem>>, vector<16x128xbf16>
    %cst_167 = arith.constant dense<0.000000e+00> : vector<32x128xf32>
    %523 = tpu.matmul %521, %522, %cst_167 {dimension_numbers = #tpu.dot_dimension_numbers<[1], [0], [0], [1], [0, 0, 1, 1], [], []>} : vector<32x16xbf16>, vector<16x128xbf16>, vector<32x128xf32> -> vector<32x128xf32>
    %524 = arith.addf %496, %523 : vector<32x128xf32>
    %525 = vector.extract_strided_slice %323 {offsets = [0, 0, 112], sizes = [4, 8, 16], strides = [1, 1, 1]} : vector<4x8x128xf32> to vector<4x8x16xf32>
    %526 = arith.truncf %525 : vector<4x8x16xf32> to vector<4x8x16xbf16>
    %527 = vector.extract_strided_slice %325 {offsets = [0, 0, 112], sizes = [4, 8, 16], strides = [1, 1, 1]} : vector<4x8x128xf32> to vector<4x8x16xf32>
    %528 = arith.truncf %527 : vector<4x8x16xf32> to vector<4x8x16xbf16>
    %529 = vector.extract_strided_slice %327 {offsets = [0, 0, 112], sizes = [4, 8, 16], strides = [1, 1, 1]} : vector<4x8x128xf32> to vector<4x8x16xf32>
    %530 = arith.truncf %529 : vector<4x8x16xf32> to vector<4x8x16xbf16>
    %cst_168 = arith.constant dense<0.000000e+00> : vector<4x8x8xf32>
    %531 = tpu.matmul %526, %528, %cst_168 {dimension_numbers = #tpu.dot_dimension_numbers<[2], [2], [1], [1], [0, 0, 0, 1, 1, 1], [0], [0]>} : vector<4x8x16xbf16>, vector<4x8x16xbf16>, vector<4x8x8xf32> -> vector<4x8x8xf32>
    %cst_169 = arith.constant dense<0xFF800000> : vector<4x8xf32>
    %532 = vector.multi_reduction <maximumf>, %531, %cst_169 [2] : vector<4x8x8xf32> to vector<4x8xf32>
    %533 = vector.shape_cast %532 : vector<4x8xf32> to vector<4x8x1xf32>
    %534 = vector.broadcast %533 : vector<4x8x1xf32> to vector<4x8x8xf32>
    %535 = arith.subf %531, %534 : vector<4x8x8xf32>
    %536 = math.exp %535 : vector<4x8x8xf32>
    %cst_170 = arith.constant dense<0.000000e+00> : vector<4x8xf32>
    %537 = vector.multi_reduction <add>, %536, %cst_170 [2] : vector<4x8x8xf32> to vector<4x8xf32>
    %538 = vector.shape_cast %537 : vector<4x8xf32> to vector<4x8x1xf32>
    %539 = tpu.reciprocal %538 {approx = true} : vector<4x8x1xf32> -> vector<4x8x1xf32>
    %540 = arith.mulf %538, %539 : vector<4x8x1xf32>
    %cst_171 = arith.constant 2.000000e+00 : f32
    %541 = vector.broadcast %cst_171 : f32 to vector<4x8x1xf32>
    %542 = arith.subf %541, %540 : vector<4x8x1xf32>
    %543 = arith.mulf %539, %542 : vector<4x8x1xf32>
    %544 = vector.broadcast %543 : vector<4x8x1xf32> to vector<4x8x8xf32>
    %545 = arith.mulf %536, %544 : vector<4x8x8xf32>
    %546 = arith.truncf %545 : vector<4x8x8xf32> to vector<4x8x8xbf16>
    %cst_172 = arith.constant dense<0.000000e+00> : vector<4x8x16xf32>
    %547 = tpu.matmul %546, %530, %cst_172 {dimension_numbers = #tpu.dot_dimension_numbers<[2], [1], [1], [2], [0, 0, 0, 1, 1, 2], [0], [0]>} : vector<4x8x8xbf16>, vector<4x8x16xbf16>, vector<4x8x16xf32> -> vector<4x8x16xf32>
    %548 = vector.shape_cast %547 : vector<4x8x16xf32> to vector<32x16xf32>
    %549 = arith.truncf %548 : vector<32x16xf32> to vector<32x16xbf16>
    %c112 = arith.constant 112 : index
    %c0_173 = arith.constant 0 : index
    %550 = vector.load %arg13[%c112, %c0_173] : memref<128x128xbf16, #tpu.memory_space<vmem>>, vector<16x128xbf16>
    %cst_174 = arith.constant dense<0.000000e+00> : vector<32x128xf32>
    %551 = tpu.matmul %549, %550, %cst_174 {dimension_numbers = #tpu.dot_dimension_numbers<[1], [0], [0], [1], [0, 0, 1, 1], [], []>} : vector<32x16xbf16>, vector<16x128xbf16>, vector<32x128xf32> -> vector<32x128xf32>
    %552 = arith.addf %524, %551 : vector<32x128xf32>
    %553 = arith.addf %293, %552 : vector<32x128xf32>
    %c0_175 = arith.constant 0 : index
    %c0_176 = arith.constant 0 : index
    %554 = vector.load %arg14[%c0_175, %c0_176] : memref<1x128xf32, #tpu.memory_space<vmem>>, vector<1x128xf32>
    %555 = vector.broadcast %554 : vector<1x128xf32> to vector<32x128xf32>
    %556 = arith.addf %553, %555 : vector<32x128xf32>
    %c0_177 = arith.constant 0 : index
    %c0_178 = arith.constant 0 : index
    %557 = vector.load %arg15[%c0_177, %c0_178] : memref<1x128xf32, #tpu.memory_space<vmem>>, vector<1x128xf32>
    %c0_179 = arith.constant 0 : index
    %c0_180 = arith.constant 0 : index
    %558 = vector.load %arg16[%c0_179, %c0_180] : memref<1x128xf32, #tpu.memory_space<vmem>>, vector<1x128xf32>
    %cst_181 = arith.constant dense<0.000000e+00> : vector<32xf32>
    %559 = vector.multi_reduction <add>, %556, %cst_181 [1] : vector<32x128xf32> to vector<32xf32>
    %560 = vector.shape_cast %559 : vector<32xf32> to vector<32x1xf32>
    %cst_182 = arith.constant 1.280000e+02 : f32
    %561 = vector.broadcast %cst_182 : f32 to vector<32x1xf32>
    %562 = arith.divf %560, %561 : vector<32x1xf32>
    %563 = vector.broadcast %562 : vector<32x1xf32> to vector<32x128xf32>
    %564 = arith.subf %556, %563 : vector<32x128xf32>
    %565 = arith.mulf %564, %564 : vector<32x128xf32>
    %cst_183 = arith.constant dense<0.000000e+00> : vector<32xf32>
    %566 = vector.multi_reduction <add>, %565, %cst_183 [1] : vector<32x128xf32> to vector<32xf32>
    %567 = vector.shape_cast %566 : vector<32xf32> to vector<32x1xf32>
    %cst_184 = arith.constant 1.280000e+02 : f32
    %568 = vector.broadcast %cst_184 : f32 to vector<32x1xf32>
    %569 = arith.divf %567, %568 : vector<32x1xf32>
    %cst_185 = arith.constant 9.99999974E-6 : f32
    %570 = vector.broadcast %cst_185 : f32 to vector<32x1xf32>
    %571 = arith.addf %569, %570 : vector<32x1xf32>
    %572 = math.rsqrt %571 : vector<32x1xf32>
    %573 = vector.broadcast %572 : vector<32x1xf32> to vector<32x128xf32>
    %574 = arith.mulf %564, %573 : vector<32x128xf32>
    %575 = vector.broadcast %557 : vector<1x128xf32> to vector<32x128xf32>
    %576 = arith.mulf %574, %575 : vector<32x128xf32>
    %577 = vector.broadcast %558 : vector<1x128xf32> to vector<32x128xf32>
    %578 = arith.addf %576, %577 : vector<32x128xf32>
    %579 = arith.truncf %578 : vector<32x128xf32> to vector<32x128xbf16>
    %c0_186 = arith.constant 0 : index
    %c0_187 = arith.constant 0 : index
    %580 = vector.load %arg17[%c0_186, %c0_187] : memref<128x128xbf16, #tpu.memory_space<vmem>>, vector<128x128xbf16>
    %cst_188 = arith.constant dense<0.000000e+00> : vector<32x128xf32>
    %581 = tpu.matmul %579, %580, %cst_188 {dimension_numbers = #tpu.dot_dimension_numbers<[1], [0], [0], [1], [0, 0, 1, 1], [], []>} : vector<32x128xbf16>, vector<128x128xbf16>, vector<32x128xf32> -> vector<32x128xf32>
    %c0_189 = arith.constant 0 : index
    %c0_190 = arith.constant 0 : index
    %582 = vector.load %arg18[%c0_189, %c0_190] : memref<1x128xf32, #tpu.memory_space<vmem>>, vector<1x128xf32>
    %583 = vector.broadcast %582 : vector<1x128xf32> to vector<32x128xf32>
    %584 = arith.addf %581, %583 : vector<32x128xf32>
    %cst_191 = arith.constant 0.000000e+00 : f32
    %585 = vector.broadcast %cst_191 : f32 to vector<32x128xf32>
    %586 = arith.maximumf %584, %585 : vector<32x128xf32>
    %587 = arith.addf %556, %586 : vector<32x128xf32>
    %c0_192 = arith.constant 0 : index
    %c0_193 = arith.constant 0 : index
    %588 = vector.load %arg19[%c0_192, %c0_193] : memref<32x128xf32, #tpu.memory_space<vmem>>, vector<32x128xf32>
    tpu.vector_store %arg19[%c0_192, %c0_193], %587 {strides = array<i32>} : memref<32x128xf32, #tpu.memory_space<vmem>>, vector<32x128xf32>,
    return
  }
  func.func @transform_0(%arg0: i32) -> (i32, i32) {
    %c0_i32 = arith.constant 0 : i32
    %c0_i32_0 = arith.constant 0 : i32
    return %arg0, %c0_i32 : i32, i32
  }
  func.func @transform_1(%arg0: i32) -> (i32, i32, i32) {
    %c0_i32 = arith.constant 0 : i32
    %c0_i32_0 = arith.constant 0 : i32
    %c0_i32_1 = arith.constant 0 : i32
    return %arg0, %c0_i32, %c0_i32_0 : i32, i32, i32
  }
  func.func @transform_2(%arg0: i32) -> (i32, i32, i32) {
    %c0_i32 = arith.constant 0 : i32
    %c0_i32_0 = arith.constant 0 : i32
    %c0_i32_1 = arith.constant 0 : i32
    %c0_i32_2 = arith.constant 0 : i32
    return %c0_i32, %c0_i32_0, %c0_i32_1 : i32, i32, i32
  }
  func.func @transform_3(%arg0: i32) -> (i32, i32, i32) {
    %c0_i32 = arith.constant 0 : i32
    %c0_i32_0 = arith.constant 0 : i32
    %c0_i32_1 = arith.constant 0 : i32
    %c0_i32_2 = arith.constant 0 : i32
    return %c0_i32, %c0_i32_0, %c0_i32_1 : i32, i32, i32
  }
  func.func @transform_4(%arg0: i32) -> (i32, i32, i32) {
    %c0_i32 = arith.constant 0 : i32
    %c0_i32_0 = arith.constant 0 : i32
    %c0_i32_1 = arith.constant 0 : i32
    %c0_i32_2 = arith.constant 0 : i32
    return %c0_i32, %c0_i32_0, %c0_i32_1 : i32, i32, i32
  }
  func.func @transform_5(%arg0: i32) -> (i32, i32, i32) {
    %c0_i32 = arith.constant 0 : i32
    %c0_i32_0 = arith.constant 0 : i32
    %c0_i32_1 = arith.constant 0 : i32
    %c0_i32_2 = arith.constant 0 : i32
    return %c0_i32, %c0_i32_0, %c0_i32_1 : i32, i32, i32
  }
  func.func @transform_6(%arg0: i32) -> (i32, i32, i32) {
    %c0_i32 = arith.constant 0 : i32
    %c0_i32_0 = arith.constant 0 : i32
    %c0_i32_1 = arith.constant 0 : i32
    %c0_i32_2 = arith.constant 0 : i32
    return %c0_i32, %c0_i32_0, %c0_i32_1 : i32, i32, i32
  }
  func.func @transform_7(%arg0: i32) -> (i32, i32, i32) {
    %c0_i32 = arith.constant 0 : i32
    %c0_i32_0 = arith.constant 0 : i32
    %c0_i32_1 = arith.constant 0 : i32
    %c0_i32_2 = arith.constant 0 : i32
    return %c0_i32, %c0_i32_0, %c0_i32_1 : i32, i32, i32
  }
  func.func @transform_8(%arg0: i32) -> (i32, i32) {
    %c0_i32 = arith.constant 0 : i32
    %c0_i32_0 = arith.constant 0 : i32
    %c0_i32_1 = arith.constant 0 : i32
    return %c0_i32, %c0_i32_0 : i32, i32
  }
  func.func @transform_9(%arg0: i32) -> (i32, i32) {
    %c0_i32 = arith.constant 0 : i32
    %c0_i32_0 = arith.constant 0 : i32
    %c0_i32_1 = arith.constant 0 : i32
    return %c0_i32, %c0_i32_0 : i32, i32
  }
  func.func @transform_10(%arg0: i32) -> (i32, i32) {
    %c0_i32 = arith.constant 0 : i32
    %c0_i32_0 = arith.constant 0 : i32
    %c0_i32_1 = arith.constant 0 : i32
    return %c0_i32, %c0_i32_0 : i32, i32
  }
  func.func @transform_11(%arg0: i32) -> (i32, i32) {
    %c0_i32 = arith.constant 0 : i32
    %c0_i32_0 = arith.constant 0 : i32
    %c0_i32_1 = arith.constant 0 : i32
    return %c0_i32, %c0_i32_0 : i32, i32
  }
  func.func @transform_12(%arg0: i32) -> (i32, i32) {
    %c0_i32 = arith.constant 0 : i32
    %c0_i32_0 = arith.constant 0 : i32
    %c0_i32_1 = arith.constant 0 : i32
    return %c0_i32, %c0_i32_0 : i32, i32
  }
  func.func @transform_13(%arg0: i32) -> (i32, i32) {
    %c0_i32 = arith.constant 0 : i32
    %c0_i32_0 = arith.constant 0 : i32
    %c0_i32_1 = arith.constant 0 : i32
    return %c0_i32, %c0_i32_0 : i32, i32
  }
  func.func @transform_14(%arg0: i32) -> (i32, i32) {
    %c0_i32 = arith.constant 0 : i32
    %c0_i32_0 = arith.constant 0 : i32
    %c0_i32_1 = arith.constant 0 : i32
    return %c0_i32, %c0_i32_0 : i32, i32
  }
  func.func @transform_15(%arg0: i32) -> (i32, i32) {
    %c0_i32 = arith.constant 0 : i32
    %c0_i32_0 = arith.constant 0 : i32
    %c0_i32_1 = arith.constant 0 : i32
    return %c0_i32, %c0_i32_0 : i32, i32
  }
  func.func @transform_16(%arg0: i32) -> (i32, i32) {
    %c0_i32 = arith.constant 0 : i32
    %c0_i32_0 = arith.constant 0 : i32
    %c0_i32_1 = arith.constant 0 : i32
    return %c0_i32, %c0_i32_0 : i32, i32
  }
  func.func @transform_17(%arg0: i32) -> (i32, i32) {
    %c0_i32 = arith.constant 0 : i32
    %c0_i32_0 = arith.constant 0 : i32
    %c0_i32_1 = arith.constant 0 : i32
    return %c0_i32, %c0_i32_0 : i32, i32
  }
  func.func @transform_18(%arg0: i32) -> (i32, i32) {
    %c0_i32 = arith.constant 0 : i32
    %c0_i32_0 = arith.constant 0 : i32
    return %arg0, %c0_i32 : i32, i32
  }
}

</mosaic_0001>

<bundles_post_ra>
// kernel: tpu_custom_call.1
= control target key start
LH: loop header
LB: loop body
LE: loop exit
PB: predicated region body
PF: predicated region fallthrough
CT: control target
= control target key end

     0   :  { %s10261_s0 = inlined_call_operand.hbm [shape: f32[64,128], index: 0, kind: input, shape index: {}]   ;;  %s10262_s1 = inlined_call_operand.vmem [shape: f32[8,1,128], index: 1, kind: input, shape index: {}]   ;;  %s10263_s2 = inlined_call_operand.hbm [shape: f32[2,1,128], index: 2, kind: input, shape index: {}]   ;;  %s10264_s3 = inlined_call_operand.hbm [shape: f32[2,1,128], index: 3, kind: input, shape index: {}]   ;;  %s10265_s4 = inlined_call_operand.vmem [shape: f32[2,7,128], index: 4, kind: input, shape index: {}]   ;;  %s10266_s5 = inlined_call_operand.hbm [shape: f32[2,1,128], index: 5, kind: input, shape index: {}]   ;;  %s10267_s6 = inlined_call_operand.hbm [shape: bf16[2,128,128], index: 6, kind: input, shape index: {}]   ;;  %s10268_s7 = inlined_call_operand.hbm [shape: f32[2,1,128], index: 7, kind: input, shape index: {}]   ;;  %s10269_s8 = inlined_call_operand.hbm [shape: f32[1,128], index: 8, kind: input, shape index: {}]   ;;  %s10270_s9 = inlined_call_operand.hbm [shape: f32[1,128], index: 9, kind: input, shape index: {}]   ;;  %s10271_s10 = inlined_call_operand.hbm [shape: bf16[128,384], index: 10, kind: input, shape index: {}]   ;;  %s10272_s11 = inlined_call_operand.vmem [shape: f32[1,384], index: 11, kind: input, shape index: {}]   ;;  %s10273_s12 = inlined_call_operand.vmem [shape: bf16[128,128], index: 12, kind: input, shape index: {}]   ;;  %s10274_s13 = inlined_call_operand.vmem [shape: f32[1,128], index: 13, kind: input, shape index: {}]   ;;  %s10275_s14 = inlined_call_operand.vmem [shape: f32[1,128], index: 14, kind: input, shape index: {}]   ;;  %s10276_s15 = inlined_call_operand.vmem [shape: f32[1,128], index: 15, kind: input, shape index: {}]   ;;  %s10277_s16 = inlined_call_operand.hbm [shape: bf16[128,128], index: 16, kind: input, shape index: {}]   ;;  %s10278_s17 = inlined_call_operand.vmem [shape: f32[1,128], index: 17, kind: input, shape index: {}]   ;;  %s10279_s18 = inlined_call_operand.hbm [shape: f32[64,128], index: 18, kind: output, shape index: {}]  }
   0x1   :  { %10326 = sst [smem:[#allocation27_spill]] %s10261_s0 }
   0x2   :  { %10327 = sst [smem:[#allocation28_spill]] %s10262_s1 }
   0x3   :  { %10328 = sst [smem:[#allocation29_spill]] %s10263_s2 }
   0x4   :  { %10329 = sst [smem:[#allocation30_spill]] %s10265_s4 }
   0x5   :  { %10330 = sst [smem:[#allocation31_spill]] %s10272_s11 }
   0x6   :  { %10331 = sst [smem:[#allocation32_spill]] %s10273_s12 }
   0x7   :  { %10332 = sst [smem:[#allocation33_spill]] %s10274_s13 }
   0x8   :  { %10333 = sst [smem:[#allocation34_spill]] %s10275_s14 }
   0x9   :  { %10334 = sst [smem:[#allocation35_spill]] %s10276_s15 }
   0xa   :  { %10335 = sst [smem:[#allocation36_spill]] %s10278_s17 }
   0xb   :  { %10336 = sst [smem:[#allocation37_spill]] %s10279_s18 }
   0xc   :  { %23 = vsyncpa [#allocation3], 0 }
   0xd   :  { %25 = vsyncpa [#allocation3 + $0x1], 0 }
   0xe   :  { %26 = vsyncpa [#allocation6], 0 }
   0xf   :  { %27 = vsyncpa [#allocation9], 0 }
  0x10   :  { %28 = vsyncpa [#allocation12], 0 }
  0x11   :  { %29 = vsyncpa [#allocation15], 0 }
  0x12   :  { %30 = vsyncpa [#allocation18], 0 }
  0x13   :  { %31 = vsyncpa [#allocation4], 0 }
  0x14   :  { %33 = vsyncpa [#allocation4 + $0x1], 0  ;;  %s8451_s27 = smov 0   ;;  %s8453_s28 = smov 0  }
  0x15   :  { %s8455_s29 = smov 0   ;;  %s8457_s30 = smov 0  }
  0x16 LB: > { %s8325_s0 = smov [#allocation5]   ;;  %s8472_s1 = sadd.s32 4294967295, %s8323_s30   ;;  %s8323_s30 = sphi %s8457_s30, %s10420_s30   ;;  %s8319_s29 = sphi %s8455_s29, %s10419_s29   ;;  %s8315_s28 = sphi %s8453_s28, %s10418_s28   ;;  %s8311_s27 = sphi %s8451_s27, %s10417_s27  }
  0x17   : > { %s470_s19 = sshll.u32 %s8325_s0, 4  ;;  %p6653_p0 = scmp.ge.s32.totalorder %s8323_s30, 1  ;;  %s8477_s19 = int_to_ptr.vmem [resolvable:$true] %s470_s19 }
  0x18   : > { %p10286_p1 = scmp.eq.s32.totalorder %s8472_s1, 0  ;;  %p458_p2 = scmp.lt.s32.totalorder %s8323_s30, 3 }
  0x19   : > { %s8326_s21 = smov [#allocation8]   ;;  %s8327_s23 = smov [#allocation11]  }
  0x1a   : > { %p8479_p3 = pnand %p6653_p0, %p458_p2  ;;  %s499_s22 = sshll.u32 %s8326_s21, 4  ;;  %s8492_s22 = int_to_ptr.vmem [resolvable:$true] %s499_s22 }
  0x1b   : > { %s525_s24 = sshll.u32 %s8327_s23, 4  ;;  %s10339_s0 = sld [smem:[#allocation29_spill]]  ;;  %s8494_s24 = int_to_ptr.vmem [resolvable:$true] %s525_s24 }
  0x1c   : > { %s10337_s20 = scalar_select %p8479_p3, 1, 0 }
  0x1d   : > { %p7614_p5 = pneg %p8479_p3 }
  0x1f   : > { %p8488_p6 = pnand %p7614_p5, %p10286_p1 }
  0x21   : > { %s7955_s18 = scalar_lea.hbm %s10339_s0, 32  ;;  %p8504_p8 = pneg %p8488_p6 }
  0x22   : > { %p7956_p7 = scmp.ne.s32.totalorder %s10339_s0, %s7955_s18  ;;  %p7962_p11 = scmp.lt.u32.totalorder %s7955_s18, %s10339_s0 }
  0x24   : > { %p7958_p9 = pnand %p8504_p8, %p7956_p7 }
  0x26   : > { %p7959_p10 = pneg %p7958_p9 }
  0x28   : > { %p7964_p12 = pnand %p7962_p11, %p7959_p10 }
  0x2a   : > { %7967 = shalt.err (!%p7964_p12)
}
  0x2b   : > { %s7968_s15 = scalar_lea.vmem %s8477_s19, 32  ;;  %p7976_p5 = scmp.lt.s32.totalorder %s8477_s19, %s8477_s19 }
  0x2c   : > { %p7969_p13 = scmp.ne.s32.totalorder %s8477_s19, %s7968_s15  ;;  %p7977_p4 = scmp.lt.s32.totalorder %s7968_s15, %s7968_s15 }
  0x2e   : > { %p7971_p0 = pnand %p7969_p13, %p8504_p8  ;;  %p7978_p7 = por %p7977_p4, %p7976_p5 }
  0x30   : > { %p7972_p2 = pneg %p7971_p0 }
  0x32   : > { %p7979_p9 = pnand %p7978_p7, %p7972_p2 }
  0x34   : > { %7982 = shalt.err (!%p7979_p9)
}
  0x35   : > { %s8328_s17 = smov 16   ;;  %s8329_s14 = smov 1  }
  0x36   : > { %7617 = dma.hbm_to_vmem [thread:$0]  (!%p8488_p6), %s10339_s0, 32, %s8477_s19, [#allocation6], %s8328_s17, %s8328_s17, %s8329_s14  }
  0x37   : > { %s7983_s15 = scalar_lea.hbm %s10266_s5, 32 }
  0x38   : > { %p7984_p4 = scmp.ne.s32.totalorder %s10266_s5, %s7983_s15  ;;  %p7990_p12 = scmp.lt.u32.totalorder %s7983_s15, %s10266_s5 }
  0x3a   : > { %p7986_p10 = pnand %p7984_p4, %p8504_p8 }
  0x3c   : > { %p7987_p11 = pneg %p7986_p10 }
  0x3e   : > { %p7992_p13 = pnand %p7990_p12, %p7987_p11 }
  0x40   : > { %7995 = shalt.err (!%p7992_p13)
}
  0x41   : > { %s7996_s19 = scalar_lea.vmem %s8492_s22, 32  ;;  %p8004_p7 = scmp.lt.s32.totalorder %s8492_s22, %s8492_s22 }
  0x42   : > { %p7997_p0 = scmp.ne.s32.totalorder %s8492_s22, %s7996_s19  ;;  %p8005_p9 = scmp.lt.s32.totalorder %s7996_s19, %s7996_s19 }
  0x44   : > { %p7999_p2 = pnand %p7997_p0, %p8504_p8  ;;  %p8006_p4 = por %p8005_p9, %p8004_p7 }
  0x46   : > { %p8000_p5 = pneg %p7999_p2 }
  0x48   : > { %p8007_p10 = pnand %p8006_p4, %p8000_p5 }
  0x4a   : > { %8010 = shalt.err (!%p8007_p10)
}
  0x4b   : > { %7623 = dma.hbm_to_vmem [thread:$0]  (!%p8488_p6), %s10266_s5, 32, %s8492_s22, [#allocation9], %s8328_s17, %s8328_s17, %s8329_s14  }
  0x4c   : > { %s8011_s18 = scalar_lea.hbm %s10268_s7, 32 }
  0x4d   : > { %p8012_p11 = scmp.ne.s32.totalorder %s10268_s7, %s8011_s18  ;;  %p8018_p0 = scmp.lt.u32.totalorder %s8011_s18, %s10268_s7 }
  0x4f   : > { %p8014_p12 = pnand %p8012_p11, %p8504_p8 }
  0x51   : > { %p8015_p13 = pneg %p8014_p12 }
  0x53   : > { %p8020_p2 = pnand %p8018_p0, %p8015_p13 }
  0x55   : > { %8023 = shalt.err (!%p8020_p2)
}
  0x56   : > { %s8024_s22 = scalar_lea.vmem %s8494_s24, 32  ;;  %p8032_p4 = scmp.lt.s32.totalorder %s8494_s24, %s8494_s24 }
  0x57   : > { %p8025_p5 = scmp.ne.s32.totalorder %s8494_s24, %s8024_s22  ;;  %p8033_p10 = scmp.lt.s32.totalorder %s8024_s22, %s8024_s22 }
  0x59   : > { %p8027_p7 = pnand %p8025_p5, %p8504_p8  ;;  %p8034_p11 = por %p8033_p10, %p8032_p4 }
  0x5b   : > { %p8028_p9 = pneg %p8027_p7 }
  0x5d   : > { %p8035_p12 = pnand %p8034_p11, %p8028_p9 }
  0x5f   : > { %8038 = shalt.err (!%p8035_p12)
}
  0x60   : > { %7629 = dma.hbm_to_vmem [thread:$0]  (!%p8488_p6), %s10268_s7, 32, %s8494_s24, [#allocation12], %s8328_s17, %s8328_s17, %s8329_s14  }
  0x61   : > { %s8330_s11 = smov [#allocation14]   ;;  %s8331_s13 = smov [#allocation7]  }
  0x62   : > { %s550_s12 = sshll.u32 %s8330_s11, 4  ;;  %s483_s18 = sshll.u32 %s8331_s13, 4  ;;  %s551_s12 = int_to_ptr.vmem [resolvable:$true] %s550_s12  ;;  %s484_s18 = int_to_ptr.vmem [resolvable:$true] %s483_s18 }
  0x63   : > { %s8039_s23 = scalar_lea.hbm %s10270_s9, 16 }
  0x64   : > { %p8040_p13 = scmp.ne.s32.totalorder %s10270_s9, %s8039_s23  ;;  %p8046_p5 = scmp.lt.u32.totalorder %s8039_s23, %s10270_s9 }
  0x66   : > { %p8042_p0 = pnand %p8040_p13, %p8504_p8 }
  0x68   : > { %p8043_p2 = pneg %p8042_p0 }
  0x6a   : > { %p8048_p7 = pnand %p8046_p5, %p8043_p2 }
  0x6c   : > { %8051 = shalt.err (!%p8048_p7)
}
  0x6d   : > { %s8052_s24 = scalar_lea.vmem %s551_s12, 16  ;;  %s8059_s4 = scalar_lea.vmem %s551_s12, 32 }
  0x6e   : > { %p8053_p9 = scmp.ne.s32.totalorder %s551_s12, %s8052_s24  ;;  %p8060_p11 = scmp.lt.s32.totalorder %s551_s12, %s551_s12 }
  0x6f   : > { %p8061_p12 = scmp.lt.s32.totalorder %s8059_s4, %s8052_s24 }
  0x70   : > { %p8055_p4 = pnand %p8053_p9, %p8504_p8 }
  0x71   : > { %p8062_p1 = por %p8061_p12, %p8060_p11 }
  0x72   : > { %p8056_p10 = pneg %p8055_p4 }
  0x74   : > { %p8063_p3 = pnand %p8062_p1, %p8056_p10 }
  0x76   : > { %8066 = shalt.err (!%p8063_p3)
}
  0x77   : > { %7635 = dma.hbm_to_vmem [thread:$0]  (!%p8488_p6), %s10270_s9, 16, %s551_s12, [#allocation15]  }
  0x78   : > { %s8067_s26 = scalar_lea.hbm %s10264_s3, 32 }
  0x79   : > { %p8068_p13 = scmp.ne.s32.totalorder %s10264_s3, %s8067_s26  ;;  %p8074_p3 = scmp.lt.u32.totalorder %s8067_s26, %s10264_s3 }
  0x7b   : > { %p8070_p0 = pnand %p8068_p13, %p8504_p8 }
  0x7d   : > { %p8071_p1 = pneg %p8070_p0 }
  0x7f   : > { %p8076_p2 = pnand %p8074_p3, %p8071_p1 }
  0x81   : > { %8079 = shalt.err (!%p8076_p2)
}
  0x82   : > { %s8080_s24 = scalar_lea.vmem %s484_s18, 32  ;;  %p8088_p4 = scmp.lt.s32.totalorder %s484_s18, %s484_s18 }
  0x83   : > { %p8081_p5 = scmp.ne.s32.totalorder %s484_s18, %s8080_s24  ;;  %p8089_p10 = scmp.lt.s32.totalorder %s8080_s24, %s8080_s24 }
  0x85   : > { %p8083_p7 = pnand %p8081_p5, %p8504_p8  ;;  %p8090_p11 = por %p8089_p10, %p8088_p4 }
  0x87   : > { %p8084_p9 = pneg %p8083_p7 }
  0x89   : > { %p8091_p12 = pnand %p8090_p11, %p8084_p9 }
  0x8b   : > { %8094 = shalt.err (!%p8091_p12)
}
  0x8c   : > { %7620 = dma.hbm_to_vmem [thread:$0]  (!%p8488_p6), %s10264_s3, 32, %s484_s18, [#allocation6], %s8328_s17, %s8328_s17, %s8329_s14  }
  0x8d   : > { %s8332_s11 = smov [#allocation10]   ;;  %s8095_s26 = scalar_lea.hbm %s10267_s6, 2048 }
  0x8e   : > { %s512_s13 = sshll.u32 %s8332_s11, 4  ;;  %p8096_p13 = scmp.ne.s32.totalorder %s10267_s6, %s8095_s26  ;;  %s513_s13 = int_to_ptr.vmem [resolvable:$true] %s512_s13 }
  0x8f   : > { %p8102_p3 = scmp.lt.u32.totalorder %s8095_s26, %s10267_s6 }
  0x90   : > { %p8098_p0 = pnand %p8096_p13, %p8504_p8 }
  0x92   : > { %p8099_p1 = pneg %p8098_p0 }
  0x94   : > { %p8104_p2 = pnand %p8102_p3, %p8099_p1 }
  0x96   : > { %8107 = shalt.err (!%p8104_p2)
}
  0x97   : > { %s8108_s17 = scalar_lea.vmem %s513_s13, 2048  ;;  %p8116_p4 = scmp.lt.s32.totalorder %s513_s13, %s513_s13 }
  0x98   : > { %p8109_p5 = scmp.ne.s32.totalorder %s513_s13, %s8108_s17  ;;  %p8117_p10 = scmp.lt.s32.totalorder %s8108_s17, %s8108_s17 }
  0x9a   : > { %p8111_p7 = pnand %p8109_p5, %p8504_p8  ;;  %p8118_p11 = por %p8117_p10, %p8116_p4 }
  0x9c   : > { %p8112_p9 = pneg %p8111_p7 }
  0x9e   : > { %p8119_p12 = pnand %p8118_p11, %p8112_p9 }
  0xa0   : > { %8122 = shalt.err (!%p8119_p12)
}
  0xa1   : > { %s10288_s14 = smov 64   ;;  %s8334_s18 = smov 4  }
  0xa2   : > { %7626 = dma.hbm_to_vmem [thread:$0]  (!%p8488_p6), %s10267_s6, 2048, %s513_s13, [#allocation9], %s10288_s14, %s10288_s14, %s8334_s18  }
  0xa3   : > { %s8335_s4 = smov [#allocation13]   ;;  %s8336_s0 = smov [#allocation16]  }
  0xa4   : > { %s539_s11 = sshll.u32 %s8335_s4, 4  ;;  %s560_s25 = sshll.u32 %s8336_s0, 4  ;;  %s540_s11 = int_to_ptr.vmem [resolvable:$true] %s539_s11  ;;  %s8640_s25 = int_to_ptr.vmem [resolvable:$true] %s560_s25 }
  0xa5   : > { %s8123_s15 = scalar_lea.hbm %s10269_s8, 16 }
  0xa6   : > { %p8124_p13 = scmp.ne.s32.totalorder %s10269_s8, %s8123_s15  ;;  %p8130_p3 = scmp.lt.u32.totalorder %s8123_s15, %s10269_s8 }
  0xa8   : > { %p8126_p0 = pnand %p8124_p13, %p8504_p8 }
  0xaa   : > { %p8127_p1 = pneg %p8126_p0 }
  0xac   : > { %p8132_p2 = pnand %p8130_p3, %p8127_p1 }
  0xae   : > { %8135 = shalt.err (!%p8132_p2)
}
  0xaf   : > { %s8136_s24 = scalar_lea.vmem %s540_s11, 16  ;;  %s8143_s12 = scalar_lea.vmem %s540_s11, 32 }
  0xb0   : > { %p8137_p5 = scmp.ne.s32.totalorder %s540_s11, %s8136_s24  ;;  %p8144_p4 = scmp.lt.s32.totalorder %s540_s11, %s540_s11 }
  0xb1   : > { %p8145_p10 = scmp.lt.s32.totalorder %s8143_s12, %s8136_s24 }
  0xb2   : > { %p8139_p7 = pnand %p8137_p5, %p8504_p8 }
  0xb3   : > { %p8146_p11 = por %p8145_p10, %p8144_p4 }
  0xb4   : > { %p8140_p9 = pneg %p8139_p7 }
  0xb6   : > { %p8147_p12 = pnand %p8146_p11, %p8140_p9 }
  0xb8   : > { %8150 = shalt.err (!%p8147_p12)
}
  0xb9   : > { %7632 = dma.hbm_to_vmem [thread:$0]  (!%p8488_p6), %s10269_s8, 16, %s540_s11, [#allocation12]  }
  0xba   : > { %s8151_s15 = scalar_lea.hbm %s10271_s10, 3072 }
  0xbb   : > { %p8152_p13 = scmp.ne.s32.totalorder %s10271_s10, %s8151_s15  ;;  %p8158_p3 = scmp.lt.u32.totalorder %s8151_s15, %s10271_s10 }
  0xbd   : > { %p8154_p0 = pnand %p8152_p13, %p8504_p8 }
  0xbf   : > { %p8155_p1 = pneg %p8154_p0 }
  0xc1   : > { %p8160_p2 = pnand %p8158_p3, %p8155_p1 }
  0xc3   : > { %8163 = shalt.err (!%p8160_p2)
}
  0xc4   : > { %s8164_s11 = scalar_lea.vmem %s8640_s25, 3072  ;;  %p8172_p4 = scmp.lt.s32.totalorder %s8640_s25, %s8640_s25 }
  0xc5   : > { %p8165_p5 = scmp.ne.s32.totalorder %s8640_s25, %s8164_s11  ;;  %p8173_p10 = scmp.lt.s32.totalorder %s8164_s11, %s8164_s11 }
  0xc7   : > { %p8167_p7 = pnand %p8165_p5, %p8504_p8  ;;  %p8174_p11 = por %p8173_p10, %p8172_p4 }
  0xc9   : > { %p8168_p9 = pneg %p8167_p7 }
  0xcb   : > { %p8175_p12 = pnand %p8174_p11, %p8168_p9 }
  0xcd   : > { %8178 = shalt.err (!%p8175_p12)
}
  0xce   : > { %s8337_s24 = smov 192   ;;  %s8338_s12 = smov 12  }
  0xcf   : > { %7638 = dma.hbm_to_vmem [thread:$0]  (!%p8488_p6), %s10271_s10, 3072, %s8640_s25, [#allocation15], %s8337_s24, %s8337_s24, %s8338_s12  }
  0xd0   : > { %s8339_s26 = smov [#allocation17]   ;;  %s8179_s19 = scalar_lea.hbm %s10277_s16, 1024 }
  0xd1   : > { %s588_s23 = sshll.u32 %s8339_s26, 4  ;;  %p8180_p13 = scmp.ne.s32.totalorder %s10277_s16, %s8179_s19  ;;  %s589_s23 = int_to_ptr.vmem [resolvable:$true] %s588_s23 }
  0xd2   : > { %p8186_p3 = scmp.lt.u32.totalorder %s8179_s19, %s10277_s16 }
  0xd3   : > { %p8182_p0 = pnand %p8180_p13, %p8504_p8 }
  0xd5   : > { %p8183_p1 = pneg %p8182_p0 }
  0xd7   : > { %p8188_p2 = pnand %p8186_p3, %p8183_p1 }
  0xd9   : > { %8191 = shalt.err (!%p8188_p2)
}
  0xda   : > { %s8192_s25 = scalar_lea.vmem %s589_s23, 1024  ;;  %p8200_p4 = scmp.lt.s32.totalorder %s589_s23, %s589_s23 }
  0xdb   : > { %p8193_p5 = scmp.ne.s32.totalorder %s589_s23, %s8192_s25  ;;  %p8201_p10 = scmp.lt.s32.totalorder %s8192_s25, %s8192_s25 }
  0xdd   : > { %p8195_p7 = pnand %p8193_p5, %p8504_p8  ;;  %p8202_p11 = por %p8201_p10, %p8200_p4 }
  0xdf   : > { %p8196_p9 = pneg %p8195_p7 }
  0xe1   : > { %p8203_p12 = pnand %p8202_p11, %p8196_p9 }
  0xe3   : > { %8206 = shalt.err (!%p8203_p12)
}
  0xe4   : > { %s10341_s24 = smov 64   ;;  %s6652_s2 = sadd.s32 4294967294, %s8323_s30  }
  0xe5   : > { %7641 = dma.hbm_to_vmem [thread:$0]  (!%p8488_p6), %s10277_s16, 1024, %s589_s23, [#allocation18], %s10341_s24, %s10341_s24, %s8334_s18  }
  0xe6   : > { %s8706_s21 = sadd.s32 1, %s8323_s30   ;;  %s46_s4 = sadd.s32 1, %s8319_s29 }
  0xe7   : > { %s43_s0 = ssub.s32 %s8323_s30, %s8706_s21  ;;  %p53_p8 = scmp.ne.s32.totalorder %s8319_s29, %s8315_s28 }
  0xe8   : > { %p44_p13 = scmp.eq.s32.totalorder %s43_s0, 0  ;;  %p54_p0 = scmp.eq.s32.totalorder %s8323_s30, 0 }
  0xe9   : > { %p59_p1 = scmp.ne.s32.totalorder %s8315_s28, %s8311_s27  ;;  %p445_p3 = scmp.eq.s32.totalorder %s8472_s1, 1 }
  0xea   : > { %s8718_s26 = scalar_select %p44_p13, %s8319_s29, %s46_s4  }
  0xeb   : > { %p55_p2 = por %p54_p0, %p53_p8  ;;  %p10342_p5 = scmp.eq.s32.totalorder %s8472_s1, 0 }
  0xec   : > { %p8726_p6 = por %p445_p3, %p53_p8  ;;  %p451_p9 = scmp.eq.s32.totalorder %s6652_s2, 1 }
  0xed   : > { %p8722_p7 = por %p10342_p5, %p59_p1  ;;  %p7659_p4 = scmp.lt.s32.totalorder %s8323_s30, 2 }
  0xee   : > { %s10344_s18 = scalar_select %p8726_p6, 1, 0 }
  0xef   : > { %s605_s23 = sand.u32 1, %s8319_s29   ;;  %p8732_p10 = por %p451_p9, %p59_p1 }
  0xf0   : > { %s6664_s19 = sshll.u32 %s605_s23, 5  ;;  %s6840_s17 = sshll.u32 %s8323_s30, 9 }
  0xf1   : > { %s10345_s22 = scalar_select %p8732_p10, 1, 0 }
  0xf2   : > { %s10346_s25 = sld [smem:[#allocation27_spill]]  ;;  %s609_s14 = scalar_lea.vmem [#allocation2], %s6664_s19 }
  0xf3   : > { %s616_s12 = sshll.u32 %s609_s14, 4  ;;  %p8742_p11 = pnand %p7659_p4, %p55_p2  ;;  %s8746_s12 = int_to_ptr.vmem [resolvable:$true] %s616_s12 }
  0xf4   : > { %s8748_s4 = scalar_lea.sflag [#allocation3], %s605_s23 }
  0xf5   : > { %p8209_p8 = pneg %p8742_p11 }
  0xf8   : > { %s8740_s24 = scalar_lea.hbm %s10346_s25, %s6840_s17  ;;  %s8212_s13 = scalar_lea.hbm %s10346_s25, 1024 }
  0xf9   : > { %s8207_s0 = scalar_lea.hbm %s8740_s24, 512  ;;  %p8213_p1 = scmp.lt.u32.totalorder %s8740_s24, %s10346_s25 }
  0xfa   : > { %p8208_p12 = scmp.ne.s32.totalorder %s8740_s24, %s8207_s0  ;;  %p8214_p3 = scmp.lt.u32.totalorder %s8212_s13, %s8207_s0 }
  0xfb   : > { %p8216_p5 = scmp.lt.u32.totalorder %s8207_s0, %s8740_s24 }
  0xfc   : > { %p8210_p13 = pnand %p8209_p8, %p8208_p12  ;;  %p8215_p2 = por %p8214_p3, %p8213_p1 }
  0xfe   : > { %p8211_p0 = pneg %p8210_p13  ;;  %p8217_p9 = por %p8216_p5, %p8215_p2 }
 0x100   : > { %p8218_p4 = pnand %p8217_p9, %p8211_p0 }
 0x102   : > { %8221 = shalt.err (!%p8218_p4)
}
 0x103   : > { %s8222_s23 = scalar_lea.vmem %s8746_s12, 512  ;;  %s8340_s19 = smov [#allocation2]  }
 0x104   : > { %p8223_p12 = scmp.ne.s32.totalorder %s8746_s12, %s8222_s23  ;;  %s8227_s17 = sshll.u32 %s8340_s19, 4  ;;  %s8228_s17 = int_to_ptr.vmem [resolvable:$false] %s8227_s17 }
 0x105   : > { %s8229_s11 = scalar_lea.vmem %s8228_s17, 1024  ;;  %p8230_p6 = scmp.lt.s32.totalorder %s8746_s12, %s8228_s17 }
 0x106   : > { %p8225_p13 = pnand %p8223_p12, %p8209_p8  ;;  %p8231_p1 = scmp.lt.s32.totalorder %s8229_s11, %s8222_s23 }
 0x108   : > { %p8226_p10 = pneg %p8225_p13  ;;  %p8232_p3 = por %p8231_p1, %p8230_p6 }
 0x10a   : > { %p8233_p2 = pnand %p8232_p3, %p8226_p10 }
 0x10c   : > { %8236 = shalt.err (!%p8233_p2)
}
 0x10d   : > { %s8341_s0 = smov 128   ;;  %s8342_s13 = smov 8  }
 0x10e   : > { %7645 = dma.hbm_to_vmem [thread:$0]  (!%p8742_p11), %s8740_s24, 512, %s8746_s12, %s8748_s4, %s8341_s0, %s8341_s0, %s8342_s13  }
 0x10f   : > { %p10348_p8 = scmp.ne.s32.totalorder %s10337_s20, 0 }
 0x110   : > { %s8779_s14 = sand.u32 (!%p10348_p8), 1, %s8315_s28  }
 0x111   : > { %636 = sbr.rel (%p10348_p8) target bundleno = 8723 (0x2213), region = 92  ;;  %s6668_s23 = sshll.u32 (!%p10348_p8), %s8779_s14, 5 }
 0x112   : > { %s639_s19 = scalar_lea.sflag (!%p10348_p8), [#allocation3], %s8779_s14  ;;  %s642_s17 = scalar_lea.vmem (!%p10348_p8), [#allocation2], %s6668_s23 }
 0x118   : > { %8282 = dma.done.wait (%p8722_p7), %s639_s19, 512  }
 0x119   : > { %8284 = vsyncadd (%p8722_p7), %s639_s19, 4294966784  ;;  %p10349_p6 = scmp.eq.s32.totalorder %s8472_s1, 0 }
 0x11b   : > { %8286 = dma.done.wait (%p10349_p6), [#allocation6], 64   ;;  %p10350_p10 = pmov %p10349_p6 }
 0x11c   : > { %p10351_p11 = pmov %p10349_p6 }
 0x11d   : > { %8288 = vsyncadd (%p10350_p10), [#allocation6], 4294967232 }
 0x11e   : > { %8290 = dma.done.wait (%p10351_p11), [#allocation9], 2080   ;;  %p10352_p0 = pmov %p10349_p6 }
 0x120   : > { %8292 = vsyncadd (%p10352_p0), [#allocation9], 4294965216  ;;  %p10353_p5 = pmov %p10352_p0 }
 0x121   : > { %p10354_p9 = pmov %p10352_p0 }
 0x122   : > { %8294 = dma.done.wait (%p10353_p5), [#allocation12], 48  }
 0x123   : > { %8296 = vsyncadd (%p10354_p9), [#allocation12], 4294967248  ;;  %p10355_p7 = pmov %p10352_p0 }
 0x124   : > { %p10356_p4 = pmov %p10352_p0 }
 0x125   : > { %8298 = dma.done.wait (%p10355_p7), [#allocation15], 3088  }
 0x126   : > { %8300 = vsyncadd (%p10356_p4), [#allocation15], 4294964208  ;;  %p10357_p12 = pmov %p10352_p0 }
 0x127   : > { %p10358_p13 = pmov %p10352_p0 }
 0x128   : > { %8302 = dma.done.wait (%p10357_p12), [#allocation18], 1024  }
 0x129   : > { %8304 = vsyncadd (%p10358_p13), [#allocation18], 4294966272  ;;  %s6679_s20 = sshll.u32 %s8472_s1, 2  ;;  %s10359_s12 = sld [smem:[#allocation28_spill]]  ;;  %v743_v0 = vld [vmem:[%s642_s17] sm:$0xff]  ;;  %v746_v2 = vld [vmem:[%s642_s17 + $0x18] sm:$0xff]  ;;  %v779_v36 = vlaneseq }
 0x12a   : > { %p737_p1 = scmp.lt.s32.totalorder %s6679_s20, 7  ;;  %v744_v5 = vld [vmem:[%s642_s17 + $0x8] sm:$0xff]  ;;  %v745_v8 = vld [vmem:[%s642_s17 + $0x10] sm:$0xff]  ;;  %v7734_v31 = vld [vmem:[#allocation10 + $0x18] sm:$0xff]   ;;  %s10360_s0 = sld [smem:[#allocation30_spill]] }
 0x12b   : > { %v7731_v28 = vld [vmem:[#allocation10] sm:$0xff]   ;;  %v7732_v29 = vld [vmem:[#allocation10 + $0x8] sm:$0xff]   ;;  %v7733_v30 = vld [vmem:[#allocation10 + $0x10] sm:$0xff]   ;;  %v8845_v40 = vshrl.u32 %v779_v36, 7  ;;  %s10407_s15 = sld [smem:[#allocation31_spill]]  ;;  %s8346_s24 = smov 112  }
 0x12c   : > { %s10422_s20 = smov (!%p737_p1, %s6679_s20), 7  ;;  %7034 = vmatprep.subr.bf16.mxu0 %v7731_v28  ;;  %v7735_v32 = vld [vmem:[#allocation10 + $0x20] sm:$0xff]   ;;  %v7736_v33 = vld [vmem:[#allocation10 + $0x28] sm:$0xff]   ;;  %v7737_v34 = vld [vmem:[#allocation10 + $0x30] sm:$0xff]   ;;  %s10408_s11 = sld [smem:[#allocation32_spill]] }
 0x12d   : > { %7035 = vmatpush3.bf16.msra.mxu0 %v7731_v28  ;;  %v7738_v35 = vld [vmem:[#allocation10 + $0x38] sm:$0xff]   ;;  %v781_v45 = vadd.s32 8, %v8845_v40  ;;  %v10293_v48 = vsub.s32 3, %v8845_v40  ;;  %v8853_v51 = vsub.s32 0, %v8845_v40  ;;  %v8856_v52 = vsub.s32 1, %v8845_v40  ;;  %s8348_s17 = smov 80  }
 0x12e   : > { %7036 = vmatprep.subr.bf16.mxu0 %v7732_v29  ;;  %v788_v54 = vand.u32 7, %v8845_v40  ;;  %v783_v58 = vadd.s32 24, %v8845_v40  ;;  %v8871_v61 = vsub.s32 2, %v8845_v40  ;;  %v782_v62 = vadd.s32 16, %v8845_v40  ;;  %s8350_s4 = smov 48   ;;  %s10411_s13 = sld [smem:[#allocation35_spill]] }
 0x12f   : > { %s739_s2 = scalar_lea.vmem %s10359_s12, %s10422_s20  ;;  %v795_v55 = vand.u32 7, %v781_v45  ;;  %vm1012_vm0 = vcmp.lt.s32.totalorder %v8845_v40, 3  ;;  %vm1045_vm1 = vcmp.lt.s32.totalorder %v8845_v40, 2  ;;  %vm1078_vm2 = vcmp.lt.s32.totalorder %v8845_v40, 1  ;;  %s8347_s12 = smov 96  }
 0x130   : > { %v6680_v1 = vld [vmem:[%s739_s2] ss:$0 sm:$0xff]  ;;  %v6683_v4 = vld [vmem:[%s739_s2 + $0x3] ss:$0 sm:$0xff]  ;;  %v6681_v6 = vld [vmem:[%s739_s2 + $0x1] ss:$0 sm:$0xff] }
 0x131   : > { %v8813_v3 = vadd.f32 %v6680_v1, %v743_v0  ;;  %v8815_v7 = vadd.f32 %v6683_v4, %v746_v2  ;;  %v6682_v9 = vld [vmem:[%s739_s2 + $0x2] ss:$0 sm:$0xff]  ;;  %v8818_v10 = vadd.f32 %v6681_v6, %v744_v5  ;;  %7037 = vmatpush3.bf16.msra.mxu0 %v7732_v29  ;;  %v8874_v63 = vadd.s32 4294967293, %v788_v54  ;;  %s10409_s20 = sld [smem:[#allocation33_spill]]  ;;  %p10414_p2 = scmp.ne.s32.totalorder %s10344_s18, 0 }
 0x132   : > { %v8821_v11 = vadd.f32 %v6682_v9, %v745_v8  ;;  %7038 = vmatprep.subr.bf16.mxu0 %v7733_v30  ;;  %v1007_v50 = vld [vmem:[%s10360_s0] sm:$0x7f]  ;;  %v8876_v0 = vadd.s32 4294967293, %v795_v55  ;;  %v8878_v1 = vadd.s32 4294967294, %v788_v54  ;;  %v8880_v2 = vadd.s32 4294967294, %v795_v55 }
 0x133   : > { %942 = vadd.xlane.f32.xlu0 %v8813_v3  ;;  %948 = vadd.xlane.f32.xlu1 %v8815_v7  ;;  %v8861_v57 = vrot.slane %v1007_v50, %v10293_v48  ;;  %v8865_v59 = vrot.slane %v1007_v50, %v8853_v51  ;;  %v8868_v60 = vrot.slane %v1007_v50, %v8856_v52  ;;  %v8882_v4 = vadd.s32 4294967295, %v788_v54  ;;  %v6684_v9 = vld [vmem:[#allocation5] ss:$0 sm:$0xff] }
 0x134   : > { %v10292_v5 = vsub.s32 4, %v8845_v40  ;;  %v10291_v6 = vsub.s32 5, %v8845_v40  ;;  %vm10306_vm3 = vcmp.ge.s32.totalorder %v8876_v0, 0  ;;  %vm10305_vm4 = vcmp.ge.s32.totalorder %v8880_v2, 0 }
 0x135   : > { %7039 = vmatpush3.bf16.msra.mxu0 %v7733_v30  ;;  %vm10301_vm5 = vcmp.ge.s32.totalorder %v8874_v63, 0  ;;  %vm10300_vm6 = vcmp.ge.s32.totalorder %v8878_v1, 0  ;;  %vm10302_vm8 = vcmp.ge.s32.totalorder %v8882_v4, 0  ;;  %vm1135_vm9 = vcmp.lt.s32.totalorder %v8845_v40, 7 }
 0x136   : > { %7040 = vmatprep.subr.bf16.mxu0 %v7734_v31  ;;  %v8910_v29 = vrot.slane %v1007_v50, %v10292_v5  ;;  %v8914_v30 = vrot.slane %v1007_v50, %v10291_v6  ;;  %vm10307_vm11 = vcmp.lt.s32.totalorder %v8845_v40, 6  ;;  %vm1201_vm13 = vcmp.lt.s32.totalorder %v8845_v40, 5 }
 0x137   : > { %944 = vadd.xlane.f32.xlu0 %v8818_v10  ;;  %946 = vadd.xlane.f32.xlu1 %v8821_v11 }
 0x139   : > { %7041 = vmatpush3.bf16.msra.mxu0 %v7734_v31 }
 0x13a   : > { %7042 = vmatprep.subr.bf16.mxu0 %v7735_v32 }
 0x13d   : > { %7043 = vmatpush3.bf16.msra.mxu0 %v7735_v32 }
 0x13e   : > { %7044 = vmatprep.subr.bf16.mxu0 %v7736_v33 }
 0x141   : > { %7045 = vmatpush3.bf16.msra.mxu0 %v7736_v33 }
 0x142   : > { %7046 = vmatprep.subr.bf16.mxu0 %v7737_v34 }
 0x145   : > { %7047 = vmatpush3.bf16.msra.mxu0 %v7737_v34 }
 0x146   : > { %7048 = vmatprep.subr.bf16.mxu0 %v7738_v35 }
 0x149   : > { %7049 = vmatpush3.bf16.msra.mxu0 %v7738_v35 }
 0x1c0   : > { %v943_v12 = vpop.xlane.xlu0 %942  ;;  %v949_v14 = vpop.xlane.xlu1 %948 }
 0x1c1   : > { %v951_v13 = vmul.f32 0.0078125, %v943_v12  ;;  %v954_v15 = vmul.f32 0.0078125, %v949_v14  ;;  %v8886_v12 = vadd.s32 4294967295, %v795_v55  ;;  %v10290_v14 = vsub.s32 6, %v8845_v40 }
 0x1c3   : > { %v8826_v16 = vsub.f32 %v8813_v3, %v951_v13  ;;  %v8829_v18 = vsub.f32 %v8815_v7, %v954_v15  ;;  %v8888_v13 = vadd.s32 1, %v788_v54  ;;  %v809_v15 = vand.u32 7, %v783_v58 }
 0x1c4   : > { %v945_v17 = vpop.xlane.xlu0 %944  ;;  %v947_v21 = vpop.xlane.xlu1 %946  ;;  %v8918_v32 = vrot.slane %v1007_v50, %v10290_v14  ;;  %vm10303_vm7 = vcmp.ge.s32.totalorder %v8886_v12, 0 }
 0x1c5   : > { %v952_v19 = vmul.f32 0.0078125, %v945_v17  ;;  %v959_v20 = vmul.f32 %v8826_v16, %v8826_v16  ;;  %v953_v22 = vmul.f32 0.0078125, %v947_v21  ;;  %v962_v23 = vmul.f32 %v8829_v18, %v8829_v18 }
 0x1c6   : > { %v802_v21 = vand.u32 7, %v782_v62  ;;  %v8920_v33 = vadd.s32 1, %v809_v15  ;;  %v8922_v34 = vadd.s32 2, %v809_v15  ;;  %v8924_v35 = vadd.s32 3, %v809_v15 }
 0x1c7   : > { %963 = vadd.xlane.f32.xlu0 %v959_v20  ;;  %v8836_v24 = vsub.f32 %v8818_v10, %v952_v19  ;;  %v8839_v25 = vsub.f32 %v8821_v11, %v953_v22  ;;  %v8892_v19 = vadd.s32 1, %v795_v55  ;;  %v8894_v20 = vadd.s32 2, %v788_v54  ;;  %v6685_v22 = vld [vmem:[#allocation7] ss:$0 sm:$0xff] }
 0x1c8   : > { %vm10304_vm10 = vcmp.lt.s32.totalorder %v8888_v13, 8 }
 0x1c9   : > { %v960_v26 = vmul.f32 %v8836_v24, %v8836_v24  ;;  %v961_v27 = vmul.f32 %v8839_v25, %v8839_v25  ;;  %vm916_vm15 = vcmp.lt.s32.totalorder %v8894_v20, 8 }
 0x1cb   : > { %969 = vadd.xlane.f32.xlu0 %v962_v23  ;;  %965 = vadd.xlane.f32.xlu1 %v960_v26  ;;  %v8896_v23 = vadd.s32 2, %v795_v55  ;;  %v8898_v26 = vadd.s32 3, %v788_v54 }
 0x1cd   : > { %vm10315_vm14 = vcmp.lt.s32.totalorder %v8898_v26, 8 }
 0x1cf   : > { %967 = vadd.xlane.f32.xlu1 %v961_v27  ;;  %v8900_v27 = vadd.s32 3, %v795_v55  ;;  %v8955_v55 = vadd.s32 3, %v802_v21 }
 0x1d1   : > { %vm10312_vm12 = vcmp.lt.s32.totalorder %v8900_v27, 8 }
 0x254   : > { %v964_v37 = vpop.xlane.xlu0 %963 }
 0x255   : > { %v971_v38 = vmul.f32 0.0078125, %v964_v37 }
 0x257   : > { %v975_v39 = vadd.f32 1e-05, %v971_v38 }
 0x258   : > { %v966_v41 = vpop.xlane.xlu1 %965  ;;  %v970_v42 = vpop.xlane.xlu0 %969 }
 0x259   : > { %7795 = vrsqrt.f32 %v975_v39  ;;  %v972_v43 = vmul.f32 0.0078125, %v966_v41  ;;  %v974_v44 = vmul.f32 0.0078125, %v970_v42  ;;  %v8931_v39 = vadd.s32 4294967293, %v802_v21 }
 0x25a   : > { %v8933_v41 = vadd.s32 4294967293, %v809_v15 }
 0x25b   : > { %v976_v46 = vadd.f32 1e-05, %v972_v43  ;;  %v978_v47 = vadd.f32 1e-05, %v974_v44  ;;  %v8939_v43 = vadd.s32 4294967294, %v802_v21  ;;  %v8941_v44 = vadd.s32 4294967294, %v809_v15 }
 0x25c   : > { %v968_v49 = vpop.xlane.xlu1 %967 }
 0x25d   : > { %7797 = vrsqrt.f32 %v976_v46  ;;  %v973_v53 = vmul.f32 0.0078125, %v968_v49  ;;  %v8947_v46 = vadd.s32 4294967295, %v809_v15 }
 0x25e   : > { %7799 = vrsqrt.f32 %v978_v47  ;;  %v8951_v47 = vadd.s32 2, %v802_v21 }
 0x25f   : > { %v977_v56 = vadd.f32 1e-05, %v973_v53 }
 0x261   : > { %7801 = vrsqrt.f32 %v977_v56 }
 0x263   : > { %v7796_v8 = vpop.eup %7795 }
 0x264   : > { %v983_v17 = vmul.f32 %v7796_v8, %v8826_v16  ;;  %v8906_v16 = vrot.slane %v1007_v50, %v8871_v61 }
 0x266   : > { %v993_v28 = vmul.f32 %v6684_v9, %v983_v17 }
 0x267   : > { %v7798_v31 = vpop.eup %7797 }
 0x268   : > { %v7800_v36 = vpop.eup %7799  ;;  %v8926_v37 = vadd.f32 %v6685_v22, %v993_v28  ;;  %v984_v38 = vmul.f32 %v7798_v31, %v8836_v24  ;;  %v8943_v24 = vadd.s32 4294967295, %v802_v21 }
 0x269   : > { %v986_v42 = vmul.f32 %v7800_v36, %v8829_v18  ;;  %v8949_v18 = vadd.s32 1, %v802_v21 }
 0x26a   : > { %v994_v45 = vmul.f32 %v6684_v9, %v984_v38  ;;  %v1008_v53 = vrot.slane %v8926_v37, 5  ;;  %v1041_v54 = vrot.slane %v8926_v37, 6  ;;  %v1074_v62 = vrot.slane %v8926_v37, 7 }
 0x26b   : > { %v7802_v49 = vpop.eup %7801  ;;  %v996_v50 = vmul.f32 %v6684_v9, %v986_v42  ;;  %v1111_v8 = vmul.f32 %v8861_v57, %v8926_v37  ;;  %v10313_v17 = vrot.slane %v8926_v37, 1  ;;  %v10309_v28 = vrot.slane %v8926_v37, 2 }
 0x26c   : > { %v8957_v56 = vadd.f32 %v6685_v22, %v994_v45  ;;  %v985_v58 = vmul.f32 %v7802_v49, %v8839_v25  ;;  %v10311_v21 = vrot.slane %v8926_v37, 3 }
 0x26d   : > { %v8963_v15 = vadd.f32 %v6685_v22, %v996_v50 }
 0x26e   : > { %v995_v31 = vmul.f32 %v6684_v9, %v985_v58  ;;  %v10296_v36 = vrot.slane %v8957_v56, 5  ;;  %v10295_v25 = vrot.slane %v8957_v56, 6  ;;  %v10294_v38 = vrot.slane %v8957_v56, 7 }
 0x26f   : > { %v10298_v42 = vrot.slane %v8963_v15, 5  ;;  %v10297_v45 = vrot.slane %v8963_v15, 6  ;;  %v10299_v49 = vrot.slane %v8963_v15, 7  ;;  %v1112_v50 = vmul.f32 %v8861_v57, %v8957_v56 }
 0x270   : > { %v8980_v9 = vadd.f32 %v6685_v22, %v995_v31  ;;  %v1015_v58 = vsel %vm1012_vm0, %v1008_v53, %v10296_v36  ;;  %v1048_v14 = vsel %vm1045_vm1, %v1041_v54, %v10295_v25  ;;  %v1081_v6 = vsel %vm1078_vm2, %v1074_v62, %v10294_v38 }
 0x271   : > { %v1016_v22 = vsel %vm1012_vm0, %v10298_v42, %v1008_v53  ;;  %v1022_v31 = vmul.f32 %v8865_v59, %v1015_v58  ;;  %v1049_v5 = vsel %vm1045_vm1, %v10297_v45, %v1041_v54  ;;  %v1055_v48 = vmul.f32 %v8868_v60, %v1048_v14 }
 0x272   : > { %v1021_v38 = vmul.f32 %v8865_v59, %v1016_v22  ;;  %v1054_v25 = vmul.f32 %v8868_v60, %v1049_v5  ;;  %v1082_v53 = vsel %vm1078_vm2, %v10299_v49, %v1074_v62  ;;  %v1088_v58 = vmul.f32 %v8906_v16, %v1081_v6 }
 0x273   : > { %v1034_v36 = vsel %vm10306_vm3, %v1022_v31, 0.0  ;;  %v1067_v54 = vsel %vm10305_vm4, %v1055_v48, 0.0  ;;  %v1087_v14 = vmul.f32 %v8906_v16, %v1082_v53  ;;  %v1132_v45 = vrot.slane %v8957_v56, 1 }
 0x274   : > { %v1033_v5 = vsel %vm10301_vm5, %v1021_v38, 0.0  ;;  %v1066_v22 = vsel %vm10300_vm6, %v1054_v25, 0.0  ;;  %v1071_v42 = vadd.f32 %v1067_v54, %v1034_v36  ;;  %v1100_v6 = vsel %vm10303_vm7, %v1088_v58, 0.0 }
 0x275   : > { %v1070_v62 = vadd.f32 %v1066_v22, %v1033_v5  ;;  %v1099_v31 = vsel %vm10302_vm8, %v1087_v14, 0.0  ;;  %v10314_v48 = vrot.slane %v8980_v9, 1  ;;  %v1138_v53 = vsel %vm1135_vm9, %v10313_v17, %v1132_v45 }
 0x276   : > { %v1104_v49 = vadd.f32 %v1100_v6, %v1071_v42  ;;  %v1144_v38 = vmul.f32 %v8910_v29, %v1138_v53  ;;  %v1165_v25 = vrot.slane %v8957_v56, 2  ;;  %v10310_v36 = vrot.slane %v8980_v9, 2 }
 0x277   : > { %vm838_vm6 = vcmp.ge.s32.totalorder %v8931_v39, 0  ;;  %vm839_vm5 = vcmp.ge.s32.totalorder %v8933_v41, 0  ;;  %v1103_v58 = vadd.f32 %v1099_v31, %v1070_v62  ;;  %v1137_v54 = vsel %vm1135_vm9, %v1132_v45, %v10314_v48 }
 0x278   : > { %v1198_v14 = vrot.slane %v8957_v56, 3  ;;  %v10308_v42 = vrot.slane %v8980_v9, 3  ;;  %vm10317_vm8 = vcmp.ge.s32.totalorder %v8939_v43, 0  ;;  %vm10316_vm7 = vcmp.ge.s32.totalorder %v8941_v44, 0 }
 0x279   : > { %v1128_v5 = vadd.f32 %v1112_v50, %v1104_v49  ;;  %v1145_v22 = vmul.f32 %v8910_v29, %v1137_v54  ;;  %v1156_v6 = vsel %vm10304_vm10, %v1144_v38, 0.0  ;;  %v1170_v62 = vsel %vm10307_vm11, %v1165_v25, %v10310_v36 }
 0x27a   : > { %v1127_v45 = vadd.f32 %v1111_v8, %v1103_v58  ;;  %v1171_v31 = vsel %vm10307_vm11, %v10309_v28, %v1165_v25  ;;  %v1178_v53 = vmul.f32 %v8914_v30, %v1170_v62  ;;  %v1203_v49 = vsel %vm1201_vm13, %v1198_v14, %v10308_v42 }
 0x27b   : > { %vm10319_vm10 = vcmp.ge.s32.totalorder %v8943_v24, 0  ;;  %vm10318_vm4 = vcmp.ge.s32.totalorder %v8947_v46, 0  ;;  %vm10361_vm3 = vcmp.lt.s32.totalorder %v8892_v19, 8  ;;  %v1177_v8 = vmul.f32 %v8914_v30, %v1171_v31 }
 0x27c   : > { %v1157_v50 = vsel %vm10361_vm3, %v1145_v22, 0.0  ;;  %v1204_v38 = vsel %vm1201_vm13, %v10311_v21, %v1198_v14  ;;  %v1211_v25 = vmul.f32 %v8918_v32, %v1203_v49  ;;  %v1160_v58 = vadd.f32 %v1156_v6, %v1127_v45  ;;  %v9085_v45 = vld [vmem:[#allocation8] ss:$0 sm:$0xff] }
 0x27d   : > { %v1161_v54 = vadd.f32 %v1157_v50, %v1128_v5  ;;  %vm10362_vm11 = vcmp.lt.s32.totalorder %v8896_v23, 8  ;;  %v1210_v42 = vmul.f32 %v8918_v32, %v1204_v38  ;;  %v1189_v28 = vsel %vm916_vm15, %v1177_v8, 0.0 }
 0x27e   : > { %v1190_v62 = vsel %vm10362_vm11, %v1178_v53, 0.0  ;;  %v1223_v22 = vsel %vm10312_vm12, %v1211_v25, 0.0  ;;  %v1010_v31 = vrot.slane %v8980_v9, 5  ;;  %v1043_v36 = vrot.slane %v8980_v9, 6 }
 0x27f   : > { %v1193_v14 = vadd.f32 %v1189_v28, %v1160_v58  ;;  %v1194_v21 = vadd.f32 %v1190_v62, %v1161_v54  ;;  %v1222_v5 = vsel %vm10315_vm14, %v1210_v42, 0.0  ;;  %v1076_v6 = vrot.slane %v8980_v9, 7 }
 0x280   : > { %vm902_vm3 = vcmp.lt.s32.totalorder %v8949_v18, 8  ;;  %vm903_vm11 = vcmp.lt.s32.totalorder %v8920_v33, 8  ;;  %v10363_v53 = vrot.slane %v8963_v15, 5  ;;  %v10364_v50 = vrot.slane %v8957_v56, 5 }
 0x281   : > { %v10365_v42 = vrot.slane %v8963_v15, 6  ;;  %v10366_v38 = vrot.slane %v8957_v56, 6  ;;  %v1226_v58 = vadd.f32 %v1222_v5, %v1193_v14  ;;  %v1227_v54 = vadd.f32 %v1223_v22, %v1194_v21 }
 0x282   : > { %v1013_v49 = vsel %vm1012_vm0, %v1010_v31, %v10363_v53  ;;  %v1014_v28 = vsel %vm1012_vm0, %v10364_v50, %v1010_v31  ;;  %vm919_vm12 = vcmp.lt.s32.totalorder %v8922_v34, 8  ;;  %v10367_v17 = vrot.slane %v8963_v15, 7  ;;  %v6700_v34 = vld [vmem:[#allocation11 + $0x1] ss:$0 sm:$0xff] }
 0x283   : > { %v1046_v8 = vsel %vm1045_vm1, %v1043_v36, %v10365_v42  ;;  %v1047_v25 = vsel %vm1045_vm1, %v10366_v38, %v1043_v36  ;;  %v1023_v62 = vmul.f32 %v8865_v59, %v1014_v28  ;;  %v1024_v53 = vmul.f32 %v8865_v59, %v1013_v49 }
 0x284   : > { %v1056_v31 = vmul.f32 %v8868_v60, %v1047_v25  ;;  %v1057_v50 = vmul.f32 %v8868_v60, %v1046_v8  ;;  %v1079_v42 = vsel %vm1078_vm2, %v1076_v6, %v10367_v17  ;;  %v10368_v48 = vrot.slane %v8957_v56, 7 }
 0x285   : > { %v1237_v36 = vadd.f32 %v9085_v45, %v1226_v58  ;;  %v1238_v59 = vadd.f32 %v9085_v45, %v1227_v54  ;;  %v1035_v22 = vsel %vm838_vm6, %v1023_v62, 0.0  ;;  %v1036_v60 = vsel %vm839_vm5, %v1024_v53, 0.0 }
 0x286   : > { %v1080_v21 = vsel %vm1078_vm2, %v10368_v48, %v1076_v6  ;;  %vm10323_vm14 = vcmp.lt.s32.totalorder %v8924_v35, 8  ;;  %v1068_v17 = vsel %vm10317_vm8, %v1056_v31, 0.0  ;;  %v1069_v56 = vsel %vm10316_vm7, %v1057_v50, 0.0 }
 0x287   : > { %v1089_v48 = vmul.f32 %v8906_v16, %v1080_v21  ;;  %v1090_v14 = vmul.f32 %v8906_v16, %v1079_v42  ;;  %v1241_v5 = vpack.c.bf16 %v1238_v59, %v1237_v36  ;;  %v1072_v6 = vadd.f32 %v1068_v17, %v1035_v22 }
 0x288   : > { %v1073_v49 = vadd.f32 %v1069_v56, %v1036_v60  ;;  %v1113_v28 = vmul.f32 %v8861_v57, %v8980_v9  ;;  %v1114_v25 = vmul.f32 %v8861_v57, %v8963_v15  ;;  %v1134_v58 = vrot.slane %v8963_v15, 1 }
 0x289   : > { %v1101_v8 = vsel %vm10319_vm10, %v1089_v48, 0.0  ;;  %v1102_v38 = vsel %vm10318_vm4, %v1090_v14, 0.0  ;;  %7050 = vmatprep.mubr.bf16.mxu0 %v1241_v5  ;;  %v1167_v62 = vrot.slane %v8963_v15, 2  ;;  %v1200_v53 = vrot.slane %v8963_v15, 3 }
 0x28a   : > { %v1105_v54 = vadd.f32 %v1101_v8, %v1072_v6  ;;  %v1106_v16 = vadd.f32 %v1102_v38, %v1073_v49  ;;  %vm918_vm7 = vcmp.lt.s32.totalorder %v8951_v47, 8  ;;  %vm10324_vm8 = vcmp.lt.s32.totalorder %v8955_v55, 8 }
 0x28b   : > { %v10369_v31 = vrot.slane %v8980_v9, 1  ;;  %v10370_v57 = vrot.slane %v8926_v37, 1  ;;  %v10371_v22 = vrot.slane %v8980_v9, 2  ;;  %vm10372_vm4 = vcmp.lt.s32.totalorder %v8845_v40, 6 }
 0x28c   : > { %v1129_v21 = vadd.f32 %v1113_v28, %v1105_v54  ;;  %v1130_v36 = vadd.f32 %v1114_v25, %v1106_v16  ;;  %v10373_v17 = vrot.slane %v8926_v37, 2  ;;  %vm10374_vm10 = vmmov %vm10372_vm4  ;;  %v10375_v48 = vrot.slane %v8980_v9, 3 }
 0x28d   : > { %v1136_v50 = vsel %vm1135_vm9, %v10369_v31, %v1134_v58  ;;  %v1139_v42 = vsel %vm1135_vm9, %v1134_v58, %v10370_v57  ;;  %v1169_v60 = vsel %vm10372_vm4, %v10371_v22, %v1167_v62  ;;  %v10376_v5 = vrot.slane %v8926_v37, 3 }
 0x28e   : > { %v1146_v59 = vmul.f32 %v8910_v29, %v1136_v50  ;;  %v1147_v15 = vmul.f32 %v8910_v29, %v1139_v42  ;;  %v1172_v56 = vsel %vm10374_vm10, %v1167_v62, %v10373_v17  ;;  %v1202_v14 = vsel %vm1201_vm13, %v10375_v48, %v1200_v53 }
 0x28f   : > { %v1205_v29 = vsel %vm1201_vm13, %v1200_v53, %v10376_v5  ;;  %v1179_v28 = vmul.f32 %v8914_v30, %v1169_v60  ;;  %v1180_v8 = vmul.f32 %v8914_v30, %v1172_v56  ;;  %v1212_v25 = vmul.f32 %v8918_v32, %v1202_v14 }
 0x290   : > { %v1158_v6 = vsel %vm902_vm3, %v1146_v59, 0.0  ;;  %v1159_v49 = vsel %vm903_vm11, %v1147_v15, 0.0  ;;  %v1213_v58 = vmul.f32 %v8918_v32, %v1205_v29  ;;  %vm10381_vm4 = vcmp.ge.s32.totalorder %v8876_v0, 0 }
 0x291   : > { %v1162_v38 = vadd.f32 %v1158_v6, %v1129_v21  ;;  %v1163_v9 = vadd.f32 %v1159_v49, %v1130_v36  ;;  %v1191_v37 = vsel %vm918_vm7, %v1179_v28, 0.0  ;;  %v1192_v54 = vsel %vm919_vm12, %v1180_v8, 0.0  ;;  %v6687_v21 = vld [vmem:[#allocation11] ss:$0 sm:$0xff] }
 0x292   : > { %v1224_v53 = vsel %vm10324_vm8, %v1212_v25, 0.0  ;;  %v1225_v30 = vsel %vm10323_vm14, %v1213_v58, 0.0  ;;  %vm10382_vm10 = vcmp.ge.s32.totalorder %v8880_v2, 0  ;;  %vm10383_vm14 = vcmp.ge.s32.totalorder %v8886_v12, 0 }
 0x293   : > { %v1195_v16 = vadd.f32 %v1191_v37, %v1162_v38  ;;  %v1196_v62 = vadd.f32 %v1192_v54, %v1163_v9  ;;  %vm10384_vm8 = vcmp.ge.s32.totalorder %v8874_v63, 0 }
 0x295   : > { %v1228_v31 = vadd.f32 %v1224_v53, %v1195_v16  ;;  %v1229_v50 = vadd.f32 %v1225_v30, %v1196_v62 }
 0x297   : > { %v1239_v57 = vadd.f32 %v9085_v45, %v1228_v31  ;;  %v1240_v32 = vadd.f32 %v9085_v45, %v1229_v50 }
 0x299   : > { %v1242_v42 = vpack.c.bf16 %v1240_v32, %v1239_v57  ;;  %v7739_v57 = vld [vmem:[#allocation10 + $0x40] sm:$0xff]   ;;  %v7740_v32 = vld [vmem:[#allocation10 + $0x48] sm:$0xff]  }
 0x29a   : > { %7054 = vmatprep.subr.bf16.mxu1 %v7739_v57 }
 0x29b   : > { %7051 = vmatmul.mubr.bf16.vlgmr.msra.gmra.mrb[0].mxu0 %v1242_v42  ;;  %7055 = vmatpush3.bf16.msra.mxu1 %v7739_v57  ;;  %v7741_v42 = vld [vmem:[#allocation10 + $0x50] sm:$0xff]  }
 0x29c   : > { %7056 = vmatprep.subr.bf16.mxu1 %v7740_v32 }
 0x29f   : > { %7057 = vmatpush3.bf16.msra.mxu1 %v7740_v32 }
 0x2a0   : > { %7058 = vmatprep.subr.bf16.mxu1 %v7741_v42 }
 0x2a3   : > { %7059 = vmatpush3.bf16.msra.mxu1 %v7741_v42  ;;  %v10377_v42 = vsub.s32 3, %v8845_v40 }
 0x36e   : > { %v7052_v36 = vpop.f32.mrb[0].mxu0 }
 0x36f   : > { %v1348_v59 = vpop.f32.mrb[1].mxu0  ;;  %v1357_v56 = vadd.f32 %v7052_v36, %v6687_v21  ;;  %v7743_v36 = vld [vmem:[#allocation10 + $0x60] sm:$0xff]  }
 0x370   : > { %v1349_v15 = vadd.f32 %v6687_v21, %v1348_v59  ;;  %v7053_v22 = vpop.f32.mrb[2].mxu0  ;;  %v7744_v59 = vld [vmem:[#allocation10 + $0x68] sm:$0xff]  }
 0x371   : > { %v1360_v60 = vadd.f32 %v7053_v22, %v6687_v21  ;;  %v1351_v17 = vpop.f32.mrb[3].mxu0  ;;  %v1365_v49 = vmax.f32 %v1357_v56, 0.0  ;;  %v7746_v22 = vld [vmem:[#allocation10 + $0x78] sm:$0xff]  }
 0x372   : > { %v1363_v48 = vmax.f32 %v1349_v15, 0.0  ;;  %v1352_v14 = vadd.f32 %v6687_v21, %v1351_v17  ;;  %v7742_v21 = vld [vmem:[#allocation10 + $0x58] sm:$0xff]   ;;  %v7745_v15 = vld [vmem:[#allocation10 + $0x70] sm:$0xff]  }
 0x373   : > { %v1366_v29 = vmax.f32 %v1360_v60, 0.0  ;;  %v9200_v8 = vadd.f32 %v1365_v49, %v8821_v11  ;;  %7060 = vmatprep.subr.bf16.mxu1 %v7742_v21 }
 0x374   : > { %v9189_v5 = vadd.f32 %v1363_v48, %v8813_v3  ;;  %v1364_v6 = vmax.f32 %v1352_v14, 0.0  ;;  %7061 = vmatpush3.bf16.msra.mxu1 %v7742_v21 }
 0x375   : > { %v9196_v28 = vadd.f32 %v1366_v29, %v8815_v7  ;;  %7062 = vmatprep.subr.bf16.mxu1 %v7743_v36 }
 0x376   : > { %v9192_v45 = vadd.f32 %v1364_v6, %v8818_v10  ;;  %1375 = vadd.xlane.f32.xlu0 %v9189_v5 }
 0x378   : > { %1377 = vadd.xlane.f32.xlu1 %v9192_v45  ;;  %7063 = vmatpush3.bf16.msra.mxu1 %v7743_v36 }
 0x379   : > { %7064 = vmatprep.subr.bf16.mxu1 %v7744_v59 }
 0x37a   : > { %1381 = vadd.xlane.f32.xlu0 %v9196_v28 }
 0x37c   : > { %1379 = vadd.xlane.f32.xlu1 %v9200_v8  ;;  %7065 = vmatpush3.bf16.msra.mxu1 %v7744_v59 }
 0x37d   : > { %7066 = vmatprep.subr.bf16.mxu1 %v7745_v15 }
 0x380   : > { %7067 = vmatpush3.bf16.msra.mxu1 %v7745_v15 }
 0x381   : > { %7068 = vmatprep.subr.bf16.mxu1 %v7746_v22 }
 0x384   : > { %7069 = vmatpush3.bf16.msra.mxu1 %v7746_v22 }
 0x403   : > { %v1376_v3 = vpop.xlane.xlu0 %1375 }
 0x404   : > { %v1383_v38 = vmul.f32 0.0078125, %v1376_v3 }
 0x405   : > { %v1378_v9 = vpop.xlane.xlu1 %1377 }
 0x406   : > { %v1384_v25 = vmul.f32 0.0078125, %v1378_v9  ;;  %v1387_v10 = vsub.f32 %v9189_v5, %v1383_v38 }
 0x407   : > { %v1382_v58 = vpop.xlane.xlu0 %1381 }
 0x408   : > { %v1386_v37 = vmul.f32 0.0078125, %v1382_v58  ;;  %v1391_v54 = vmul.f32 %v1387_v10, %v1387_v10  ;;  %v1388_v7 = vsub.f32 %v9192_v45, %v1384_v25 }
 0x409   : > { %v1380_v16 = vpop.xlane.xlu1 %1379 }
 0x40a   : > { %v1385_v62 = vmul.f32 0.0078125, %v1380_v16  ;;  %1395 = vadd.xlane.f32.xlu0 %v1391_v54  ;;  %v1392_v11 = vmul.f32 %v1388_v7, %v1388_v7  ;;  %v1390_v53 = vsub.f32 %v9196_v28, %v1386_v37  ;;  %v6696_v37 = vld [vmem:[#allocation5 + $0x1] ss:$0 sm:$0xff]  ;;  %v6698_v16 = vld [vmem:[%s10360_s0 + $0x8] sm:$0x7f] }
 0x40b   : > { %v9216_v32 = vrot.slane %v6698_v16, %v8853_v51  ;;  %v9220_v21 = vrot.slane %v6698_v16, %v10377_v42  ;;  %v9225_v15 = vrot.slane %v6698_v16, %v8856_v52 }
 0x40c   : > { %1397 = vadd.xlane.f32.xlu1 %v1392_v11  ;;  %v1394_v30 = vmul.f32 %v1390_v53, %v1390_v53  ;;  %v9208_v31 = vsub.f32 %v9200_v8, %v1385_v62  ;;  %v6697_v11 = vld [vmem:[#allocation7 + $0x1] ss:$0 sm:$0xff] }
 0x40e   : > { %1401 = vadd.xlane.f32.xlu0 %v1394_v30  ;;  %v1393_v50 = vmul.f32 %v9208_v31, %v9208_v31 }
 0x410   : > { %1399 = vadd.xlane.f32.xlu1 %v1393_v50 }
 0x497   : > { %v1396_v60 = vpop.xlane.xlu0 %1395 }
 0x498   : > { %v1403_v17 = vmul.f32 0.0078125, %v1396_v60  ;;  %v9228_v60 = vrot.slane %v6698_v16, %v8871_v61 }
 0x499   : > { %v1398_v56 = vpop.xlane.xlu1 %1397 }
 0x49a   : > { %v1407_v48 = vadd.f32 1e-05, %v1403_v17  ;;  %v1404_v14 = vmul.f32 0.0078125, %v1398_v56  ;;  %v10379_v56 = vsub.s32 5, %v8845_v40 }
 0x49b   : > { %v1402_v29 = vpop.xlane.xlu0 %1401 }
 0x49c   : > { %7803 = vrsqrt.f32 %v1407_v48  ;;  %v1408_v6 = vadd.f32 1e-05, %v1404_v14  ;;  %v1406_v49 = vmul.f32 0.0078125, %v1402_v29  ;;  %v9236_v48 = vrot.slane %v6698_v16, %v10379_v56 }
 0x49d   : > { %v1400_v3 = vpop.xlane.xlu1 %1399  ;;  %v10380_v14 = vsub.s32 6, %v8845_v40 }
 0x49e   : > { %7805 = vrsqrt.f32 %v1408_v6  ;;  %v1410_v38 = vadd.f32 1e-05, %v1406_v49  ;;  %v1405_v9 = vmul.f32 0.0078125, %v1400_v3 }
 0x49f   : > { %v9240_v29 = vrot.slane %v6698_v16, %v10380_v14 }
 0x4a0   : > { %7807 = vrsqrt.f32 %v1410_v38  ;;  %v1409_v25 = vadd.f32 1e-05, %v1405_v9 }
 0x4a2   : > { %7809 = vrsqrt.f32 %v1409_v25 }
 0x4a6   : > { %v7804_v58 = vpop.eup %7803 }
 0x4a7   : > { %v1415_v54 = vmul.f32 %v7804_v58, %v1387_v10 }
 0x4a8   : > { %v7806_v62 = vpop.eup %7805 }
 0x4a9   : > { %v1425_v30 = vmul.f32 %v6696_v37, %v1415_v54  ;;  %v1416_v50 = vmul.f32 %v7806_v62, %v1388_v7  ;;  %v10378_v7 = vsub.s32 4, %v8845_v40 }
 0x4aa   : > { %v7808_v57 = vpop.eup %7807 }
 0x4ab   : > { %v9222_v36 = vadd.f32 %v6697_v11, %v1425_v30  ;;  %v1426_v59 = vmul.f32 %v6696_v37, %v1416_v50  ;;  %v1418_v10 = vmul.f32 %v7808_v57, %v1390_v53  ;;  %v9232_v17 = vrot.slane %v6698_v16, %v10378_v7 }
 0x4ac   : > { %v7810_v22 = vpop.eup %7809 }
 0x4ad   : > { %v9242_v53 = vadd.f32 %v6697_v11, %v1426_v59  ;;  %v1428_v6 = vmul.f32 %v6696_v37, %v1418_v10  ;;  %v1417_v49 = vmul.f32 %v7810_v22, %v9208_v31  ;;  %v1441_v3 = vrot.slane %v9222_v36, 5 }
 0x4ae   : > { %v1465_v38 = vrot.slane %v9222_v36, 6  ;;  %v1489_v9 = vrot.slane %v9222_v36, 7  ;;  %v1517_v25 = vmul.f32 %v9220_v21, %v9222_v36  ;;  %v1529_v58 = vrot.slane %v9222_v36, 1 }
 0x4af   : > { %v9251_v54 = vadd.f32 %v6697_v11, %v1428_v6  ;;  %v1427_v16 = vmul.f32 %v6696_v37, %v1417_v49  ;;  %v10320_v62 = vrot.slane %v9242_v53, 5  ;;  %v10321_v30 = vrot.slane %v9242_v53, 6 }
 0x4b0   : > { %v10322_v31 = vrot.slane %v9242_v53, 7  ;;  %v1518_v50 = vmul.f32 %v9220_v21, %v9242_v53  ;;  %v1530_v57 = vrot.slane %v9242_v53, 1  ;;  %v10393_v20 = vrot.slane %v9242_v53, 5 }
 0x4b1   : > { %v9260_v59 = vadd.f32 %v6697_v11, %v1427_v16  ;;  %v1444_v10 = vrot.slane %v9251_v54, 5  ;;  %v1447_v37 = vsel %vm1012_vm0, %v1441_v3, %v10320_v62  ;;  %v1468_v22 = vrot.slane %v9251_v54, 6 }
 0x4b2   : > { %v1454_v7 = vmul.f32 %v9216_v32, %v1447_v37  ;;  %v1471_v56 = vsel %vm1045_vm1, %v1465_v38, %v10321_v30  ;;  %v1492_v14 = vrot.slane %v9251_v54, 7  ;;  %v1495_v11 = vsel %vm1078_vm2, %v1489_v9, %v10322_v31 }
 0x4b3   : > { %v1448_v6 = vsel %vm1012_vm0, %v1444_v10, %v1441_v3  ;;  %v1472_v49 = vsel %vm1045_vm1, %v1468_v22, %v1465_v38  ;;  %v1478_v16 = vmul.f32 %v9225_v15, %v1471_v56  ;;  %v1502_v37 = vmul.f32 %v9228_v60, %v1495_v11 }
 0x4b4   : > { %v1453_v62 = vmul.f32 %v9216_v32, %v1448_v6  ;;  %v1458_v30 = vsel %vm10381_vm4, %v1454_v7, 0.0  ;;  %v1477_v42 = vmul.f32 %v9225_v15, %v1472_v49  ;;  %v1496_v31 = vsel %vm1078_vm2, %v1492_v14, %v1489_v9 }
 0x4b5   : > { %v1482_v3 = vsel %vm10382_vm10, %v1478_v16, 0.0  ;;  %v1501_v38 = vmul.f32 %v9228_v60, %v1496_v31  ;;  %v1506_v56 = vsel %vm10383_vm14, %v1502_v37, 0.0  ;;  %v1531_v11 = vrot.slane %v9260_v59, 1 }
 0x4b6   : > { %v1457_v0 = vsel %vm10384_vm8, %v1453_v62, 0.0  ;;  %vm10385_vm4 = vcmp.ge.s32.totalorder %v8878_v1, 0  ;;  %v1486_v6 = vadd.f32 %v1482_v3, %v1458_v30  ;;  %v1535_v2 = vsel %vm1135_vm9, %v1529_v58, %v1530_v57 }
 0x4b7   : > { %v1481_v7 = vsel %vm10385_vm4, %v1477_v42, 0.0  ;;  %vm10386_vm10 = vcmp.ge.s32.totalorder %v8882_v4, 0  ;;  %v1534_v12 = vsel %vm1135_vm9, %v1530_v57, %v1531_v11  ;;  %v1541_v63 = vmul.f32 %v9232_v17, %v1535_v2 }
 0x4b8   : > { %v1485_v9 = vadd.f32 %v1481_v7, %v1457_v0  ;;  %v1505_v31 = vsel %vm10386_vm10, %v1501_v38, 0.0  ;;  %v1510_v62 = vadd.f32 %v1506_v56, %v1486_v6  ;;  %v1542_v1 = vmul.f32 %v9232_v17, %v1534_v12 }
 0x4b9   : > { %v1554_v30 = vrot.slane %v9242_v53, 2  ;;  %v1555_v42 = vrot.slane %v9260_v59, 2  ;;  %vm10387_vm8 = vcmp.lt.s32.totalorder %v8888_v13, 8  ;;  %v1577_v4 = vrot.slane %v9222_v36, 3 }
 0x4ba   : > { %v1509_v49 = vadd.f32 %v1505_v31, %v1485_v9  ;;  %v1545_v16 = vsel %vm10387_vm8, %v1541_v63, 0.0  ;;  %v1578_v37 = vrot.slane %v9242_v53, 3  ;;  %v1526_v3 = vadd.f32 %v1518_v50, %v1510_v62 }
 0x4bb   : > { %vm10388_vm14 = vcmp.lt.s32.totalorder %v8892_v19, 8  ;;  %vm10389_vm4 = vcmp.lt.s32.totalorder %v8845_v40, 6  ;;  %v10390_v56 = vrot.slane %v9222_v36, 2  ;;  %v1579_v50 = vrot.slane %v9260_v59, 3 }
 0x4bc   : > { %v1546_v57 = vsel %vm10388_vm14, %v1542_v1, 0.0  ;;  %v1558_v38 = vsel %vm10389_vm4, %v1554_v30, %v1555_v42  ;;  %vm10391_vm10 = vmmov %vm10389_vm4  ;;  %v1525_v13 = vadd.f32 %v1517_v25, %v1509_v49  ;;  %v1583_v19 = vsel %vm1201_vm13, %v1577_v4, %v1578_v37 }
 0x4bd   : > { %v1559_v0 = vsel %vm10391_vm10, %v10390_v56, %v1554_v30  ;;  %v1566_v6 = vmul.f32 %v9236_v48, %v1558_v38  ;;  %v1550_v2 = vadd.f32 %v1546_v57, %v1526_v3  ;;  %v1443_v9 = vrot.slane %v9260_v59, 5 }
 0x4be   : > { %v1565_v7 = vmul.f32 %v9236_v48, %v1559_v0  ;;  %v1467_v31 = vrot.slane %v9260_v59, 6  ;;  %v1549_v12 = vadd.f32 %v1545_v16, %v1525_v13  ;;  %vm10392_vm8 = vcmp.lt.s32.totalorder %v8896_v23, 8  ;;  %v6699_v0 = vld [vmem:[#allocation8 + $0x1] ss:$0 sm:$0xff] }
 0x4bf   : > { %v1570_v63 = vsel %vm10392_vm8, %v1566_v6, 0.0  ;;  %v1582_v62 = vsel %vm1201_vm13, %v1578_v37, %v1579_v50  ;;  %v1589_v30 = vmul.f32 %v9240_v29, %v1583_v19  ;;  %v1445_v3 = vsel %vm1012_vm0, %v1443_v9, %v1444_v10 }
 0x4c0   : > { %v1569_v25 = vsel %vm916_vm15, %v1565_v7, 0.0  ;;  %v1574_v1 = vadd.f32 %v1570_v63, %v1550_v2  ;;  %v1590_v49 = vmul.f32 %v9240_v29, %v1582_v62  ;;  %v1446_v23 = vsel %vm1012_vm0, %v10393_v20, %v1443_v9 }
 0x4c1   : > { %v1573_v16 = vadd.f32 %v1569_v25, %v1549_v12  ;;  %v1456_v57 = vmul.f32 %v9216_v32, %v1445_v3  ;;  %v1469_v38 = vsel %vm1045_vm1, %v1467_v31, %v1468_v22  ;;  %vm10394_vm15 = vcmp.lt.s32.totalorder %v8898_v26, 8 }
 0x4c2   : > { %v1593_v37 = vsel %vm10394_vm15, %v1589_v30, 0.0  ;;  %vm10395_vm14 = vcmp.lt.s32.totalorder %v8900_v27, 8  ;;  %v1455_v10 = vmul.f32 %v9216_v32, %v1446_v23  ;;  %v10396_v13 = vrot.slane %v9242_v53, 6 }
 0x4c3   : > { %v1594_v56 = vsel %vm10395_vm14, %v1590_v49, 0.0  ;;  %v1597_v6 = vadd.f32 %v1593_v37, %v1573_v16  ;;  %v1460_v26 = vsel %vm839_vm5, %v1456_v57, 0.0  ;;  %v1480_v27 = vmul.f32 %v9225_v15, %v1469_v38 }
 0x4c4   : > { %v1470_v7 = vsel %vm1045_vm1, %v10396_v13, %v1467_v31  ;;  %v1598_v2 = vadd.f32 %v1594_v56, %v1574_v1  ;;  %v1459_v22 = vsel %vm838_vm6, %v1455_v10, 0.0  ;;  %v1491_v9 = vrot.slane %v9260_v59, 7 }
 0x4c5   : > { %v1479_v19 = vmul.f32 %v9225_v15, %v1470_v7  ;;  %v1609_v32 = vadd.f32 %v6699_v0, %v1597_v6  ;;  %vm10397_vm0 = vcmp.ge.s32.totalorder %v8939_v43, 0  ;;  %vm10398_vm1 = vcmp.ge.s32.totalorder %v8941_v44, 0 }
 0x4c6   : > { %v1610_v12 = vadd.f32 %v6699_v0, %v1598_v2  ;;  %v1484_v31 = vsel %vm10398_vm1, %v1480_v27, 0.0  ;;  %v1493_v39 = vsel %vm1078_vm2, %v1491_v9, %v1492_v14  ;;  %v10399_v41 = vrot.slane %v9242_v53, 7 }
 0x4c7   : > { %v1483_v25 = vsel %vm10397_vm0, %v1479_v19, 0.0  ;;  %v1488_v1 = vadd.f32 %v1484_v31, %v1460_v26  ;;  %v1504_v43 = vmul.f32 %v9228_v60, %v1493_v39  ;;  %v1519_v44 = vmul.f32 %v9220_v21, %v9260_v59 }
 0x4c8   : > { %v1487_v63 = vadd.f32 %v1483_v25, %v1459_v22  ;;  %v1494_v15 = vsel %vm1078_vm2, %v10399_v41, %v1491_v9  ;;  %v1613_v62 = vpack.c.bf16 %v1610_v12, %v1609_v32  ;;  %v1532_v49 = vrot.slane %v9251_v54, 1  ;;  %vm10402_vm2 = vmmov %vm10389_vm4 }
 0x4c9   : > { %v1503_v30 = vmul.f32 %v9228_v60, %v1494_v15  ;;  %v1556_v3 = vrot.slane %v9251_v54, 2  ;;  %vm10400_vm5 = vcmp.ge.s32.totalorder %v8943_v24, 0  ;;  %vm10401_vm6 = vcmp.ge.s32.totalorder %v8947_v46, 0  ;;  %vm10404_vm4 = vmmov %vm10402_vm2 }
 0x4ca   : > { %7070 = vmatprep.mubr.bf16.mxu1 %v1613_v62  ;;  %v1508_v14 = vsel %vm10401_vm6, %v1504_v43, 0.0  ;;  %v1520_v16 = vmul.f32 %v9220_v21, %v9251_v54  ;;  %v1580_v20 = vrot.slane %v9251_v54, 3  ;;  %v1533_v57 = vsel %vm1135_vm9, %v1531_v11, %v1532_v49  ;;  %v7749_v43 = vld [vmem:[#allocation16 + $0x4] ss:$12 sps:$4 sm:$0xff]  }
 0x4cb   : > { %v1507_v53 = vsel %vm10400_vm5, %v1503_v30, 0.0  ;;  %v1512_v23 = vadd.f32 %v1508_v14, %v1488_v1  ;;  %v1536_v24 = vsel %vm1135_vm9, %v1532_v49, %v1529_v58  ;;  %v1543_v46 = vmul.f32 %v9232_v17, %v1533_v57  ;;  %v7753_v49 = vld [vmem:[#allocation16 + $0x8] ss:$12 sps:$4 sm:$0xff]   ;;  %1990 = vmatprep.subr.bf16.mxu0 %v7749_v43 }
 0x4cc   : > { %v1511_v60 = vadd.f32 %v1507_v53, %v1487_v63  ;;  %v1544_v38 = vmul.f32 %v9232_v17, %v1536_v24  ;;  %v1557_v21 = vsel %vm10402_vm2, %v1555_v42, %v1556_v3  ;;  %v10403_v54 = vrot.slane %v9222_v36, 2  ;;  %7074 = vmatprep.subr.bf16.mxu1 %v7753_v49 }
 0x4cd   : > { %v1528_v56 = vadd.f32 %v1520_v16, %v1512_v23  ;;  %v1567_v10 = vmul.f32 %v9236_v48, %v1557_v21  ;;  %v1547_v13 = vsel %vm902_vm3, %v1543_v46, 0.0  ;;  %v1581_v42 = vsel %vm1201_vm13, %v1579_v50, %v1580_v20 }
 0x4ce   : > { %v1560_v37 = vsel %vm10404_vm4, %v1556_v3, %v10403_v54  ;;  %v1527_v11 = vadd.f32 %v1519_v44, %v1511_v60  ;;  %v1548_v17 = vsel %vm903_vm11, %v1544_v38, 0.0  ;;  %v1584_v7 = vsel %vm1201_vm13, %v1580_v20, %v1577_v4  ;;  %v7752_v44 = vld [vmem:[#allocation16 + $0x1c] ss:$12 sps:$4 sm:$0xff]  }
 0x4cf   : > { %v1568_v58 = vmul.f32 %v9236_v48, %v1560_v37  ;;  %v1552_v2 = vadd.f32 %v1548_v17, %v1528_v56  ;;  %v1571_v48 = vsel %vm918_vm7, %v1567_v10, 0.0  ;;  %v1591_v33 = vmul.f32 %v9240_v29, %v1581_v42  ;;  %v7756_v56 = vld [vmem:[#allocation16 + $0x34] ss:$12 sps:$4 sm:$0xff]   ;;  %v7761_v17 = vld [vmem:[#allocation16 + $0x38] ss:$12 sps:$4 sm:$0xff]  }
 0x4d0   : > { %v1551_v6 = vadd.f32 %v1547_v13, %v1527_v11  ;;  %v1592_v59 = vmul.f32 %v9240_v29, %v1584_v7  ;;  %vm10405_vm9 = vcmp.lt.s32.totalorder %v8955_v55, 8  ;;  %vm10406_vm3 = vcmp.lt.s32.totalorder %v8924_v35, 8  ;;  %v7754_v11 = vld [vmem:[#allocation16 + $0x30] ss:$12 sps:$4 sm:$0xff]   ;;  %v7757_v10 = vld [vmem:[#allocation16 + $0x20] ss:$12 sps:$4 sm:$0xff]  }
 0x4d1   : > { %v1572_v18 = vsel %vm919_vm12, %v1568_v58, 0.0  ;;  %v1595_v36 = vsel %vm10405_vm9, %v1591_v33, 0.0  ;;  %v7758_v58 = vld [vmem:[#allocation16 + $0x48] ss:$12 sps:$4 sm:$0xff]   ;;  %v7760_v13 = vld [vmem:[#allocation16 + $0x4c] ss:$12 sps:$4 sm:$0xff]  }
 0x4d2   : > { %v1575_v19 = vadd.f32 %v1571_v48, %v1551_v6  ;;  %v1576_v22 = vadd.f32 %v1572_v18, %v1552_v2  ;;  %v1596_v40 = vsel %vm10406_vm3, %v1592_v59, 0.0  ;;  %v7764_v42 = vld [vmem:[#allocation16 + $0x64] ss:$12 sps:$4 sm:$0xff]   ;;  %v7762_v6 = vld [vmem:[#allocation16 + $0x60] ss:$12 sps:$4 sm:$0xff]   ;;  %vm8345_vm7 = vmmov 0  }
 0x4d3   : > { %v7765_v7 = vld [vmem:[#allocation16 + $0x50] ss:$12 sps:$4 sm:$0xff]   ;;  %v7769_v48 = vld [vmem:[#allocation16 + $0x68] ss:$12 sps:$4 sm:$0xff]   ;;  %v7766_v18 = vld [vmem:[#allocation16 + $0x78] ss:$12 sps:$4 sm:$0xff]  }
 0x4d4   : > { %v1599_v4 = vadd.f32 %v1595_v36, %v1575_v19  ;;  %v1600_v50 = vadd.f32 %v1596_v40, %v1576_v22  ;;  %v7768_v2 = vld [vmem:[#allocation16 + $0x7c] ss:$12 sps:$4 sm:$0xff]   ;;  %v7772_v33 = vld [vmem:[#allocation16 + $0x94] ss:$12 sps:$4 sm:$0xff]   ;;  %v8343_v19 = vmov 0   ;;  %vm2104_vm12 = vcmask 130048  }
 0x4d5   : > { %v7773_v59 = vld [vmem:[#allocation16 + $0x80] ss:$12 sps:$4 sm:$0xff]   ;;  %2022 = vmatprep.mubr.bf16.mxu0 %v8343_v19  ;;  %v7770_v22 = vld [vmem:[#allocation16 + $0x90] ss:$12 sps:$4 sm:$0xff]   ;;  %v7777_v40 = vld [vmem:[#allocation16 + $0x98] ss:$12 sps:$4 sm:$0xff]  }
 0x4d6   : > { %v1611_v26 = vadd.f32 %v6699_v0, %v1599_v4  ;;  %v1612_v47 = vadd.f32 %v6699_v0, %v1600_v50  ;;  %v7776_v36 = vld [vmem:[#allocation16 + $0xac] ss:$12 sps:$4 sm:$0xff]   ;;  %v7774_v4 = vld [vmem:[#allocation16 + $0xa8] ss:$12 sps:$4 sm:$0xff]   ;;  %v7778_v50 = vld [vmem:[#allocation16 + $0xb0] ss:$12 sps:$4 sm:$0xff]  }
 0x4d7   : > { %vm2353_vm13 = vcmask 1043456   ;;  %vm2289_vm11 = vcmask 64512  }
 0x4d8   : > { %v1614_v27 = vpack.c.bf16 %v1612_v47, %v1611_v26 }
 0x4da   : > { %7071 = vmatmul.mubr.bf16.vlgmr.msra.gmra.mrb[0].mxu1 %v1614_v27 }
 0x4db   : > { %7075 = vmatpush3.bf16.msra.mxu1 %v7753_v49  ;;  %v6710_v49 = vld [vmem:[#allocation14] ss:$0 sm:$0xff] }
 0x4dc   : > { %7076 = vmatprep.subr.bf16.mxu1 %v7757_v10 }
 0x4df   : > { %7077 = vmatpush3.bf16.msra.mxu1 %v7757_v10 }
 0x4e0   : > { %7078 = vmatprep.subr.bf16.mxu1 %v7761_v17 }
 0x4e3   : > { %7079 = vmatpush3.bf16.msra.mxu1 %v7761_v17 }
 0x4e4   : > { %7080 = vmatprep.subr.bf16.mxu1 %v7765_v7 }
 0x4e7   : > { %7081 = vmatpush3.bf16.msra.mxu1 %v7765_v7 }
 0x4e8   : > { %7082 = vmatprep.subr.bf16.mxu1 %v7769_v48 }
 0x4eb   : > { %7083 = vmatpush3.bf16.msra.mxu1 %v7769_v48 }
 0x4ec   : > { %7084 = vmatprep.subr.bf16.mxu1 %v7773_v59 }
 0x4ef   : > { %7085 = vmatpush3.bf16.msra.mxu1 %v7773_v59 }
 0x4f0   : > { %7086 = vmatprep.subr.bf16.mxu1 %v7777_v40 }
 0x4f3   : > { %7087 = vmatpush3.bf16.msra.mxu1 %v7777_v40 }
 0x4f4   : > { %7088 = vmatprep.subr.bf16.mxu1 %v7778_v50 }
 0x4f7   : > { %7089 = vmatpush3.bf16.msra.mxu1 %v7778_v50 }
 0x5ad   : > { %v7072_v9 = vpop.f32.mrb[0].mxu1 }
 0x5ae   : > { %v1722_v32 = vpop.f32.mrb[1].mxu1  ;;  %v1731_v12 = vadd.f32 %v7072_v9, %v6700_v34 }
 0x5af   : > { %v1723_v25 = vadd.f32 %v6700_v34, %v1722_v32  ;;  %v7073_v29 = vpop.f32.mrb[2].mxu1 }
 0x5b0   : > { %v1725_v31 = vpop.f32.mrb[3].mxu1  ;;  %v1734_v39 = vadd.f32 %v7073_v29, %v6700_v34  ;;  %v1739_v41 = vmax.f32 %v1731_v12, 0.0 }
 0x5b1   : > { %v1737_v63 = vmax.f32 %v1723_v25, 0.0  ;;  %v1726_v55 = vadd.f32 %v6700_v34, %v1725_v31 }
 0x5b2   : > { %v1740_v62 = vmax.f32 %v1734_v39, 0.0  ;;  %v9449_v1 = vadd.f32 %v1739_v41, %v9200_v8  ;;  %v6709_v41 = vld [vmem:[#allocation13] ss:$0 sm:$0xff] }
 0x5b3   : > { %v9442_v35 = vadd.f32 %v1737_v63, %v9189_v5  ;;  %v1738_v15 = vmax.f32 %v1726_v55, 0.0  ;;  %v7747_v5 = vld [vmem:[#allocation16] ss:$12 sps:$4 sm:$0xff]  }
 0x5b4   : > { %v9453_v30 = vadd.f32 %v1740_v62, %v9196_v28  ;;  %1991 = vmatpush1.bf16.msra.mxu0 %v7747_v5 }
 0x5b5   : > { %v9445_v0 = vadd.f32 %v1738_v15, %v9192_v45  ;;  %1747 = vadd.xlane.f32.xlu0 %v9442_v35  ;;  %v7750_v45 = vld [vmem:[#allocation16 + $0x18] ss:$12 sps:$4 sm:$0xff]   ;;  %1992 = vmatprep.subr.bf16.mxu0 %v7752_v44 }
 0x5b7   : > { %1749 = vadd.xlane.f32.xlu1 %v9445_v0 }
 0x5b8   : > { %1993 = vmatpush1.bf16.msra.mxu0 %v7750_v45 }
 0x5b9   : > { %1751 = vadd.xlane.f32.xlu0 %v9449_v1  ;;  %1994 = vmatprep.subr.bf16.mxu0 %v7756_v56 }
 0x5bb   : > { %1753 = vadd.xlane.f32.xlu1 %v9453_v30 }
 0x5bc   : > { %1995 = vmatpush1.bf16.msra.mxu0 %v7754_v11 }
 0x5bd   : > { %1996 = vmatprep.subr.bf16.mxu0 %v7760_v13 }
 0x5c0   : > { %1997 = vmatpush1.bf16.msra.mxu0 %v7758_v58 }
 0x5c1   : > { %1998 = vmatprep.subr.bf16.mxu0 %v7764_v42 }
 0x5c4   : > { %1999 = vmatpush1.bf16.msra.mxu0 %v7762_v6 }
 0x5c5   : > { %2000 = vmatprep.subr.bf16.mxu0 %v7768_v2 }
 0x5c8   : > { %2001 = vmatpush1.bf16.msra.mxu0 %v7766_v18 }
 0x5c9   : > { %2002 = vmatprep.subr.bf16.mxu0 %v7772_v33 }
 0x5cc   : > { %2003 = vmatpush1.bf16.msra.mxu0 %v7770_v22 }
 0x5cd   : > { %2004 = vmatprep.subr.bf16.mxu0 %v7776_v36 }
 0x5d0   : > { %2005 = vmatpush1.bf16.msra.mxu0 %v7774_v4 }
 0x642   : > { %v1748_v8 = vpop.xlane.xlu0 %1747 }
 0x643   : > { %v1755_v3 = vmul.f32 0.0078125, %v1748_v8 }
 0x644   : > { %v1750_v53 = vpop.xlane.xlu1 %1749 }
 0x645   : > { %v1756_v28 = vmul.f32 0.0078125, %v1750_v53  ;;  %v9458_v14 = vsub.f32 %v9442_v35, %v1755_v3 }
 0x646   : > { %v1752_v16 = vpop.xlane.xlu0 %1751 }
 0x647   : > { %v1757_v20 = vmul.f32 0.0078125, %v1752_v16  ;;  %v1763_v60 = vmul.f32 %v9458_v14, %v9458_v14  ;;  %v9463_v23 = vsub.f32 %v9445_v0, %v1756_v28 }
 0x648   : > { %v1754_v57 = vpop.xlane.xlu1 %1753 }
 0x649   : > { %v1758_v24 = vmul.f32 0.0078125, %v1754_v57  ;;  %1767 = vadd.xlane.f32.xlu0 %v1763_v60  ;;  %v1764_v46 = vmul.f32 %v9463_v23, %v9463_v23  ;;  %v9468_v38 = vsub.f32 %v9449_v1, %v1757_v20 }
 0x64b   : > { %1769 = vadd.xlane.f32.xlu1 %v1764_v46  ;;  %v1765_v21 = vmul.f32 %v9468_v38, %v9468_v38  ;;  %v9473_v54 = vsub.f32 %v9453_v30, %v1758_v24  ;;  %v8344_v46 = vmov 0.0  }
 0x64c   : > { %7094 = vmatprep.subr.bf16.mxu1 %v8344_v46  ;;  %7112 = vmatprep.subr.bf16.mxu0 %v8344_v46 }
 0x64d   : > { %1771 = vadd.xlane.f32.xlu0 %v1765_v21  ;;  %v1766_v37 = vmul.f32 %v9473_v54, %v9473_v54 }
 0x64f   : > { %1773 = vadd.xlane.f32.xlu1 %v1766_v37 }
 0x6d6   : > { %v1768_v26 = vpop.xlane.xlu0 %1767 }
 0x6d7   : > { %v1775_v47 = vmul.f32 0.0078125, %v1768_v26 }
 0x6d8   : > { %v1770_v27 = vpop.xlane.xlu1 %1769 }
 0x6d9   : > { %v1779_v34 = vadd.f32 1e-05, %v1775_v47  ;;  %v1776_v9 = vmul.f32 0.0078125, %v1770_v27 }
 0x6da   : > { %v1772_v32 = vpop.xlane.xlu0 %1771 }
 0x6db   : > { %7811 = vrsqrt.f32 %v1779_v34  ;;  %v1780_v12 = vadd.f32 1e-05, %v1776_v9  ;;  %v1777_v25 = vmul.f32 0.0078125, %v1772_v32 }
 0x6dc   : > { %v1774_v29 = vpop.xlane.xlu1 %1773 }
 0x6dd   : > { %7813 = vrsqrt.f32 %v1780_v12  ;;  %v1781_v31 = vadd.f32 1e-05, %v1777_v25  ;;  %v1778_v63 = vmul.f32 0.0078125, %v1774_v29 }
 0x6df   : > { %7815 = vrsqrt.f32 %v1781_v31  ;;  %v1782_v39 = vadd.f32 1e-05, %v1778_v63 }
 0x6e1   : > { %7817 = vrsqrt.f32 %v1782_v39 }
 0x6e5   : > { %v7812_v55 = vpop.eup %7811 }
 0x6e6   : > { %v1787_v15 = vmul.f32 %v7812_v55, %v9458_v14 }
 0x6e7   : > { %v7814_v62 = vpop.eup %7813 }
 0x6e8   : > { %v1788_v5 = vmul.f32 %v7814_v62, %v9463_v23  ;;  %v1797_v43 = vmul.f32 %v6709_v41, %v1787_v15 }
 0x6e9   : > { %v7816_v44 = vpop.eup %7815 }
 0x6ea   : > { %v1798_v45 = vmul.f32 %v6709_v41, %v1788_v5  ;;  %v1789_v8 = vmul.f32 %v7816_v44, %v9468_v38  ;;  %v1807_v53 = vadd.f32 %v6710_v49, %v1797_v43  ;;  %v1845_v38 = vld [vmem:[%s10407_s15] sm:$0x7]  ;;  %s734_s15 = scalar_lea.vmem [#allocation19], %s6668_s23 }
 0x6eb   : > { %v7818_v3 = vpop.eup %7817  ;;  %v1854_v21 = vrot.slane %v1845_v38, %v8856_v52  ;;  %v1858_v11 = vrot.slane %v1845_v38, %v8871_v61  ;;  %v1850_v13 = vrot.slane %v1845_v38, %v8853_v51 }
 0x6ec   : > { %v1808_v28 = vadd.f32 %v6710_v49, %v1798_v45  ;;  %v1790_v16 = vmul.f32 %v7818_v3, %v9473_v54  ;;  %v1799_v20 = vmul.f32 %v6709_v41, %v1789_v8 }
 0x6ee   : > { %v1811_v60 = vpack.c.bf16 %v1808_v28, %v1807_v53  ;;  %v1800_v57 = vmul.f32 %v6709_v41, %v1790_v16  ;;  %v1809_v14 = vadd.f32 %v6710_v49, %v1799_v20 }
 0x6f0   : > { %2023 = vmatmul.mubr.bf16.vlgmr.msra.gmra.mrb[4].mxu0 %v1811_v60  ;;  %7090 = vmatprep.mubr.bf16.mxu1 %v1811_v60  ;;  %v1810_v24 = vadd.f32 %v6710_v49, %v1800_v57 }
 0x6f1   : > { %2032 = vmatprep.mubr.bf16.mxu0 %v8343_v19 }
 0x6f2   : > { %v1812_v23 = vpack.c.bf16 %v1810_v24, %v1809_v14 }
 0x6f4   : > { %7091 = vmatmul.mubr.bf16.vlgmr.msra.gmra.mrb[4].mxu1 %v1812_v23 }
 0x6f5   : > { %7096 = vmatprep.mubr.msk.bf16.mxu1 %vm8345_vm7, %v8344_v46 }
 0x6f8   : > { %2033 = vmatmul.mubr.bf16.gmra.mrb[8].mxu0 %v1812_v23 }
 0x6f9   : > { %7114 = vmatprep.mubr.msk.bf16.mxu0 %vm8345_vm7, %v8344_v46 }
 0x7c3   : > { %v2024_v54 = vpop.f32.mrb[4].mxu0 }
 0x7c4   : > { %v2026_v37 = vpop.f32.mrb[5].mxu0  ;;  %v2025_v33 = vadd.f32 %v2024_v54, %v1850_v13 }
 0x7c5   : > { %v2027_v56 = vadd.f32 %v2026_v37, %v1854_v21  ;;  %v2028_v10 = vpop.f32.mrb[6].mxu0 }
 0x7c6   : > { %v2030_v58 = vpop.f32.mrb[7].mxu0  ;;  %v9504_v40 = vpack.c.bf16 %v2025_v33, %v2025_v33  ;;  %v2029_v27 = vadd.f32 %v2028_v10, %v1850_v13 }
 0x7c7   : > { %v9493_v17 = vpack.c.bf16 %v2027_v56, %v2027_v56  ;;  %v7092_v42 = vpop.f32.mrb[4].mxu1  ;;  %v2031_v2 = vadd.f32 %v2030_v58, %v1854_v21 }
 0x7c8   : > { %v9495_v7 = vadd.f32 %v7092_v42, %v1858_v11  ;;  %v2077_v6 = vpop.f32.mrb[5].mxu1  ;;  %v9520_v25 = vpack.c.bf16 %v2029_v27, %v2029_v27 }
 0x7c9   : > { %v7093_v48 = vpop.f32.mrb[6].mxu1  ;;  %v2109_v52 = vsel %vm2104_vm12, %v9493_v17, 0  ;;  %v9502_v19 = vpack.c.bf16 %v2031_v2, %v2031_v2  ;;  %v2078_v31 = vadd.f32 %v2077_v6, %v1858_v11 }
 0x7ca   : > { %v9499_v18 = vadd.f32 %v7093_v48, %v1858_v11  ;;  %v2080_v61 = vpop.f32.mrb[7].mxu1  ;;  %7095 = vmatpush3.bf16.xpose.msra.mxu1 %v2109_v52 }
 0x7cb   : > { %v2034_v59 = vpop.f32.mrb[8].mxu0  ;;  %7100 = vmatprep.subr.bf16.mxu1 %v8344_v46  ;;  %v2155_v47 = vsel %vm2104_vm12, %v9502_v19, 0  ;;  %v2081_v34 = vadd.f32 %v2080_v61, %v1858_v11  ;;  %v9539_v15 = vpack.c.bf16 %v2078_v31, %v2078_v31 }
 0x7cc   : > { %v2036_v51 = vpop.f32.mrb[9].mxu0  ;;  %v2035_v55 = vadd.f32 %v2034_v59, %v1850_v13 }
 0x7cd   : > { %v2038_v22 = vpop.f32.mrb[10].mxu0  ;;  %v2037_v50 = vadd.f32 %v2036_v51, %v1854_v21  ;;  %v9522_v29 = vpack.c.bf16 %v2081_v34, %v2081_v34  ;;  %v2355_v5 = vsel %vm2353_vm13, %v9539_v15, 0 }
 0x7ce   : > { %v2040_v36 = vpop.f32.mrb[11].mxu0  ;;  %v2039_v12 = vadd.f32 %v2038_v22, %v1850_v13  ;;  %v9542_v62 = vpack.c.bf16 %v2035_v55, %v2035_v55 }
 0x7cf   : > { %v2041_v4 = vadd.f32 %v2040_v36, %v1854_v21  ;;  %v9517_v32 = vpack.c.bf16 %v2037_v50, %v2037_v50  ;;  %v2401_v41 = vsel %vm2353_vm13, %v9522_v29, 0 }
 0x7d0   : > { %v9524_v63 = vpack.c.bf16 %v2039_v12, %v2039_v12 }
 0x7d1   : > { %v9506_v26 = vpack.c.bf16 %v2041_v4, %v2041_v4  ;;  %7097 = vmatmul.mubr.msk.bf16.vlgmr.msra.gmra.mrb[8].mxu1 %vm2104_vm12, %v9504_v40  ;;  %v2201_v39 = vsel %vm2104_vm12, %v9517_v32, 0 }
 0x7d2   : > { %7101 = vmatpush3.bf16.xpose.msra.mxu1 %v2155_v47  ;;  %7102 = vmatprep.mubr.msk.bf16.mxu1 %vm8345_vm7, %v8344_v46 }
 0x7d3   : > { %v2247_v9 = vsel %vm2104_vm12, %v9506_v26, 0  ;;  %7106 = vmatprep.subr.bf16.mxu1 %v8344_v46 }
 0x7d4   : > { %7113 = vmatpush3.bf16.xpose.msra.mxu0 %v2247_v9 }
 0x7d5   : > { %7124 = vmatprep.subr.bf16.mxu0 %v8344_v46 }
 0x7d9   : > { %7103 = vmatmul.mubr.msk.bf16.vlgmr.msra.gmra.mrb[12].mxu1 %vm2104_vm12, %v9520_v25 }
 0x7da   : > { %7107 = vmatpush3.bf16.xpose.msra.mxu1 %v2201_v39  ;;  %7108 = vmatprep.mubr.msk.bf16.mxu1 %vm8345_vm7, %v8344_v46 }
 0x7db   : > { %7115 = vmatmul.mubr.msk.bf16.vlgmr.msra.gmra.mrb[12].mxu0 %vm2104_vm12, %v9524_v63  ;;  %7118 = vmatprep.subr.bf16.mxu1 %v8344_v46 }
 0x7dc   : > { %7125 = vmatpush3.bf16.msra.mxu0 %v2401_v41  ;;  %7126 = vmatprep.mubr.msk.bf16.mxu0 %vm8345_vm7, %v8344_v46 }
 0x7dd   : > { %7136 = vmatprep.subr.bf16.mxu0 %v8344_v46 }
 0x7e1   : > { %7109 = vmatmul.mubr.msk.bf16.vlgmr.msra.gmra.mrb[16].mxu1 %vm2104_vm12, %v9542_v62 }
 0x7e2   : > { %7119 = vmatpush3.bf16.msra.mxu1 %v2355_v5  ;;  %7120 = vmatprep.mubr.msk.bf16.mxu1 %vm8345_vm7, %v8344_v46 }
 0x7e3   : > { %7130 = vmatprep.subr.bf16.mxu1 %v8344_v46 }
 0x8a4   : > { %v2145_v43 = vpop.f32.mrb[8].mxu1 }
 0x8a5   : > { %v7098_v44 = vpop.f32.mrb[9].mxu1  ;;  %v2290_v49 = vsel %vm2289_vm11, %v2145_v43, -inf }
 0x8a6   : > { %2291 = vmax.xlane.f32.xlu0 %v2290_v49  ;;  %v2148_v45 = vpop.f32.mrb[10].mxu1  ;;  %v9577_v44 = vpack.c.bf16 %v9495_v7, %v9495_v7  ;;  %v9587_v7 = vpack.c.bf16 %v9499_v18, %v9499_v18 }
 0x8a7   : > { %v7099_v8 = vpop.f32.mrb[11].mxu1 }
 0x8ac   : > { %v2191_v3 = vpop.f32.mrb[12].mxu1 }
 0x8ad   : > { %v7104_v53 = vpop.f32.mrb[13].mxu1  ;;  %v2293_v28 = vsel %vm2289_vm11, %v2191_v3, -inf }
 0x8ae   : > { %2294 = vmax.xlane.f32.xlu1 %v2293_v28  ;;  %v2194_v16 = vpop.f32.mrb[14].mxu1  ;;  %v2283_v20 = vpop.f32.mrb[12].mxu0  ;;  %v2447_v28 = vsel %vm2353_vm13, %v9577_v44, 0 }
 0x8af   : > { %v7105_v60 = vpop.f32.mrb[15].mxu1  ;;  %v7116_v57 = vpop.f32.mrb[13].mxu0  ;;  %v2299_v23 = vsel %vm2289_vm11, %v2283_v20, -inf }
 0x8b0   : > { %v2286_v14 = vpop.f32.mrb[14].mxu0 }
 0x8b1   : > { %v7117_v24 = vpop.f32.mrb[15].mxu0 }
 0x8b2   : > { %2300 = vmax.xlane.f32.xlu1 %v2299_v23 }
 0x8b4   : > { %v2237_v38 = vpop.f32.mrb[16].mxu1 }
 0x8b5   : > { %v7110_v21 = vpop.f32.mrb[17].mxu1  ;;  %v2296_v54 = vsel %vm2289_vm11, %v2237_v38, -inf }
 0x8b6   : > { %2297 = vmax.xlane.f32.xlu0 %v2296_v54  ;;  %v2240_v37 = vpop.f32.mrb[18].mxu1 }
 0x8b7   : > { %v7111_v11 = vpop.f32.mrb[19].mxu1 }
 0x8b8   : > { %v2493_v11 = vsel %vm2353_vm13, %v9587_v7, 0 }
 0x933   : > { %v2292_v56 = vpop.xlane.xlu0 %2291 }
 0x934   : > { %v2302_v10 = vsub.f32 %v2145_v43, %v2292_v56 }
 0x936   : > { %v2306_v58 = vmul.f32 1.442695, %v2302_v10 }
 0x938   : > { %7819 = vpow2.f32 %v2306_v58 }
 0x93b   : > { %v2295_v13 = vpop.xlane.xlu1 %2294 }
 0x93c   : > { %v2303_v42 = vsub.f32 %v2191_v3, %v2295_v13 }
 0x93e   : > { %v2308_v6 = vmul.f32 1.442695, %v2303_v42 }
 0x93f   : > { %v2301_v2 = vpop.xlane.xlu1 %2300 }
 0x940   : > { %7821 = vpow2.f32 %v2308_v6  ;;  %v2305_v48 = vsub.f32 %v2283_v20, %v2301_v2 }
 0x942   : > { %v7820_v52 = vpop.eup %7819  ;;  %v2312_v61 = vmul.f32 1.442695, %v2305_v48 }
 0x943   : > { %v2298_v33 = vpop.xlane.xlu0 %2297  ;;  %v2314_v59 = vsel %vm2289_vm11, %v7820_v52, 0.0 }
 0x944   : > { %7823 = vpow2.f32 %v2312_v61  ;;  %v2304_v51 = vsub.f32 %v2237_v38, %v2298_v33  ;;  %2315 = vadd.xlane.f32.xlu0 %v2314_v59 }
 0x946   : > { %v2310_v22 = vmul.f32 1.442695, %v2304_v51 }
 0x948   : > { %7825 = vpow2.f32 %v2310_v22 }
 0x94a   : > { %v7822_v36 = vpop.eup %7821 }
 0x94b   : > { %v2317_v4 = vsel %vm2289_vm11, %v7822_v36, 0.0 }
 0x94c   : > { %2318 = vadd.xlane.f32.xlu1 %v2317_v4 }
 0x94e   : > { %v7824_v50 = vpop.eup %7823 }
 0x94f   : > { %v2323_v47 = vsel %vm2289_vm11, %v7824_v50, 0.0 }
 0x950   : > { %2324 = vadd.xlane.f32.xlu1 %v2323_v47 }
 0x952   : > { %v7826_v27 = vpop.eup %7825 }
 0x953   : > { %v2320_v34 = vsel %vm2289_vm11, %v7826_v27, 0.0 }
 0x954   : > { %2321 = vadd.xlane.f32.xlu0 %v2320_v34 }
 0x961   : > { %2595 = vrot.lane.b32.xlu1 %v9502_v19, %s8346_s24 }
 0x965   : > { %2540 = vrot.lane.b32.xlu1 %v9504_v40, %s8346_s24 }
 0x969   : > { %2592 = vrot.lane.b32.xlu1 %v9520_v25, %s8346_s24 }
 0x96a   : > { %2543 = vrot.lane.b32.xlu0 %v9493_v17, %s8346_s24 }
 0x96d   : > { %2699 = vrot.lane.b32.xlu1 %v9506_v26, %s8346_s24 }
 0x96e   : > { %2647 = vrot.lane.b32.xlu0 %v9517_v32, %s8346_s24 }
 0x971   : > { %2696 = vrot.lane.b32.xlu1 %v9524_v63, %s8346_s24 }
 0x972   : > { %2644 = vrot.lane.b32.xlu0 %v9542_v62, %s8346_s24 }
 0x9d1   : > { %v2316_v9 = vpop.xlane.xlu0 %2315 }
 0x9d2   : > { %7827 = vrcp.f32 %v2316_v9 }
 0x9d9   : > { %v2319_v12 = vpop.xlane.xlu1 %2318 }
 0x9da   : > { %7829 = vrcp.f32 %v2319_v12 }
 0x9dc   : > { %v7828_v31 = vpop.eup %7827 }
 0x9dd   : > { %v2330_v39 = vmul.f32 %v7828_v31, %v2316_v9  ;;  %v2325_v55 = vpop.xlane.xlu1 %2324 }
 0x9de   : > { %7831 = vrcp.f32 %v2325_v55 }
 0x9df   : > { %v2334_v41 = vsub.f32 2.0, %v2330_v39 }
 0x9e1   : > { %v2338_v5 = vmul.f32 %v7828_v31, %v2334_v41  ;;  %v2322_v43 = vpop.xlane.xlu0 %2321  ;;  %v2596_v24 = vpop.permute.xlu1 %2595 }
 0x9e2   : > { %7833 = vrcp.f32 %v2322_v43 }
 0x9e3   : > { %v2342_v49 = vmul.f32 %v7820_v52, %v2338_v5  ;;  %v2601_v52 = vsel %vm2104_vm12, %v2596_v24, 0 }
 0x9e4   : > { %v7830_v45 = vpop.eup %7829 }
 0x9e5   : > { %v2346_v8 = vpack.c.bf16 %v2342_v49, %v2342_v49  ;;  %v2331_v3 = vmul.f32 %v7830_v45, %v2319_v12  ;;  %v2541_v10 = vpop.permute.xlu1 %2540  ;;  %v2544_v13 = vpop.permute.xlu0 %2543 }
 0x9e6   : > { %v2549_v2 = vsel %vm2104_vm12, %v2544_v13, 0 }
 0x9e7   : > { %v2335_v53 = vsub.f32 2.0, %v2331_v3  ;;  %7121 = vmatmul.mubr.msk.bf16.vlgmr.msra.gmra.mrb[20].mxu1 %vm2289_vm11, %v2346_v8 }
 0x9e8   : > { %v7832_v16 = vpop.eup %7831  ;;  %7131 = vmatpush3.bf16.msra.mxu1 %v2447_v28  ;;  %7132 = vmatprep.mubr.msk.bf16.mxu1 %vm8345_vm7, %v8344_v46 }
 0x9e9   : > { %v2339_v20 = vmul.f32 %v7830_v45, %v2335_v53  ;;  %v2333_v60 = vmul.f32 %v7832_v16, %v2325_v55  ;;  %7142 = vmatprep.subr.bf16.mxu1 %v8344_v46  ;;  %v2593_v48 = vpop.permute.xlu1 %2592  ;;  %v2648_v61 = vpop.permute.xlu0 %2647 }
 0x9ea   : > { %v2653_v59 = vsel %vm2104_vm12, %v2648_v61, 0 }
 0x9eb   : > { %v2343_v57 = vmul.f32 %v7822_v36, %v2339_v20  ;;  %v2337_v14 = vsub.f32 2.0, %v2333_v60 }
 0x9ec   : > { %v7834_v23 = vpop.eup %7833 }
 0x9ed   : > { %v2347_v38 = vpack.c.bf16 %v2343_v57, %v2343_v57  ;;  %v2341_v21 = vmul.f32 %v7832_v16, %v2337_v14  ;;  %v2332_v54 = vmul.f32 %v7834_v23, %v2322_v43  ;;  %v2700_v33 = vpop.permute.xlu1 %2699  ;;  %v2645_v22 = vpop.permute.xlu0 %2644 }
 0x9ee   : > { %v2705_v51 = vsel %vm2104_vm12, %v2700_v33, 0 }
 0x9ef   : > { %v2336_v37 = vsub.f32 2.0, %v2332_v54  ;;  %7127 = vmatmul.mubr.msk.bf16.vlgmr.msra.gmra.mrb[16].mxu0 %vm2289_vm11, %v2347_v38  ;;  %v2345_v56 = vmul.f32 %v7824_v50, %v2341_v21 }
 0x9f0   : > { %7137 = vmatpush3.bf16.msra.mxu0 %v2493_v11  ;;  %7138 = vmatprep.mubr.msk.bf16.mxu0 %vm8345_vm7, %v8344_v46 }
 0x9f1   : > { %v2340_v18 = vmul.f32 %v7834_v23, %v2336_v37  ;;  %7148 = vmatprep.subr.bf16.mxu0 %v8344_v46  ;;  %v2349_v42 = vpack.c.bf16 %v2345_v56, %v2345_v56  ;;  %v2697_v36 = vpop.permute.xlu1 %2696 }
 0x9f3   : > { %v2344_v58 = vmul.f32 %v7826_v27, %v2340_v18 }
 0x9f5   : > { %v2348_v6 = vpack.c.bf16 %v2344_v58, %v2344_v58 }
 0x9f7   : > { %7133 = vmatmul.mubr.msk.bf16.vlgmr.msra.gmra.mrb[24].mxu1 %vm2289_vm11, %v2348_v6  ;;  %7139 = vmatmul.mubr.msk.bf16.vlgmr.msra.gmra.mrb[20].mxu0 %vm2289_vm11, %v2349_v42 }
 0x9f8   : > { %7143 = vmatpush3.bf16.xpose.msra.mxu1 %v2549_v2  ;;  %7144 = vmatprep.mubr.msk.bf16.mxu1 %vm8345_vm7, %v8344_v46 }
 0x9f9   : > { %7149 = vmatpush3.bf16.xpose.msra.mxu0 %v2601_v52  ;;  %7150 = vmatprep.mubr.msk.bf16.mxu0 %vm8345_vm7, %v8344_v46 }
 0x9fa   : > { %7154 = vmatprep.subr.bf16.mxu1 %v8344_v46  ;;  %7160 = vmatprep.subr.bf16.mxu0 %v8344_v46 }
 0x9ff   : > { %7145 = vmatmul.mubr.msk.bf16.vlgmr.msra.gmra.mrb[28].mxu1 %vm2104_vm12, %v2541_v10 }
 0xa00   : > { %7151 = vmatmul.mubr.msk.bf16.vlgmr.msra.gmra.mrb[24].mxu0 %vm2104_vm12, %v2593_v48  ;;  %7155 = vmatpush3.bf16.xpose.msra.mxu1 %v2653_v59 }
 0xa01   : > { %7161 = vmatpush3.bf16.xpose.msra.mxu0 %v2705_v51  ;;  %7156 = vmatprep.mubr.msk.bf16.mxu1 %vm8345_vm7, %v8344_v46 }
 0xa02   : > { %7162 = vmatprep.mubr.msk.bf16.mxu0 %vm8345_vm7, %v8344_v46  ;;  %7172 = vmatprep.subr.bf16.mxu0 %v8344_v46 }
 0xa03   : > { %7166 = vmatprep.subr.bf16.mxu1 %v8344_v46 }
 0xa07   : > { %7157 = vmatmul.mubr.msk.bf16.vlgmr.msra.gmra.mrb[32].mxu1 %vm2104_vm12, %v2645_v22 }
 0xa08   : > { %7163 = vmatmul.mubr.msk.bf16.vlgmr.msra.gmra.mrb[28].mxu0 %vm2104_vm12, %v2697_v36  ;;  %7168 = vmatprep.mubr.msk.bf16.mxu1 %vm8345_vm7, %v8344_v46 }
 0xa09   : > { %7174 = vmatprep.mubr.msk.bf16.mxu0 %vm8345_vm7, %v8344_v46 }
 0xaba   : > { %v9621_v4 = vpop.f32.mrb[20].mxu1 }
 0xabb   : > { %v7122_v50 = vpop.f32.mrb[21].mxu1 }
 0xabc   : > { %v2394_v47 = vpop.f32.mrb[22].mxu1 }
 0xabd   : > { %v7123_v27 = vpop.f32.mrb[23].mxu1 }
 0xac2   : > { %v9623_v34 = vpop.f32.mrb[16].mxu0 }
 0xac3   : > { %v2535_v9 = vpack.c.bf16 %v9623_v34, %v9621_v4  ;;  %v7128_v12 = vpop.f32.mrb[17].mxu0 }
 0xac4   : > { %v2440_v31 = vpop.f32.mrb[18].mxu0 }
 0xac5   : > { %v7129_v39 = vpop.f32.mrb[19].mxu0 }
 0xaca   : > { %v9627_v55 = vpop.f32.mrb[24].mxu1  ;;  %v9629_v41 = vpop.f32.mrb[20].mxu0 }
 0xacb   : > { %v2536_v5 = vpack.c.bf16 %v9629_v41, %v9627_v55  ;;  %v7134_v43 = vpop.f32.mrb[25].mxu1  ;;  %v7140_v49 = vpop.f32.mrb[21].mxu0 }
 0xacc   : > { %v2486_v45 = vpop.f32.mrb[26].mxu1  ;;  %v2532_v8 = vpop.f32.mrb[22].mxu0 }
 0xacd   : > { %v7135_v3 = vpop.f32.mrb[27].mxu1  ;;  %v7141_v53 = vpop.f32.mrb[23].mxu0 }
 0xad2   : > { %v2585_v28 = vpop.f32.mrb[28].mxu1 }
 0xad3   : > { %v2637_v16 = vpop.f32.mrb[24].mxu0  ;;  %v7146_v20 = vpop.f32.mrb[29].mxu1  ;;  %v2747_v60 = vsel %vm2289_vm11, %v2585_v28, -inf }
 0xad4   : > { %v7152_v57 = vpop.f32.mrb[25].mxu0  ;;  %v2750_v14 = vsel %vm2289_vm11, %v2637_v16, -inf  ;;  %2748 = vmax.xlane.f32.xlu0 %v2747_v60  ;;  %v2588_v24 = vpop.f32.mrb[30].mxu1 }
 0xad5   : > { %2751 = vmax.xlane.f32.xlu1 %v2750_v14  ;;  %v2640_v23 = vpop.f32.mrb[26].mxu0  ;;  %v7147_v38 = vpop.f32.mrb[31].mxu1 }
 0xad6   : > { %v7153_v21 = vpop.f32.mrb[27].mxu0 }
 0xada   : > { %v2689_v54 = vpop.f32.mrb[32].mxu1 }
 0xadb   : > { %v2741_v37 = vpop.f32.mrb[28].mxu0  ;;  %v7158_v11 = vpop.f32.mrb[33].mxu1  ;;  %v2753_v56 = vsel %vm2289_vm11, %v2689_v54, -inf }
 0xadc   : > { %v7164_v18 = vpop.f32.mrb[29].mxu0  ;;  %2754 = vmax.xlane.f32.xlu0 %v2753_v56  ;;  %v2692_v10 = vpop.f32.mrb[34].mxu1  ;;  %v2756_v6 = vsel %vm2289_vm11, %v2741_v37, -inf }
 0xadd   : > { %v2744_v58 = vpop.f32.mrb[30].mxu0  ;;  %v7159_v13 = vpop.f32.mrb[35].mxu1 }
 0xade   : > { %v7165_v42 = vpop.f32.mrb[31].mxu0 }
 0xae0   : > { %2757 = vmax.xlane.f32.xlu0 %v2756_v6 }
 0xb61   : > { %v2749_v2 = vpop.xlane.xlu0 %2748 }
 0xb62   : > { %v2752_v48 = vpop.xlane.xlu1 %2751  ;;  %v2759_v52 = vsub.f32 %v2585_v28, %v2749_v2 }
 0xb63   : > { %v2760_v61 = vsub.f32 %v2637_v16, %v2752_v48 }
 0xb64   : > { %v2763_v33 = vmul.f32 1.442695, %v2759_v52 }
 0xb65   : > { %v2765_v59 = vmul.f32 1.442695, %v2760_v61 }
 0xb66   : > { %7835 = vpow2.f32 %v2763_v33 }
 0xb67   : > { %7837 = vpow2.f32 %v2765_v59 }
 0xb69   : > { %v2755_v51 = vpop.xlane.xlu0 %2754 }
 0xb6a   : > { %v2761_v22 = vsub.f32 %v2689_v54, %v2755_v51 }
 0xb6c   : > { %v2767_v36 = vmul.f32 1.442695, %v2761_v22 }
 0xb6d   : > { %v2758_v43 = vpop.xlane.xlu0 %2757 }
 0xb6e   : > { %7839 = vpow2.f32 %v2767_v36  ;;  %v2762_v49 = vsub.f32 %v2741_v37, %v2758_v43 }
 0xb70   : > { %v7836_v50 = vpop.eup %7835  ;;  %v2769_v45 = vmul.f32 1.442695, %v2762_v49 }
 0xb71   : > { %v7838_v47 = vpop.eup %7837  ;;  %v2771_v27 = vsel %vm2289_vm11, %v7836_v50, 0.0 }
 0xb72   : > { %v2774_v12 = vsel %vm2289_vm11, %v7838_v47, 0.0  ;;  %2772 = vadd.xlane.f32.xlu0 %v2771_v27  ;;  %7841 = vpow2.f32 %v2769_v45 }
 0xb73   : > { %2775 = vadd.xlane.f32.xlu1 %v2774_v12 }
 0xb78   : > { %v7840_v31 = vpop.eup %7839 }
 0xb79   : > { %v2777_v39 = vsel %vm2289_vm11, %v7840_v31, 0.0 }
 0xb7a   : > { %2778 = vadd.xlane.f32.xlu0 %v2777_v39 }
 0xb7c   : > { %v7842_v8 = vpop.eup %7841 }
 0xb7d   : > { %v2780_v3 = vsel %vm2289_vm11, %v7842_v8, 0.0 }
 0xb84   : > { %2857 = vrot.lane.b32.xlu1 %v9522_v29, %s8346_s24 }
 0xb88   : > { %2906 = vrot.lane.b32.xlu1 %v9577_v44, %s8346_s24 }
 0xb90   : > { %2808 = vrot.lane.b32.xlu0 %v9539_v15, %s8346_s24 }
 0xb94   : > { %3131 = vrot.lane.b32.xlu0 %v9493_v17, %s8347_s12 }
 0xb98   : > { %3181 = vrot.lane.b32.xlu0 %v9502_v19, %s8347_s12 }
 0xb9c   : > { %3231 = vrot.lane.b32.xlu0 %v9517_v32, %s8347_s12 }
 0xba0   : > { %3229 = vrot.lane.b32.xlu0 %v9542_v62, %s8347_s12 }
 0xbac   : > { %2781 = vadd.xlane.f32.xlu1 %v2780_v3 }
 0xbbd   : > { %2955 = vrot.lane.b32.xlu1 %v9587_v7, %s8346_s24  ;;  %s8349_s24 = smov 64  }
 0xbc1   : > { %3129 = vrot.lane.b32.xlu1 %v9504_v40, %s8347_s12 }
 0xbc5   : > { %3179 = vrot.lane.b32.xlu1 %v9520_v25, %s8347_s12 }
 0xbc9   : > { %3281 = vrot.lane.b32.xlu1 %v9506_v26, %s8347_s12 }
 0xbcd   : > { %3279 = vrot.lane.b32.xlu1 %v9524_v63, %s8347_s12 }
 0xbff   : > { %v2773_v53 = vpop.xlane.xlu0 %2772 }
 0xc00   : > { %v2776_v28 = vpop.xlane.xlu1 %2775  ;;  %7843 = vrcp.f32 %v2773_v53 }
 0xc01   : > { %7845 = vrcp.f32 %v2776_v28 }
 0xc04   : > { %v2858_v16 = vpop.permute.xlu1 %2857 }
 0xc05   : > { %v2863_v20 = vsel %vm2353_vm13, %v2858_v16, 0 }
 0xc06   : > { %7173 = vmatpush3.bf16.msra.mxu0 %v2863_v20 }
 0xc07   : > { %v2779_v60 = vpop.xlane.xlu0 %2778  ;;  %7184 = vmatprep.subr.bf16.mxu0 %v8344_v46 }
 0xc08   : > { %7847 = vrcp.f32 %v2779_v60  ;;  %v2907_v13 = vpop.permute.xlu1 %2906 }
 0xc09   : > { %v2912_v48 = vsel %vm2353_vm13, %v2907_v13, 0 }
 0xc0a   : > { %v7844_v57 = vpop.eup %7843 }
 0xc0b   : > { %v7846_v14 = vpop.eup %7845  ;;  %v2787_v24 = vmul.f32 %v7844_v57, %v2773_v53  ;;  %v2809_v23 = vpop.permute.xlu0 %2808 }
 0xc0c   : > { %v2788_v38 = vmul.f32 %v7846_v14, %v2776_v28  ;;  %v2814_v21 = vsel %vm2353_vm13, %v2809_v23, 0 }
 0xc0d   : > { %v2791_v54 = vsub.f32 2.0, %v2787_v24  ;;  %7167 = vmatpush3.bf16.msra.mxu1 %v2814_v21 }
 0xc0e   : > { %v2792_v37 = vsub.f32 2.0, %v2788_v38  ;;  %7178 = vmatprep.subr.bf16.mxu1 %v8344_v46 }
 0xc0f   : > { %v2795_v11 = vmul.f32 %v7844_v57, %v2791_v54  ;;  %v3132_v43 = vpop.permute.xlu0 %3131  ;;  %v7780_v57 = vld [vmem:[%s10408_s11] sm:$0xff]  }
 0xc10   : > { %v2796_v56 = vmul.f32 %v7846_v14, %v2792_v37 }
 0xc11   : > { %v2799_v18 = vmul.f32 %v7836_v50, %v2795_v11 }
 0xc12   : > { %v7848_v10 = vpop.eup %7847  ;;  %v2800_v58 = vmul.f32 %v7838_v47, %v2796_v56 }
 0xc13   : > { %v2803_v42 = vpack.c.bf16 %v2799_v18, %v2799_v18  ;;  %v2789_v6 = vmul.f32 %v7848_v10, %v2779_v60  ;;  %v3182_v3 = vpop.permute.xlu0 %3181  ;;  %v7779_v60 = vld [vmem:[%s10408_s11 + $0x8] sm:$0xff]  }
 0xc14   : > { %v2804_v2 = vpack.c.bf16 %v2800_v58, %v2800_v58  ;;  %v3187_v28 = vsel %vm2104_vm12, %v3182_v3, 0 }
 0xc15   : > { %v2793_v52 = vsub.f32 2.0, %v2789_v6  ;;  %7169 = vmatmul.mubr.msk.bf16.vlgmr.msra.gmra.mrb[36].mxu1 %vm2289_vm11, %v2803_v42 }
 0xc16   : > { %7175 = vmatmul.mubr.msk.bf16.vlgmr.msra.gmra.mrb[32].mxu0 %vm2289_vm11, %v2804_v2  ;;  %7179 = vmatpush3.bf16.msra.mxu1 %v2912_v48 }
 0xc17   : > { %v2797_v61 = vmul.f32 %v7848_v10, %v2793_v52  ;;  %7180 = vmatprep.mubr.msk.bf16.mxu1 %vm8345_vm7, %v8344_v46  ;;  %7186 = vmatprep.mubr.msk.bf16.mxu0 %vm8345_vm7, %v8344_v46 }
 0xc18   : > { %7190 = vmatprep.subr.bf16.mxu1 %v7779_v60 }
 0xc19   : > { %v2801_v33 = vmul.f32 %v7840_v31, %v2797_v61  ;;  %v3137_v31 = vsel %vm2104_vm12, %v3132_v43, 0 }
 0xc1b   : > { %v2805_v59 = vpack.c.bf16 %v2801_v33, %v2801_v33 }
 0xc1d   : > { %7181 = vmatmul.mubr.msk.bf16.vlgmr.msra.gmra.mrb[40].mxu1 %vm2289_vm11, %v2805_v59 }
 0xc1e   : > { %7191 = vmatpush3.bf16.msra.mxu1 %v7779_v60 }
 0xc1f   : > { %7196 = vmatprep.subr.bf16.mxu1 %v7780_v57 }
 0xc39   : > { %v2782_v51 = vpop.xlane.xlu1 %2781 }
 0xc3a   : > { %7849 = vrcp.f32 %v2782_v51 }
 0xc3d   : > { %v2956_v22 = vpop.permute.xlu1 %2955 }
 0xc3e   : > { %v2961_v36 = vsel %vm2353_vm13, %v2956_v22, 0 }
 0xc3f   : > { %7185 = vmatpush3.bf16.msra.mxu0 %v2961_v36  ;;  %v3232_v36 = vpop.permute.xlu0 %3231 }
 0xc40   : > { %7202 = vmatprep.subr.bf16.mxu0 %v8344_v46 }
 0xc41   : > { %v3130_v45 = vpop.permute.xlu1 %3129 }
 0xc44   : > { %v7850_v50 = vpop.eup %7849 }
 0xc45   : > { %v2790_v47 = vmul.f32 %v7850_v50, %v2782_v51  ;;  %v3180_v53 = vpop.permute.xlu1 %3179 }
 0xc47   : > { %v2794_v27 = vsub.f32 2.0, %v2790_v47 }
 0xc49   : > { %v2798_v12 = vmul.f32 %v7850_v50, %v2794_v27  ;;  %v3237_v50 = vsel %vm2104_vm12, %v3232_v36, 0 }
 0xc4b   : > { %v2802_v39 = vmul.f32 %v7842_v8, %v2798_v12  ;;  %v3282_v8 = vpop.permute.xlu1 %3281  ;;  %v3230_v12 = vpop.permute.xlu0 %3229 }
 0xc4c   : > { %v3287_v16 = vsel %vm2104_vm12, %v3282_v8, 0 }
 0xc4d   : > { %v2806_v49 = vpack.c.bf16 %v2802_v39, %v2802_v39 }
 0xc4f   : > { %7187 = vmatmul.mubr.msk.bf16.vlgmr.msra.gmra.mrb[36].mxu0 %vm2289_vm11, %v2806_v49  ;;  %v3280_v20 = vpop.permute.xlu1 %3279 }
 0xc50   : > { %7203 = vmatpush3.bf16.xpose.msra.mxu0 %v3137_v31  ;;  %7204 = vmatprep.mubr.msk.bf16.mxu0 %vm8345_vm7, %v8344_v46 }
 0xc51   : > { %7208 = vmatprep.subr.bf16.mxu0 %v8344_v46 }
 0xc57   : > { %7205 = vmatmul.mubr.msk.bf16.vlgmr.msra.gmra.mrb[40].mxu0 %vm2104_vm12, %v3130_v45 }
 0xc58   : > { %7209 = vmatpush3.bf16.xpose.msra.mxu0 %v3187_v28  ;;  %7210 = vmatprep.mubr.msk.bf16.mxu0 %vm8345_vm7, %v8344_v46 }
 0xc59   : > { %7220 = vmatprep.subr.bf16.mxu0 %v8344_v46 }
 0xc5f   : > { %7211 = vmatmul.mubr.msk.bf16.vlgmr.msra.gmra.mrb[44].mxu0 %vm2104_vm12, %v3180_v53 }
 0xc60   : > { %7221 = vmatpush3.bf16.xpose.msra.mxu0 %v3287_v16  ;;  %7222 = vmatprep.mubr.msk.bf16.mxu0 %vm8345_vm7, %v8344_v46 }
 0xc61   : > { %7232 = vmatprep.subr.bf16.mxu0 %v8344_v46 }
 0xc67   : > { %7223 = vmatmul.mubr.msk.bf16.vlgmr.msra.gmra.mrb[48].mxu0 %vm2104_vm12, %v3280_v20 }
 0xc68   : > { %7234 = vmatprep.mubr.msk.bf16.mxu0 %vm8345_vm7, %v8344_v46 }
 0xce8   : > { %v2850_v14 = vpop.f32.mrb[36].mxu1 }
 0xce9   : > { %v2899_v24 = vpop.f32.mrb[32].mxu0  ;;  %v7170_v23 = vpop.f32.mrb[37].mxu1 }
 0xcea   : > { %v3003_v38 = vpack.c.bf16 %v2899_v24, %v2850_v14  ;;  %v7176_v21 = vpop.f32.mrb[33].mxu0  ;;  %v2853_v54 = vpop.f32.mrb[38].mxu1 }
 0xceb   : > { %v2902_v37 = vpop.f32.mrb[34].mxu0  ;;  %v7171_v11 = vpop.f32.mrb[39].mxu1 }
 0xcec   : > { %v7177_v56 = vpop.f32.mrb[35].mxu0  ;;  %7192 = vmatprep.mubr.msk.bf16.mxu1 %vm2104_vm12, %v3003_v38 }
 0xcf0   : > { %v2948_v18 = vpop.f32.mrb[40].mxu1 }
 0xcf1   : > { %v7182_v10 = vpop.f32.mrb[41].mxu1 }
 0xcf2   : > { %v2951_v58 = vpop.f32.mrb[42].mxu1 }
 0xcf3   : > { %v7183_v13 = vpop.f32.mrb[43].mxu1 }
 0xd22   : > { %v2997_v42 = vpop.f32.mrb[36].mxu0 }
 0xd23   : > { %v3004_v6 = vpack.c.bf16 %v2997_v42, %v2948_v18  ;;  %v7188_v2 = vpop.f32.mrb[37].mxu0 }
 0xd24   : > { %v3000_v48 = vpop.f32.mrb[38].mxu0 }
 0xd25   : > { %v7189_v52 = vpop.f32.mrb[39].mxu0  ;;  %7193 = vmatmul.mubr.msk.bf16.vlgmr.msra.gmra.mrb[44].mxu1 %vm2104_vm12, %v3004_v6 }
 0xd26   : > { %7198 = vmatprep.mubr.msk.bf16.mxu1 %vm2104_vm12, %v2535_v9  ;;  %7197 = vmatpush3.bf16.msra.mxu1 %v7780_v57 }
 0xd27   : > { %7214 = vmatprep.subr.bf16.mxu1 %v8344_v46 }
 0xd2a   : > { %v3173_v61 = vpop.f32.mrb[40].mxu0 }
 0xd2b   : > { %v7206_v33 = vpop.f32.mrb[41].mxu0  ;;  %v3329_v59 = vsel %vm2289_vm11, %v3173_v61, -inf }
 0xd2c   : > { %3330 = vmax.xlane.f32.xlu0 %v3329_v59  ;;  %v3176_v51 = vpop.f32.mrb[42].mxu0 }
 0xd2d   : > { %v7207_v22 = vpop.f32.mrb[43].mxu0 }
 0xd31   : > { %7199 = vmatmul.mubr.msk.bf16.vlgmr.msra.gmra.mrb[44].mxu1 %vm2104_vm12, %v2536_v5 }
 0xd32   : > { %7215 = vmatpush3.bf16.xpose.msra.mxu1 %v3237_v50  ;;  %v3223_v4 = vpop.f32.mrb[44].mxu0  ;;  %7216 = vmatprep.mubr.msk.bf16.mxu1 %vm8345_vm7, %v8344_v46 }
 0xd33   : > { %v7212_v34 = vpop.f32.mrb[45].mxu0  ;;  %v3332_v9 = vsel %vm2289_vm11, %v3223_v4, -inf  ;;  %7226 = vmatprep.subr.bf16.mxu1 %v8344_v46 }
 0xd34   : > { %3333 = vmax.xlane.f32.xlu1 %v3332_v9  ;;  %v3226_v47 = vpop.f32.mrb[46].mxu0 }
 0xd35   : > { %v7213_v27 = vpop.f32.mrb[47].mxu0 }
 0xd39   : > { %7217 = vmatmul.mubr.msk.bf16.vlgmr.msra.gmra.mrb[48].mxu1 %vm2104_vm12, %v3230_v12 }
 0xd3a   : > { %v3323_v39 = vpop.f32.mrb[48].mxu0  ;;  %7228 = vmatprep.mubr.msk.bf16.mxu1 %vm8345_vm7, %v8344_v46 }
 0xd3b   : > { %v7224_v55 = vpop.f32.mrb[49].mxu0  ;;  %v3338_v24 = vsel %vm2289_vm11, %v3323_v39, -inf }
 0xd3c   : > { %v3326_v41 = vpop.f32.mrb[50].mxu0 }
 0xd3d   : > { %v7225_v5 = vpop.f32.mrb[51].mxu0 }
 0xdb9   : > { %v3331_v53 = vpop.xlane.xlu0 %3330 }
 0xdba   : > { %v3341_v28 = vsub.f32 %v3173_v61, %v3331_v53 }
 0xdbc   : > { %v3345_v8 = vmul.f32 1.442695, %v3341_v28 }
 0xdc1   : > { %v3334_v43 = vpop.xlane.xlu1 %3333 }
 0xdc2   : > { %v3342_v49 = vsub.f32 %v3223_v4, %v3334_v43 }
 0xdc4   : > { %v3347_v31 = vmul.f32 1.442695, %v3342_v49 }
 0xdc6   : > { %7851 = vpow2.f32 %v3347_v31 }
 0xdc7   : > { %7853 = vpow2.f32 %v3345_v8 }
 0xdd0   : > { %v9723_v45 = vpop.eup %7851 }
 0xdd1   : > { %v3356_v3 = vsel %vm2289_vm11, %v9723_v45, 0.0  ;;  %v7854_v23 = vpop.eup %7853 }
 0xdd2   : > { %3357 = vadd.xlane.f32.xlu1 %v3356_v3  ;;  %v3353_v38 = vsel %vm2289_vm11, %v7854_v23, 0.0 }
 0xe0c   : > { %v3273_v16 = vpop.f32.mrb[48].mxu1 }
 0xe0d   : > { %v7218_v20 = vpop.f32.mrb[49].mxu1  ;;  %v3335_v60 = vsel %vm2289_vm11, %v3273_v16, -inf }
 0xe0e   : > { %3336 = vmax.xlane.f32.xlu0 %v3335_v60  ;;  %v3276_v57 = vpop.f32.mrb[50].mxu1 }
 0xe0f   : > { %v7219_v14 = vpop.f32.mrb[51].mxu1 }
 0xe12   : > { %3339 = vmax.xlane.f32.xlu0 %v3338_v24 }
 0xe16   : > { %3354 = vadd.xlane.f32.xlu0 %v3353_v38 }
 0xe5f   : > { %v3358_v2 = vpop.xlane.xlu1 %3357 }
 0xe9b   : > { %v3337_v21 = vpop.xlane.xlu0 %3336 }
 0xe9c   : > { %v3343_v54 = vsub.f32 %v3273_v16, %v3337_v21 }
 0xe9e   : > { %v3349_v37 = vmul.f32 1.442695, %v3343_v54 }
 0xe9f   : > { %v3340_v11 = vpop.xlane.xlu0 %3339 }
 0xea0   : > { %7855 = vpow2.f32 %v3349_v37  ;;  %v3344_v56 = vsub.f32 %v3323_v39, %v3340_v11 }
 0xea2   : > { %v3351_v18 = vmul.f32 1.442695, %v3344_v56 }
 0xea3   : > { %v3355_v6 = vpop.xlane.xlu0 %3354 }
 0xea4   : > { %7857 = vpow2.f32 %v3351_v18  ;;  %v7781_v18 = vld [vmem:[%s10408_s11 + $0x10] sm:$0xff]  }
 0xea5   : > { %7859 = vrcp.f32 %v3355_v6 }
 0xea6   : > { %7861 = vrcp.f32 %v3358_v2 }
 0xeaa   : > { %v7856_v10 = vpop.eup %7855 }
 0xeab   : > { %v3359_v58 = vsel %vm2289_vm11, %v7856_v10, 0.0 }
 0xeac   : > { %3360 = vadd.xlane.f32.xlu0 %v3359_v58 }
 0xeae   : > { %v9731_v13 = vpop.eup %7857 }
 0xeaf   : > { %v3362_v42 = vsel %vm2289_vm11, %v9731_v13, 0.0  ;;  %v7860_v48 = vpop.eup %7859 }
 0xeb0   : > { %3363 = vadd.xlane.f32.xlu1 %v3362_v42  ;;  %v3369_v52 = vmul.f32 %v7860_v48, %v3355_v6  ;;  %v7862_v61 = vpop.eup %7861 }
 0xeb1   : > { %v3370_v33 = vmul.f32 %v7862_v61, %v3358_v2 }
 0xeb2   : > { %v3373_v59 = vsub.f32 2.0, %v3369_v52 }
 0xeb3   : > { %v3374_v51 = vsub.f32 2.0, %v3370_v33 }
 0xeb4   : > { %v3377_v22 = vmul.f32 %v7860_v48, %v3373_v59 }
 0xeb5   : > { %v3378_v50 = vmul.f32 %v7862_v61, %v3374_v51 }
 0xeb6   : > { %v3381_v4 = vmul.f32 %v7854_v23, %v3377_v22 }
 0xeb7   : > { %v3382_v27 = vmul.f32 %v9723_v45, %v3378_v50 }
 0xeb8   : > { %v3385_v12 = vpack.c.bf16 %v3381_v4, %v3381_v4 }
 0xeb9   : > { %v3386_v5 = vpack.c.bf16 %v3382_v27, %v3382_v27 }
 0xec1   : > { %3437 = vrot.lane.b32.xlu1 %v9522_v29, %s8347_s12 }
 0xec2   : > { %3389 = vrot.lane.b32.xlu0 %v9539_v15, %s8347_s12 }
 0xec5   : > { %3485 = vrot.lane.b32.xlu1 %v9577_v44, %s8347_s12 }
 0xec6   : > { %3652 = vrot.lane.b32.xlu0 %v9493_v17, %s8348_s17 }
 0xec9   : > { %3533 = vrot.lane.b32.xlu1 %v9587_v7, %s8347_s12  ;;  %s10410_s12 = sld [smem:[#allocation34_spill]] }
 0xeca   : > { %3650 = vrot.lane.b32.xlu0 %v9504_v40, %s8348_s17 }
 0xecd   : > { %3702 = vrot.lane.b32.xlu1 %v9502_v19, %s8348_s17 }
 0xece   : > { %3752 = vrot.lane.b32.xlu0 %v9517_v32, %s8348_s17 }
 0xed1   : > { %3700 = vrot.lane.b32.xlu1 %v9520_v25, %s8348_s17 }
 0xed2   : > { %3750 = vrot.lane.b32.xlu0 %v9542_v62, %s8348_s17 }
 0xed5   : > { %3802 = vrot.lane.b32.xlu1 %v9506_v26, %s8348_s17 }
 0xed9   : > { %3800 = vrot.lane.b32.xlu1 %v9524_v63, %s8348_s17 }
 0xf39   : > { %v3361_v36 = vpop.xlane.xlu0 %3360 }
 0xf3a   : > { %7863 = vrcp.f32 %v3361_v36 }
 0xf3d   : > { %v3364_v34 = vpop.xlane.xlu1 %3363  ;;  %v3390_v9 = vpop.permute.xlu0 %3389 }
 0xf3e   : > { %7865 = vrcp.f32 %v3364_v34  ;;  %v3395_v47 = vsel %vm2353_vm13, %v3390_v9, 0 }
 0xf3f   : > { %7227 = vmatpush3.bf16.msra.mxu1 %v3395_v47 }
 0xf40   : > { %7238 = vmatprep.subr.bf16.mxu1 %v8344_v46 }
 0xf41   : > { %v3438_v39 = vpop.permute.xlu1 %3437  ;;  %v3653_v57 = vpop.permute.xlu0 %3652 }
 0xf42   : > { %v3443_v55 = vsel %vm2353_vm13, %v3438_v39, 0  ;;  %7229 = vmatmul.mubr.msk.bf16.vlgmr.msra.gmra.mrb[52].mxu1 %vm2289_vm11, %v3385_v12  ;;  %v3658_v54 = vsel %vm2104_vm12, %v3653_v57, 0 }
 0xf43   : > { %7233 = vmatpush3.bf16.msra.mxu0 %v3443_v55  ;;  %7240 = vmatprep.mubr.msk.bf16.mxu1 %vm8345_vm7, %v8344_v46 }
 0xf44   : > { %v7864_v41 = vpop.eup %7863  ;;  %7244 = vmatprep.subr.bf16.mxu0 %v8344_v46 }
 0xf45   : > { %v3371_v43 = vmul.f32 %v7864_v41, %v3361_v36  ;;  %v3486_v49 = vpop.permute.xlu1 %3485  ;;  %v3651_v21 = vpop.permute.xlu0 %3650 }
 0xf46   : > { %v3491_v31 = vsel %vm2353_vm13, %v3486_v49, 0  ;;  %7235 = vmatmul.mubr.msk.bf16.vlgmr.msra.gmra.mrb[52].mxu0 %vm2289_vm11, %v3386_v5 }
 0xf47   : > { %v3375_v45 = vsub.f32 2.0, %v3371_v43  ;;  %7239 = vmatpush3.bf16.msra.mxu1 %v3491_v31  ;;  %7246 = vmatprep.mubr.msk.bf16.mxu0 %vm8345_vm7, %v8344_v46 }
 0xf48   : > { %v7866_v3 = vpop.eup %7865  ;;  %7250 = vmatprep.subr.bf16.mxu1 %v7781_v18 }
 0xf49   : > { %v3379_v53 = vmul.f32 %v7864_v41, %v3375_v45  ;;  %v3372_v28 = vmul.f32 %v7866_v3, %v3364_v34  ;;  %v3534_v8 = vpop.permute.xlu1 %3533  ;;  %v3753_v37 = vpop.permute.xlu0 %3752 }
 0xf4a   : > { %v3539_v16 = vsel %vm2353_vm13, %v3534_v8, 0  ;;  %v3758_v11 = vsel %vm2104_vm12, %v3753_v37, 0 }
 0xf4b   : > { %v3383_v20 = vmul.f32 %v7856_v10, %v3379_v53  ;;  %v3376_v60 = vsub.f32 2.0, %v3372_v28  ;;  %7245 = vmatpush3.bf16.msra.mxu0 %v3539_v16 }
 0xf4c   : > { %7256 = vmatprep.subr.bf16.mxu0 %v8344_v46 }
 0xf4d   : > { %v3387_v14 = vpack.c.bf16 %v3383_v20, %v3383_v20  ;;  %v3380_v24 = vmul.f32 %v7866_v3, %v3376_v60  ;;  %v3751_v56 = vpop.permute.xlu0 %3750  ;;  %v3703_v33 = vpop.permute.xlu1 %3702 }
 0xf4e   : > { %v3708_v27 = vsel %vm2104_vm12, %v3703_v33, 0 }
 0xf4f   : > { %v3384_v23 = vmul.f32 %v9731_v13, %v3380_v24  ;;  %7241 = vmatmul.mubr.msk.bf16.vlgmr.msra.gmra.mrb[56].mxu1 %vm2289_vm11, %v3387_v14 }
 0xf50   : > { %7251 = vmatpush3.bf16.msra.mxu1 %v7781_v18 }
 0xf51   : > { %v3388_v38 = vpack.c.bf16 %v3384_v23, %v3384_v23  ;;  %7262 = vmatprep.subr.bf16.mxu1 %v8344_v46  ;;  %v3701_v9 = vpop.permute.xlu1 %3700 }
 0xf53   : > { %7247 = vmatmul.mubr.msk.bf16.vlgmr.msra.gmra.mrb[56].mxu0 %vm2289_vm11, %v3388_v38 }
 0xf54   : > { %7257 = vmatpush3.bf16.xpose.msra.mxu0 %v3658_v54  ;;  %7258 = vmatprep.mubr.msk.bf16.mxu0 %vm8345_vm7, %v8344_v46 }
 0xf55   : > { %7268 = vmatprep.subr.bf16.mxu0 %v8344_v46  ;;  %v3803_v39 = vpop.permute.xlu1 %3802 }
 0xf56   : > { %v3808_v49 = vsel %vm2104_vm12, %v3803_v39, 0 }
 0xf59   : > { %v3801_v28 = vpop.permute.xlu1 %3800 }
 0xf5b   : > { %7259 = vmatmul.mubr.msk.bf16.vlgmr.msra.gmra.mrb[60].mxu0 %vm2104_vm12, %v3651_v21 }
 0xf5c   : > { %7269 = vmatpush3.bf16.xpose.msra.mxu0 %v3758_v11  ;;  %7270 = vmatprep.mubr.msk.bf16.mxu0 %vm8345_vm7, %v8344_v46 }
 0xf5d   : > { %7280 = vmatprep.subr.bf16.mxu0 %v8344_v46 }
 0xf63   : > { %7271 = vmatmul.mubr.msk.bf16.vlgmr.msra.gmra.mrb[64].mxu0 %vm2104_vm12, %v3751_v56 }
 0xf64   : > { %7282 = vmatprep.mubr.msk.bf16.mxu0 %vm8345_vm7, %v8344_v46 }
0x1015   : > { %v3431_v10 = vpop.f32.mrb[52].mxu1 }
0x1016   : > { %v7230_v58 = vpop.f32.mrb[53].mxu1 }
0x1017   : > { %v3434_v13 = vpop.f32.mrb[54].mxu1 }
0x1018   : > { %v7231_v42 = vpop.f32.mrb[55].mxu1 }
0x1019   : > { %v3479_v6 = vpop.f32.mrb[52].mxu0 }
0x101a   : > { %v3581_v2 = vpack.c.bf16 %v3479_v6, %v3431_v10  ;;  %v7236_v48 = vpop.f32.mrb[53].mxu0 }
0x101b   : > { %v3482_v52 = vpop.f32.mrb[54].mxu0 }
0x101c   : > { %v7237_v61 = vpop.f32.mrb[55].mxu0  ;;  %7252 = vmatprep.mubr.msk.bf16.mxu1 %vm2104_vm12, %v3581_v2 }
0x1022   : > { %v3527_v59 = vpop.f32.mrb[56].mxu1 }
0x1023   : > { %v7242_v51 = vpop.f32.mrb[57].mxu1 }
0x1024   : > { %v3530_v22 = vpop.f32.mrb[58].mxu1 }
0x1025   : > { %v7243_v36 = vpop.f32.mrb[59].mxu1 }
0x1026   : > { %v3575_v50 = vpop.f32.mrb[56].mxu0 }
0x1027   : > { %v3582_v4 = vpack.c.bf16 %v3575_v50, %v3527_v59  ;;  %v7248_v34 = vpop.f32.mrb[57].mxu0 }
0x1028   : > { %v3578_v47 = vpop.f32.mrb[58].mxu0 }
0x1029   : > { %v7249_v12 = vpop.f32.mrb[59].mxu0  ;;  %7253 = vmatmul.mubr.msk.bf16.vlgmr.msra.gmra.mrb[44].mxu1 %vm2104_vm12, %v3582_v4 }
0x102a   : > { %7263 = vmatpush3.bf16.xpose.msra.mxu1 %v3708_v27  ;;  %7264 = vmatprep.mubr.msk.bf16.mxu1 %vm8345_vm7, %v8344_v46 }
0x102b   : > { %7274 = vmatprep.subr.bf16.mxu1 %v8344_v46 }
0x102e   : > { %v3694_v55 = vpop.f32.mrb[60].mxu0 }
0x102f   : > { %v7260_v41 = vpop.f32.mrb[61].mxu0  ;;  %v3850_v5 = vsel %vm2289_vm11, %v3694_v55, -inf }
0x1030   : > { %3851 = vmax.xlane.f32.xlu0 %v3850_v5  ;;  %v3697_v43 = vpop.f32.mrb[62].mxu0 }
0x1031   : > { %v7261_v31 = vpop.f32.mrb[63].mxu0  ;;  %7265 = vmatmul.mubr.msk.bf16.vlgmr.msra.gmra.mrb[60].mxu1 %vm2104_vm12, %v3701_v9 }
0x1032   : > { %7275 = vmatpush3.bf16.xpose.msra.mxu1 %v3808_v49  ;;  %7276 = vmatprep.mubr.msk.bf16.mxu1 %vm8345_vm7, %v8344_v46 }
0x1033   : > { %7286 = vmatprep.subr.bf16.mxu1 %v8344_v46 }
0x1036   : > { %v3794_v45 = vpop.f32.mrb[64].mxu0 }
0x1037   : > { %v7272_v3 = vpop.f32.mrb[65].mxu0  ;;  %v3856_v53 = vsel %vm2289_vm11, %v3794_v45, -inf }
0x1038   : > { %3857 = vmax.xlane.f32.xlu0 %v3856_v53  ;;  %v3797_v8 = vpop.f32.mrb[66].mxu0 }
0x1039   : > { %v7273_v16 = vpop.f32.mrb[67].mxu0  ;;  %7277 = vmatmul.mubr.msk.bf16.vlgmr.msra.gmra.mrb[64].mxu1 %vm2104_vm12, %v3801_v28 }
0x103a   : > { %7288 = vmatprep.mubr.msk.bf16.mxu1 %vm8345_vm7, %v8344_v46 }
0x10bd   : > { %v3852_v20 = vpop.xlane.xlu0 %3851 }
0x10be   : > { %v3862_v60 = vsub.f32 %v3694_v55, %v3852_v20 }
0x10c0   : > { %v3866_v14 = vmul.f32 1.442695, %v3862_v60 }
0x10c2   : > { %7867 = vpow2.f32 %v3866_v14 }
0x10c5   : > { %v3858_v57 = vpop.xlane.xlu0 %3857 }
0x10c6   : > { %v3864_v24 = vsub.f32 %v3794_v45, %v3858_v57 }
0x10c8   : > { %v3870_v23 = vmul.f32 1.442695, %v3864_v24 }
0x10ca   : > { %7869 = vpow2.f32 %v3870_v23 }
0x10cc   : > { %v7868_v58 = vpop.eup %7867 }
0x10cd   : > { %v3874_v6 = vsel %vm2289_vm11, %v7868_v58, 0.0 }
0x10d4   : > { %v7870_v2 = vpop.eup %7869 }
0x10d5   : > { %v3880_v48 = vsel %vm2289_vm11, %v7870_v2, 0.0 }
0x1104   : > { %v3744_v38 = vpop.f32.mrb[60].mxu1 }
0x1105   : > { %v7266_v21 = vpop.f32.mrb[61].mxu1  ;;  %v3853_v54 = vsel %vm2289_vm11, %v3744_v38, -inf }
0x1106   : > { %3854 = vmax.xlane.f32.xlu1 %v3853_v54  ;;  %v3747_v37 = vpop.f32.mrb[62].mxu1 }
0x1107   : > { %v7267_v11 = vpop.f32.mrb[63].mxu1 }
0x110c   : > { %v3844_v56 = vpop.f32.mrb[64].mxu1 }
0x110d   : > { %v7278_v18 = vpop.f32.mrb[65].mxu1  ;;  %v3859_v10 = vsel %vm2289_vm11, %v3844_v56, -inf }
0x110e   : > { %3860 = vmax.xlane.f32.xlu0 %v3859_v10  ;;  %v3847_v13 = vpop.f32.mrb[66].mxu1 }
0x110f   : > { %v7279_v42 = vpop.f32.mrb[67].mxu1 }
0x1112   : > { %3875 = vadd.xlane.f32.xlu0 %v3874_v6 }
0x1116   : > { %3881 = vadd.xlane.f32.xlu0 %v3880_v48 }
0x1117   : > { %3958 = vrot.lane.b32.xlu1 %v9522_v29, %s8348_s17 }
0x111b   : > { %4006 = vrot.lane.b32.xlu1 %v9577_v44, %s8348_s17 }
0x112c   : > { %3910 = vrot.lane.b32.xlu0 %v9539_v15, %s8348_s17 }
0x1130   : > { %4173 = vrot.lane.b32.xlu0 %v9493_v17, %s8349_s24 }
0x1134   : > { %4223 = vrot.lane.b32.xlu0 %v9502_v19, %s8349_s24 }
0x1138   : > { %4273 = vrot.lane.b32.xlu0 %v9517_v32, %s8349_s24 }
0x113c   : > { %4271 = vrot.lane.b32.xlu0 %v9542_v62, %s8349_s24 }
0x1193   : > { %v3855_v52 = vpop.xlane.xlu1 %3854 }
0x1194   : > { %v3863_v61 = vsub.f32 %v3744_v38, %v3855_v52 }
0x1196   : > { %v3868_v33 = vmul.f32 1.442695, %v3863_v61 }
0x1197   : > { %v3959_v59 = vpop.permute.xlu1 %3958 }
0x1198   : > { %7871 = vpow2.f32 %v3868_v33  ;;  %v3964_v51 = vsel %vm2353_vm13, %v3959_v59, 0 }
0x1199   : > { %7287 = vmatpush3.bf16.msra.mxu1 %v3964_v51 }
0x119a   : > { %7298 = vmatprep.subr.bf16.mxu1 %v8344_v46 }
0x119b   : > { %v3861_v22 = vpop.xlane.xlu0 %3860  ;;  %v4007_v28 = vpop.permute.xlu1 %4006 }
0x119c   : > { %v3865_v36 = vsub.f32 %v3844_v56, %v3861_v22  ;;  %v4012_v20 = vsel %vm2353_vm13, %v4007_v28, 0 }
0x119e   : > { %v3872_v50 = vmul.f32 1.442695, %v3865_v36 }
0x119f   : > { %v3876_v4 = vpop.xlane.xlu0 %3875 }
0x11a0   : > { %7873 = vpow2.f32 %v3872_v50 }
0x11a1   : > { %7875 = vrcp.f32 %v3876_v4 }
0x11a2   : > { %v7872_v34 = vpop.eup %7871 }
0x11a3   : > { %v3882_v9 = vpop.xlane.xlu0 %3881  ;;  %v3877_v47 = vsel %vm2289_vm11, %v7872_v34, 0.0 }
0x11a4   : > { %7877 = vrcp.f32 %v3882_v9  ;;  %3878 = vadd.xlane.f32.xlu1 %v3877_v47 }
0x11a7   : > { %v3911_v27 = vpop.permute.xlu0 %3910 }
0x11a8   : > { %v3916_v12 = vsel %vm2353_vm13, %v3911_v27, 0 }
0x11a9   : > { %7281 = vmatpush3.bf16.msra.mxu0 %v3916_v12 }
0x11aa   : > { %v9830_v39 = vpop.eup %7873  ;;  %7292 = vmatprep.subr.bf16.mxu0 %v8344_v46 }
0x11ab   : > { %v7876_v55 = vpop.eup %7875  ;;  %v3883_v41 = vsel %vm2289_vm11, %v9830_v39, 0.0  ;;  %v4174_v14 = vpop.permute.xlu0 %4173 }
0x11ac   : > { %v3890_v5 = vmul.f32 %v7876_v55, %v3876_v4  ;;  %3884 = vadd.xlane.f32.xlu1 %v3883_v41  ;;  %v4179_v24 = vsel %vm2104_vm12, %v4174_v14, 0  ;;  %v7782_v41 = vld [vmem:[%s10408_s11 + $0x18] sm:$0xff]  }
0x11ae   : > { %v7878_v43 = vpop.eup %7877  ;;  %v3894_v49 = vsub.f32 2.0, %v3890_v5 }
0x11af   : > { %v3892_v31 = vmul.f32 %v7878_v43, %v3882_v9  ;;  %v4224_v11 = vpop.permute.xlu0 %4223 }
0x11b0   : > { %v3898_v45 = vmul.f32 %v7876_v55, %v3894_v49 }
0x11b1   : > { %v3896_v3 = vsub.f32 2.0, %v3892_v31 }
0x11b2   : > { %v3902_v53 = vmul.f32 %v7868_v58, %v3898_v45  ;;  %v4229_v58 = vsel %vm2104_vm12, %v4224_v11, 0 }
0x11b3   : > { %v3900_v16 = vmul.f32 %v7878_v43, %v3896_v3 }
0x11b4   : > { %v3906_v8 = vpack.c.bf16 %v3902_v53, %v3902_v53 }
0x11b5   : > { %v3904_v60 = vmul.f32 %v7870_v2, %v3900_v16 }
0x11b6   : > { %7283 = vmatmul.mubr.msk.bf16.vlgmr.msra.gmra.mrb[68].mxu0 %vm2289_vm11, %v3906_v8 }
0x11b7   : > { %7293 = vmatpush3.bf16.msra.mxu0 %v4012_v20  ;;  %7294 = vmatprep.mubr.msk.bf16.mxu0 %vm8345_vm7, %v8344_v46  ;;  %v3908_v57 = vpack.c.bf16 %v3904_v60, %v3904_v60 }
0x11b8   : > { %7310 = vmatprep.subr.bf16.mxu0 %v8344_v46 }
0x11bd   : > { %4054 = vrot.lane.b32.xlu1 %v9587_v7, %s8348_s17  ;;  %s8351_s17 = smov 32  }
0x11be   : > { %7295 = vmatmul.mubr.msk.bf16.vlgmr.msra.gmra.mrb[72].mxu0 %vm2289_vm11, %v3908_v57 }
0x11bf   : > { %7312 = vmatprep.mubr.msk.bf16.mxu0 %vm8345_vm7, %v8344_v46 }
0x11c0   : > { %7311 = vmatpush3.bf16.xpose.msra.mxu0 %v4179_v24 }
0x11c1   : > { %4171 = vrot.lane.b32.xlu1 %v9504_v40, %s8349_s24  ;;  %7316 = vmatprep.subr.bf16.mxu0 %v8344_v46 }
0x11c5   : > { %4221 = vrot.lane.b32.xlu1 %v9520_v25, %s8349_s24 }
0x11c9   : > { %4323 = vrot.lane.b32.xlu1 %v9506_v26, %s8349_s24 }
0x11cd   : > { %4321 = vrot.lane.b32.xlu1 %v9524_v63, %s8349_s24 }
0x1231   : > { %v3879_v23 = vpop.xlane.xlu1 %3878 }
0x1232   : > { %7879 = vrcp.f32 %v3879_v23 }
0x1239   : > { %v3885_v38 = vpop.xlane.xlu1 %3884 }
0x123a   : > { %7881 = vrcp.f32 %v3885_v38 }
0x123c   : > { %v7880_v21 = vpop.eup %7879 }
0x123d   : > { %v3891_v54 = vmul.f32 %v7880_v21, %v3879_v23  ;;  %v4055_v37 = vpop.permute.xlu1 %4054  ;;  %v4274_v23 = vpop.permute.xlu0 %4273 }
0x123e   : > { %v4060_v61 = vsel %vm2353_vm13, %v4055_v37, 0  ;;  %v4279_v11 = vsel %vm2104_vm12, %v4274_v23, 0 }
0x123f   : > { %v3895_v56 = vsub.f32 2.0, %v3891_v54 }
0x1241   : > { %v3899_v18 = vmul.f32 %v7880_v21, %v3895_v56  ;;  %v4172_v10 = vpop.permute.xlu1 %4171 }
0x1242   : > { %7313 = vmatmul.mubr.msk.bf16.vlgmr.msra.gmra.mrb[76].mxu0 %vm2104_vm12, %v4172_v10 }
0x1243   : > { %v3903_v13 = vmul.f32 %v7872_v34, %v3899_v18  ;;  %7317 = vmatpush3.bf16.xpose.msra.mxu0 %v4229_v58  ;;  %7318 = vmatprep.mubr.msk.bf16.mxu0 %vm8345_vm7, %v8344_v46 }
0x1244   : > { %v7882_v42 = vpop.eup %7881  ;;  %7328 = vmatprep.subr.bf16.mxu0 %v8344_v46 }
0x1245   : > { %v3907_v6 = vpack.c.bf16 %v3903_v13, %v3903_v13  ;;  %v3893_v2 = vmul.f32 %v7882_v42, %v3885_v38  ;;  %v4222_v48 = vpop.permute.xlu1 %4221 }
0x1247   : > { %v3897_v52 = vsub.f32 2.0, %v3893_v2  ;;  %7289 = vmatmul.mubr.msk.bf16.vlgmr.msra.gmra.mrb[68].mxu1 %vm2289_vm11, %v3907_v6 }
0x1248   : > { %7299 = vmatpush3.bf16.msra.mxu1 %v4060_v61  ;;  %7300 = vmatprep.mubr.msk.bf16.mxu1 %vm8345_vm7, %v8344_v46 }
0x1249   : > { %v3901_v33 = vmul.f32 %v7882_v42, %v3897_v52  ;;  %v4324_v59 = vpop.permute.xlu1 %4323  ;;  %7304 = vmatprep.subr.bf16.mxu1 %v7782_v41  ;;  %v4272_v42 = vpop.permute.xlu0 %4271 }
0x124a   : > { %v4329_v51 = vsel %vm2104_vm12, %v4324_v59, 0  ;;  %7319 = vmatmul.mubr.msk.bf16.vlgmr.msra.gmra.mrb[80].mxu0 %vm2104_vm12, %v4222_v48 }
0x124b   : > { %v3905_v22 = vmul.f32 %v9830_v39, %v3901_v33  ;;  %7329 = vmatpush3.bf16.xpose.msra.mxu0 %v4329_v51  ;;  %7330 = vmatprep.mubr.msk.bf16.mxu0 %vm8345_vm7, %v8344_v46 }
0x124c   : > { %7340 = vmatprep.subr.bf16.mxu0 %v8344_v46 }
0x124d   : > { %v3909_v36 = vpack.c.bf16 %v3905_v22, %v3905_v22  ;;  %v4322_v50 = vpop.permute.xlu1 %4321 }
0x124f   : > { %7301 = vmatmul.mubr.msk.bf16.vlgmr.msra.gmra.mrb[72].mxu1 %vm2289_vm11, %v3909_v36 }
0x1250   : > { %7305 = vmatpush3.bf16.msra.mxu1 %v7782_v41 }
0x1251   : > { %7322 = vmatprep.subr.bf16.mxu1 %v8344_v46 }
0x1252   : > { %7331 = vmatmul.mubr.msk.bf16.vlgmr.msra.gmra.mrb[84].mxu0 %vm2104_vm12, %v4322_v50 }
0x1253   : > { %7342 = vmatprep.mubr.msk.bf16.mxu0 %vm8345_vm7, %v8344_v46 }
0x1289   : > { %v3952_v4 = vpop.f32.mrb[68].mxu0 }
0x128a   : > { %v7284_v34 = vpop.f32.mrb[69].mxu0 }
0x128b   : > { %v3955_v9 = vpop.f32.mrb[70].mxu0 }
0x128c   : > { %v7285_v47 = vpop.f32.mrb[71].mxu0 }
0x1291   : > { %v4048_v27 = vpop.f32.mrb[72].mxu0 }
0x1292   : > { %v7296_v12 = vpop.f32.mrb[73].mxu0 }
0x1293   : > { %v4051_v39 = vpop.f32.mrb[74].mxu0 }
0x1294   : > { %v7297_v55 = vpop.f32.mrb[75].mxu0 }
0x1315   : > { %v4215_v5 = vpop.f32.mrb[76].mxu0 }
0x1316   : > { %v7314_v43 = vpop.f32.mrb[77].mxu0  ;;  %v4371_v49 = vsel %vm2289_vm11, %v4215_v5, -inf }
0x1317   : > { %4372 = vmax.xlane.f32.xlu0 %v4371_v49  ;;  %v4218_v31 = vpop.f32.mrb[78].mxu0 }
0x1318   : > { %v7315_v45 = vpop.f32.mrb[79].mxu0 }
0x131a   : > { %v4000_v3 = vpop.f32.mrb[68].mxu1 }
0x131b   : > { %v4102_v53 = vpack.c.bf16 %v4000_v3, %v3952_v4  ;;  %v7290_v28 = vpop.f32.mrb[69].mxu1 }
0x131c   : > { %v4003_v8 = vpop.f32.mrb[70].mxu1 }
0x131d   : > { %v7291_v16 = vpop.f32.mrb[71].mxu1  ;;  %7306 = vmatprep.mubr.msk.bf16.mxu1 %vm2104_vm12, %v4102_v53  ;;  %v4265_v20 = vpop.f32.mrb[80].mxu0 }
0x131e   : > { %v7320_v60 = vpop.f32.mrb[81].mxu0  ;;  %v4374_v57 = vsel %vm2289_vm11, %v4265_v20, -inf }
0x131f   : > { %4375 = vmax.xlane.f32.xlu1 %v4374_v57  ;;  %v4268_v14 = vpop.f32.mrb[82].mxu0 }
0x1320   : > { %v7321_v24 = vpop.f32.mrb[83].mxu0 }
0x1322   : > { %v4096_v38 = vpop.f32.mrb[72].mxu1 }
0x1323   : > { %v4103_v21 = vpack.c.bf16 %v4096_v38, %v4048_v27  ;;  %v7302_v54 = vpop.f32.mrb[73].mxu1 }
0x1324   : > { %v4099_v37 = vpop.f32.mrb[74].mxu1 }
0x1325   : > { %v7303_v56 = vpop.f32.mrb[75].mxu1  ;;  %7307 = vmatmul.mubr.msk.bf16.vlgmr.msra.gmra.mrb[44].mxu1 %vm2104_vm12, %v4103_v21  ;;  %v4365_v18 = vpop.f32.mrb[84].mxu0 }
0x1326   : > { %7323 = vmatpush3.bf16.xpose.msra.mxu1 %v4279_v11  ;;  %v7332_v10 = vpop.f32.mrb[85].mxu0  ;;  %7324 = vmatprep.mubr.msk.bf16.mxu1 %vm8345_vm7, %v8344_v46  ;;  %v4380_v9 = vsel %vm2289_vm11, %v4365_v18, -inf }
0x1327   : > { %v4368_v58 = vpop.f32.mrb[86].mxu0  ;;  %7334 = vmatprep.subr.bf16.mxu1 %v8344_v46 }
0x1328   : > { %v7333_v13 = vpop.f32.mrb[87].mxu0 }
0x132d   : > { %7325 = vmatmul.mubr.msk.bf16.vlgmr.msra.gmra.mrb[76].mxu1 %vm2104_vm12, %v4272_v42 }
0x132e   : > { %7336 = vmatprep.mubr.msk.bf16.mxu1 %vm8345_vm7, %v8344_v46 }
0x13a4   : > { %v4373_v33 = vpop.xlane.xlu0 %4372 }
0x13a5   : > { %v4383_v59 = vsub.f32 %v4215_v5, %v4373_v33 }
0x13a7   : > { %v4387_v51 = vmul.f32 1.442695, %v4383_v59 }
0x13ac   : > { %v4376_v6 = vpop.xlane.xlu1 %4375 }
0x13ad   : > { %v4384_v2 = vsub.f32 %v4265_v20, %v4376_v6 }
0x13af   : > { %v4389_v48 = vmul.f32 1.442695, %v4384_v2 }
0x13b1   : > { %7883 = vpow2.f32 %v4389_v48 }
0x13b2   : > { %7885 = vpow2.f32 %v4387_v51 }
0x13bb   : > { %v9889_v52 = vpop.eup %7883 }
0x13bc   : > { %v4398_v61 = vsel %vm2289_vm11, %v9889_v52, 0.0  ;;  %v7886_v47 = vpop.eup %7885 }
0x13bd   : > { %4399 = vadd.xlane.f32.xlu1 %v4398_v61  ;;  %v4395_v27 = vsel %vm2289_vm11, %v7886_v47, 0.0 }
0x1400   : > { %v4315_v22 = vpop.f32.mrb[76].mxu1 }
0x1401   : > { %v7326_v36 = vpop.f32.mrb[77].mxu1  ;;  %v4377_v50 = vsel %vm2289_vm11, %v4315_v22, -inf }
0x1402   : > { %4378 = vmax.xlane.f32.xlu0 %v4377_v50  ;;  %v4318_v4 = vpop.f32.mrb[78].mxu1 }
0x1403   : > { %v7327_v34 = vpop.f32.mrb[79].mxu1 }
0x1406   : > { %4381 = vmax.xlane.f32.xlu0 %v4380_v9 }
0x140a   : > { %4396 = vadd.xlane.f32.xlu0 %v4395_v27 }
0x144a   : > { %v4400_v28 = vpop.xlane.xlu1 %4399 }
0x148f   : > { %v4379_v12 = vpop.xlane.xlu0 %4378 }
0x1490   : > { %v4385_v39 = vsub.f32 %v4315_v22, %v4379_v12 }
0x1492   : > { %v4391_v55 = vmul.f32 1.442695, %v4385_v39 }
0x1493   : > { %v4382_v41 = vpop.xlane.xlu0 %4381 }
0x1494   : > { %7887 = vpow2.f32 %v4391_v55  ;;  %v4386_v5 = vsub.f32 %v4365_v18, %v4382_v41 }
0x1496   : > { %v4393_v43 = vmul.f32 1.442695, %v4386_v5 }
0x1497   : > { %v4397_v53 = vpop.xlane.xlu0 %4396 }
0x1498   : > { %7889 = vpow2.f32 %v4393_v43  ;;  %v7783_v43 = vld [vmem:[%s10408_s11 + $0x20] sm:$0xff]  }
0x1499   : > { %7891 = vrcp.f32 %v4397_v53 }
0x149a   : > { %7893 = vrcp.f32 %v4400_v28 }
0x149e   : > { %v7888_v49 = vpop.eup %7887 }
0x149f   : > { %v4401_v31 = vsel %vm2289_vm11, %v7888_v49, 0.0 }
0x14a0   : > { %4402 = vadd.xlane.f32.xlu0 %v4401_v31 }
0x14a2   : > { %v9897_v45 = vpop.eup %7889 }
0x14a3   : > { %v4404_v3 = vsel %vm2289_vm11, %v9897_v45, 0.0  ;;  %v7892_v8 = vpop.eup %7891 }
0x14a4   : > { %4405 = vadd.xlane.f32.xlu1 %v4404_v3  ;;  %v4411_v16 = vmul.f32 %v7892_v8, %v4397_v53  ;;  %v7894_v20 = vpop.eup %7893 }
0x14a5   : > { %v4412_v60 = vmul.f32 %v7894_v20, %v4400_v28 }
0x14a6   : > { %v4415_v57 = vsub.f32 2.0, %v4411_v16 }
0x14a7   : > { %v4416_v14 = vsub.f32 2.0, %v4412_v60 }
0x14a8   : > { %v4419_v24 = vmul.f32 %v7892_v8, %v4415_v57 }
0x14a9   : > { %v4420_v38 = vmul.f32 %v7894_v20, %v4416_v14 }
0x14aa   : > { %v4423_v21 = vmul.f32 %v7886_v47, %v4419_v24 }
0x14ab   : > { %v4424_v56 = vmul.f32 %v9889_v52, %v4420_v38 }
0x14ac   : > { %v4427_v18 = vpack.c.bf16 %v4423_v21, %v4423_v21 }
0x14ad   : > { %v4428_v42 = vpack.c.bf16 %v4424_v56, %v4424_v56 }
0x14b5   : > { %4479 = vrot.lane.b32.xlu1 %v9522_v29, %s8349_s24 }
0x14b6   : > { %4431 = vrot.lane.b32.xlu0 %v9539_v15, %s8349_s24 }
0x14b9   : > { %4527 = vrot.lane.b32.xlu1 %v9577_v44, %s8349_s24 }
0x14ba   : > { %4694 = vrot.lane.b32.xlu0 %v9493_v17, %s8350_s4 }
0x14bd   : > { %4575 = vrot.lane.b32.xlu1 %v9587_v7, %s8349_s24  ;;  %s8352_s24 = smov 16  }
0x14be   : > { %4692 = vrot.lane.b32.xlu0 %v9504_v40, %s8350_s4 }
0x14c1   : > { %4744 = vrot.lane.b32.xlu1 %v9502_v19, %s8350_s4 }
0x14c2   : > { %4794 = vrot.lane.b32.xlu0 %v9517_v32, %s8350_s4 }
0x14c5   : > { %4742 = vrot.lane.b32.xlu1 %v9520_v25, %s8350_s4 }
0x14c6   : > { %4792 = vrot.lane.b32.xlu0 %v9542_v62, %s8350_s4 }
0x14c9   : > { %4844 = vrot.lane.b32.xlu1 %v9506_v26, %s8350_s4 }
0x14cd   : > { %4842 = vrot.lane.b32.xlu1 %v9524_v63, %s8350_s4 }
0x152d   : > { %v4403_v23 = vpop.xlane.xlu0 %4402 }
0x152e   : > { %7895 = vrcp.f32 %v4403_v23 }
0x1531   : > { %v4406_v54 = vpop.xlane.xlu1 %4405  ;;  %v4432_v37 = vpop.permute.xlu0 %4431 }
0x1532   : > { %7897 = vrcp.f32 %v4406_v54  ;;  %v4437_v11 = vsel %vm2353_vm13, %v4432_v37, 0 }
0x1533   : > { %7335 = vmatpush3.bf16.msra.mxu1 %v4437_v11 }
0x1534   : > { %7346 = vmatprep.subr.bf16.mxu1 %v8344_v46 }
0x1535   : > { %v4480_v10 = vpop.permute.xlu1 %4479  ;;  %v4695_v4 = vpop.permute.xlu0 %4694 }
0x1536   : > { %v4485_v58 = vsel %vm2353_vm13, %v4480_v10, 0  ;;  %7337 = vmatmul.mubr.msk.bf16.vlgmr.msra.gmra.mrb[80].mxu1 %vm2289_vm11, %v4427_v18  ;;  %v4700_v39 = vsel %vm2104_vm12, %v4695_v4, 0 }
0x1537   : > { %7341 = vmatpush3.bf16.msra.mxu0 %v4485_v58  ;;  %7348 = vmatprep.mubr.msk.bf16.mxu1 %vm8345_vm7, %v8344_v46 }
0x1538   : > { %v7896_v13 = vpop.eup %7895  ;;  %7352 = vmatprep.subr.bf16.mxu0 %v8344_v46 }
0x1539   : > { %v4413_v6 = vmul.f32 %v7896_v13, %v4403_v23  ;;  %v4528_v2 = vpop.permute.xlu1 %4527  ;;  %v4693_v12 = vpop.permute.xlu0 %4692 }
0x153a   : > { %v4533_v48 = vsel %vm2353_vm13, %v4528_v2, 0  ;;  %7343 = vmatmul.mubr.msk.bf16.vlgmr.msra.gmra.mrb[88].mxu0 %vm2289_vm11, %v4428_v42 }
0x153b   : > { %v4417_v52 = vsub.f32 2.0, %v4413_v6  ;;  %7347 = vmatpush3.bf16.msra.mxu1 %v4533_v48  ;;  %7354 = vmatprep.mubr.msk.bf16.mxu0 %vm8345_vm7, %v8344_v46 }
0x153c   : > { %v7898_v61 = vpop.eup %7897  ;;  %7358 = vmatprep.subr.bf16.mxu1 %v7783_v43 }
0x153d   : > { %v4421_v33 = vmul.f32 %v7896_v13, %v4417_v52  ;;  %v4414_v59 = vmul.f32 %v7898_v61, %v4406_v54  ;;  %v4576_v51 = vpop.permute.xlu1 %4575  ;;  %v4795_v55 = vpop.permute.xlu0 %4794 }
0x153e   : > { %v4581_v22 = vsel %vm2353_vm13, %v4576_v51, 0  ;;  %v4800_v41 = vsel %vm2104_vm12, %v4795_v55, 0 }
0x153f   : > { %v4425_v36 = vmul.f32 %v7888_v49, %v4421_v33  ;;  %v4418_v50 = vsub.f32 2.0, %v4414_v59  ;;  %7353 = vmatpush3.bf16.msra.mxu0 %v4581_v22 }
0x1540   : > { %7364 = vmatprep.subr.bf16.mxu0 %v8344_v46 }
0x1541   : > { %v4429_v34 = vpack.c.bf16 %v4425_v36, %v4425_v36  ;;  %v4422_v9 = vmul.f32 %v7898_v61, %v4418_v50  ;;  %v4793_v5 = vpop.permute.xlu0 %4792  ;;  %v4745_v60 = vpop.permute.xlu1 %4744 }
0x1542   : > { %v4750_v56 = vsel %vm2104_vm12, %v4745_v60, 0 }
0x1543   : > { %v4426_v47 = vmul.f32 %v9897_v45, %v4422_v9  ;;  %7349 = vmatmul.mubr.msk.bf16.vlgmr.msra.gmra.mrb[84].mxu1 %vm2289_vm11, %v4429_v34 }
0x1544   : > { %7359 = vmatpush3.bf16.msra.mxu1 %v7783_v43 }
0x1545   : > { %v4430_v27 = vpack.c.bf16 %v4426_v47, %v4426_v47  ;;  %7370 = vmatprep.subr.bf16.mxu1 %v8344_v46  ;;  %v4743_v37 = vpop.permute.xlu1 %4742 }
0x1547   : > { %7355 = vmatmul.mubr.msk.bf16.vlgmr.msra.gmra.mrb[92].mxu0 %vm2289_vm11, %v4430_v27 }
0x1548   : > { %7365 = vmatpush3.bf16.xpose.msra.mxu0 %v4700_v39  ;;  %7366 = vmatprep.mubr.msk.bf16.mxu0 %vm8345_vm7, %v8344_v46 }
0x1549   : > { %7376 = vmatprep.subr.bf16.mxu0 %v8344_v46  ;;  %v4845_v10 = vpop.permute.xlu1 %4844 }
0x154a   : > { %v4850_v2 = vsel %vm2104_vm12, %v4845_v10, 0 }
0x154d   : > { %v4843_v59 = vpop.permute.xlu1 %4842 }
0x154f   : > { %7367 = vmatmul.mubr.msk.bf16.vlgmr.msra.gmra.mrb[96].mxu0 %vm2104_vm12, %v4693_v12 }
0x1550   : > { %7377 = vmatpush3.bf16.xpose.msra.mxu0 %v4800_v41  ;;  %7378 = vmatprep.mubr.msk.bf16.mxu0 %vm8345_vm7, %v8344_v46 }
0x1551   : > { %7388 = vmatprep.subr.bf16.mxu0 %v8344_v46 }
0x1557   : > { %7379 = vmatmul.mubr.msk.bf16.vlgmr.msra.gmra.mrb[100].mxu0 %vm2104_vm12, %v4793_v5 }
0x1558   : > { %7390 = vmatprep.mubr.msk.bf16.mxu0 %vm8345_vm7, %v8344_v46 }
0x1609   : > { %v4473_v49 = vpop.f32.mrb[80].mxu1 }
0x160a   : > { %v7338_v31 = vpop.f32.mrb[81].mxu1 }
0x160b   : > { %v4476_v45 = vpop.f32.mrb[82].mxu1 }
0x160c   : > { %v7339_v3 = vpop.f32.mrb[83].mxu1 }
0x160d   : > { %v4521_v53 = vpop.f32.mrb[88].mxu0 }
0x160e   : > { %v4623_v28 = vpack.c.bf16 %v4521_v53, %v4473_v49  ;;  %v7344_v8 = vpop.f32.mrb[89].mxu0 }
0x160f   : > { %v4524_v16 = vpop.f32.mrb[90].mxu0 }
0x1610   : > { %v7345_v20 = vpop.f32.mrb[91].mxu0  ;;  %7360 = vmatprep.mubr.msk.bf16.mxu1 %vm2104_vm12, %v4623_v28 }
0x1616   : > { %v4569_v57 = vpop.f32.mrb[84].mxu1 }
0x1617   : > { %v7350_v14 = vpop.f32.mrb[85].mxu1 }
0x1618   : > { %v4572_v24 = vpop.f32.mrb[86].mxu1 }
0x1619   : > { %v7351_v23 = vpop.f32.mrb[87].mxu1 }
0x161a   : > { %v4617_v38 = vpop.f32.mrb[92].mxu0 }
0x161b   : > { %v4624_v21 = vpack.c.bf16 %v4617_v38, %v4569_v57  ;;  %v7356_v54 = vpop.f32.mrb[93].mxu0 }
0x161c   : > { %v4620_v11 = vpop.f32.mrb[94].mxu0 }
0x161d   : > { %v7357_v18 = vpop.f32.mrb[95].mxu0  ;;  %7361 = vmatmul.mubr.msk.bf16.vlgmr.msra.gmra.mrb[44].mxu1 %vm2104_vm12, %v4624_v21 }
0x161e   : > { %7371 = vmatpush3.bf16.xpose.msra.mxu1 %v4750_v56  ;;  %7372 = vmatprep.mubr.msk.bf16.mxu1 %vm8345_vm7, %v8344_v46 }
0x161f   : > { %7382 = vmatprep.subr.bf16.mxu1 %v8344_v46 }
0x1622   : > { %v4736_v58 = vpop.f32.mrb[96].mxu0 }
0x1623   : > { %v7368_v13 = vpop.f32.mrb[97].mxu0  ;;  %v4892_v42 = vsel %vm2289_vm11, %v4736_v58, -inf }
0x1624   : > { %4893 = vmax.xlane.f32.xlu0 %v4892_v42  ;;  %v4739_v6 = vpop.f32.mrb[98].mxu0 }
0x1625   : > { %v7369_v48 = vpop.f32.mrb[99].mxu0  ;;  %7373 = vmatmul.mubr.msk.bf16.vlgmr.msra.gmra.mrb[88].mxu1 %vm2104_vm12, %v4743_v37 }
0x1626   : > { %7383 = vmatpush3.bf16.xpose.msra.mxu1 %v4850_v2  ;;  %7384 = vmatprep.mubr.msk.bf16.mxu1 %vm8345_vm7, %v8344_v46 }
0x1627   : > { %7394 = vmatprep.subr.bf16.mxu1 %v8344_v46 }
0x162a   : > { %v4836_v52 = vpop.f32.mrb[100].mxu0 }
0x162b   : > { %v7380_v61 = vpop.f32.mrb[101].mxu0  ;;  %v4898_v33 = vsel %vm2289_vm11, %v4836_v52, -inf }
0x162c   : > { %4899 = vmax.xlane.f32.xlu0 %v4898_v33  ;;  %v4839_v51 = vpop.f32.mrb[102].mxu0 }
0x162d   : > { %v7381_v22 = vpop.f32.mrb[103].mxu0  ;;  %7385 = vmatmul.mubr.msk.bf16.vlgmr.msra.gmra.mrb[92].mxu1 %vm2104_vm12, %v4843_v59 }
0x162e   : > { %7396 = vmatprep.mubr.msk.bf16.mxu1 %vm8345_vm7, %v8344_v46 }
0x16b1   : > { %v4894_v36 = vpop.xlane.xlu0 %4893 }
0x16b2   : > { %v4904_v50 = vsub.f32 %v4736_v58, %v4894_v36 }
0x16b4   : > { %v4908_v34 = vmul.f32 1.442695, %v4904_v50 }
0x16b6   : > { %7899 = vpow2.f32 %v4908_v34 }
0x16b9   : > { %v4900_v4 = vpop.xlane.xlu0 %4899 }
0x16ba   : > { %v4906_v9 = vsub.f32 %v4836_v52, %v4900_v4 }
0x16bc   : > { %v4912_v47 = vmul.f32 1.442695, %v4906_v9 }
0x16be   : > { %7901 = vpow2.f32 %v4912_v47 }
0x16c0   : > { %v7900_v31 = vpop.eup %7899 }
0x16c1   : > { %v4916_v53 = vsel %vm2289_vm11, %v7900_v31, 0.0 }
0x16c8   : > { %v7902_v28 = vpop.eup %7901 }
0x16c9   : > { %v4922_v8 = vsel %vm2289_vm11, %v7902_v28, 0.0 }
0x16f8   : > { %v4786_v27 = vpop.f32.mrb[88].mxu1 }
0x16f9   : > { %v7374_v12 = vpop.f32.mrb[89].mxu1  ;;  %v4895_v39 = vsel %vm2289_vm11, %v4786_v27, -inf }
0x16fa   : > { %4896 = vmax.xlane.f32.xlu1 %v4895_v39  ;;  %v4789_v55 = vpop.f32.mrb[90].mxu1 }
0x16fb   : > { %v7375_v41 = vpop.f32.mrb[91].mxu1 }
0x1700   : > { %v4886_v5 = vpop.f32.mrb[92].mxu1 }
0x1701   : > { %v7386_v43 = vpop.f32.mrb[93].mxu1  ;;  %v4901_v49 = vsel %vm2289_vm11, %v4886_v5, -inf }
0x1702   : > { %4902 = vmax.xlane.f32.xlu0 %v4901_v49  ;;  %v4889_v45 = vpop.f32.mrb[94].mxu1 }
0x1703   : > { %v7387_v3 = vpop.f32.mrb[95].mxu1 }
0x1706   : > { %4917 = vadd.xlane.f32.xlu0 %v4916_v53 }
0x170a   : > { %4923 = vadd.xlane.f32.xlu0 %v4922_v8 }
0x170b   : > { %5000 = vrot.lane.b32.xlu1 %v9522_v29, %s8350_s4 }
0x170f   : > { %5048 = vrot.lane.b32.xlu1 %v9577_v44, %s8350_s4 }
0x1720   : > { %4952 = vrot.lane.b32.xlu0 %v9539_v15, %s8350_s4 }
0x1724   : > { %5215 = vrot.lane.b32.xlu0 %v9493_v17, %s8351_s17 }
0x1728   : > { %5265 = vrot.lane.b32.xlu0 %v9502_v19, %s8351_s17 }
0x172c   : > { %5315 = vrot.lane.b32.xlu0 %v9517_v32, %s8351_s17 }
0x1730   : > { %5313 = vrot.lane.b32.xlu0 %v9542_v62, %s8351_s17 }
0x1787   : > { %v4897_v16 = vpop.xlane.xlu1 %4896 }
0x1788   : > { %v4905_v20 = vsub.f32 %v4786_v27, %v4897_v16 }
0x178a   : > { %v4910_v60 = vmul.f32 1.442695, %v4905_v20 }
0x178b   : > { %v5001_v57 = vpop.permute.xlu1 %5000 }
0x178c   : > { %7903 = vpow2.f32 %v4910_v60  ;;  %v5006_v14 = vsel %vm2353_vm13, %v5001_v57, 0 }
0x178d   : > { %7395 = vmatpush3.bf16.msra.mxu1 %v5006_v14 }
0x178e   : > { %7406 = vmatprep.subr.bf16.mxu1 %v8344_v46 }
0x178f   : > { %v4903_v24 = vpop.xlane.xlu0 %4902  ;;  %v5049_v59 = vpop.permute.xlu1 %5048 }
0x1790   : > { %v4907_v23 = vsub.f32 %v4886_v5, %v4903_v24  ;;  %v5054_v36 = vsel %vm2353_vm13, %v5049_v59, 0 }
0x1792   : > { %v4914_v38 = vmul.f32 1.442695, %v4907_v23 }
0x1793   : > { %v4918_v21 = vpop.xlane.xlu0 %4917 }
0x1794   : > { %7905 = vpow2.f32 %v4914_v38 }
0x1795   : > { %7907 = vrcp.f32 %v4918_v21 }
0x1796   : > { %v7904_v54 = vpop.eup %7903 }
0x1797   : > { %v4924_v37 = vpop.xlane.xlu0 %4923  ;;  %v4919_v11 = vsel %vm2289_vm11, %v7904_v54, 0.0 }
0x1798   : > { %7909 = vrcp.f32 %v4924_v37  ;;  %4920 = vadd.xlane.f32.xlu1 %v4919_v11 }
0x179b   : > { %v4953_v56 = vpop.permute.xlu0 %4952 }
0x179c   : > { %v4958_v18 = vsel %vm2353_vm13, %v4953_v56, 0 }
0x179d   : > { %7389 = vmatpush3.bf16.msra.mxu0 %v4958_v18 }
0x179e   : > { %v9996_v10 = vpop.eup %7905  ;;  %7400 = vmatprep.subr.bf16.mxu0 %v8344_v46 }
0x179f   : > { %v7908_v58 = vpop.eup %7907  ;;  %v4925_v13 = vsel %vm2289_vm11, %v9996_v10, 0.0  ;;  %v5216_v34 = vpop.permute.xlu0 %5215 }
0x17a0   : > { %v4932_v42 = vmul.f32 %v7908_v58, %v4918_v21  ;;  %4926 = vadd.xlane.f32.xlu1 %v4925_v13  ;;  %v5221_v9 = vsel %vm2104_vm12, %v5216_v34, 0  ;;  %v7784_v13 = vld [vmem:[%s10408_s11 + $0x28] sm:$0xff]  }
0x17a2   : > { %v7910_v6 = vpop.eup %7909  ;;  %v4936_v2 = vsub.f32 2.0, %v4932_v42 }
0x17a3   : > { %v4934_v48 = vmul.f32 %v7910_v6, %v4924_v37  ;;  %v5266_v41 = vpop.permute.xlu0 %5265 }
0x17a4   : > { %v4940_v52 = vmul.f32 %v7908_v58, %v4936_v2 }
0x17a5   : > { %v4938_v61 = vsub.f32 2.0, %v4934_v48 }
0x17a6   : > { %v4944_v33 = vmul.f32 %v7900_v31, %v4940_v52  ;;  %v5271_v31 = vsel %vm2104_vm12, %v5266_v41, 0 }
0x17a7   : > { %v4942_v22 = vmul.f32 %v7910_v6, %v4938_v61 }
0x17a8   : > { %v4948_v51 = vpack.c.bf16 %v4944_v33, %v4944_v33 }
0x17a9   : > { %v4946_v50 = vmul.f32 %v7902_v28, %v4942_v22 }
0x17aa   : > { %7391 = vmatmul.mubr.msk.bf16.vlgmr.msra.gmra.mrb[104].mxu0 %vm2289_vm11, %v4948_v51 }
0x17ab   : > { %7401 = vmatpush3.bf16.msra.mxu0 %v5054_v36  ;;  %7402 = vmatprep.mubr.msk.bf16.mxu0 %vm8345_vm7, %v8344_v46  ;;  %v4950_v4 = vpack.c.bf16 %v4946_v50, %v4946_v50 }
0x17ac   : > { %7418 = vmatprep.subr.bf16.mxu0 %v8344_v46 }
0x17b1   : > { %5096 = vrot.lane.b32.xlu1 %v9587_v7, %s8350_s4  ;;  %s10413_s4 = sld [smem:[#allocation37_spill]] }
0x17b2   : > { %7403 = vmatmul.mubr.msk.bf16.vlgmr.msra.gmra.mrb[108].mxu0 %vm2289_vm11, %v4950_v4 }
0x17b3   : > { %7420 = vmatprep.mubr.msk.bf16.mxu0 %vm8345_vm7, %v8344_v46 }
0x17b4   : > { %7419 = vmatpush3.bf16.xpose.msra.mxu0 %v5221_v9 }
0x17b5   : > { %5213 = vrot.lane.b32.xlu1 %v9504_v40, %s8351_s17  ;;  %7424 = vmatprep.subr.bf16.mxu0 %v8344_v46 }
0x17b9   : > { %5263 = vrot.lane.b32.xlu1 %v9520_v25, %s8351_s17 }
0x17bd   : > { %5365 = vrot.lane.b32.xlu1 %v9506_v26, %s8351_s17 }
0x17c1   : > { %5363 = vrot.lane.b32.xlu1 %v9524_v63, %s8351_s17 }
0x1825   : > { %v4921_v47 = vpop.xlane.xlu1 %4920 }
0x1826   : > { %7911 = vrcp.f32 %v4921_v47 }
0x182d   : > { %v4927_v27 = vpop.xlane.xlu1 %4926 }
0x182e   : > { %7913 = vrcp.f32 %v4927_v27 }
0x1830   : > { %v7912_v12 = vpop.eup %7911 }
0x1831   : > { %v4933_v39 = vmul.f32 %v7912_v12, %v4921_v47  ;;  %v5097_v55 = vpop.permute.xlu1 %5096  ;;  %v5316_v47 = vpop.permute.xlu0 %5315 }
0x1832   : > { %v5102_v20 = vsel %vm2353_vm13, %v5097_v55, 0  ;;  %v5321_v41 = vsel %vm2104_vm12, %v5316_v47, 0 }
0x1833   : > { %v4937_v5 = vsub.f32 2.0, %v4933_v39 }
0x1835   : > { %v4941_v43 = vmul.f32 %v7912_v12, %v4937_v5  ;;  %v5214_v49 = vpop.permute.xlu1 %5213 }
0x1836   : > { %7421 = vmatmul.mubr.msk.bf16.vlgmr.msra.gmra.mrb[112].mxu0 %vm2104_vm12, %v5214_v49 }
0x1837   : > { %v4945_v45 = vmul.f32 %v7904_v54, %v4941_v43  ;;  %7425 = vmatpush3.bf16.xpose.msra.mxu0 %v5271_v31  ;;  %7426 = vmatprep.mubr.msk.bf16.mxu0 %vm8345_vm7, %v8344_v46 }
0x1838   : > { %v7914_v3 = vpop.eup %7913  ;;  %7436 = vmatprep.subr.bf16.mxu0 %v8344_v46 }
0x1839   : > { %v4949_v53 = vpack.c.bf16 %v4945_v45, %v4945_v45  ;;  %v4935_v28 = vmul.f32 %v7914_v3, %v4927_v27  ;;  %v5264_v8 = vpop.permute.xlu1 %5263 }
0x183b   : > { %v4939_v16 = vsub.f32 2.0, %v4935_v28  ;;  %7397 = vmatmul.mubr.msk.bf16.vlgmr.msra.gmra.mrb[96].mxu1 %vm2289_vm11, %v4949_v53 }
0x183c   : > { %7407 = vmatpush3.bf16.msra.mxu1 %v5102_v20  ;;  %7408 = vmatprep.mubr.msk.bf16.mxu1 %vm8345_vm7, %v8344_v46 }
0x183d   : > { %v4943_v60 = vmul.f32 %v7914_v3, %v4939_v16  ;;  %v5366_v57 = vpop.permute.xlu1 %5365  ;;  %7412 = vmatprep.subr.bf16.mxu1 %v7784_v13  ;;  %v5314_v3 = vpop.permute.xlu0 %5313 }
0x183e   : > { %v5371_v14 = vsel %vm2104_vm12, %v5366_v57, 0  ;;  %7427 = vmatmul.mubr.msk.bf16.vlgmr.msra.gmra.mrb[116].mxu0 %vm2104_vm12, %v5264_v8 }
0x183f   : > { %v4947_v24 = vmul.f32 %v9996_v10, %v4943_v60  ;;  %7437 = vmatpush3.bf16.xpose.msra.mxu0 %v5371_v14  ;;  %7438 = vmatprep.mubr.msk.bf16.mxu0 %vm8345_vm7, %v8344_v46 }
0x1840   : > { %7448 = vmatprep.subr.bf16.mxu0 %v8344_v46 }
0x1841   : > { %v4951_v23 = vpack.c.bf16 %v4947_v24, %v4947_v24  ;;  %v5364_v38 = vpop.permute.xlu1 %5363 }
0x1843   : > { %7409 = vmatmul.mubr.msk.bf16.vlgmr.msra.gmra.mrb[100].mxu1 %vm2289_vm11, %v4951_v23 }
0x1844   : > { %7413 = vmatpush3.bf16.msra.mxu1 %v7784_v13 }
0x1845   : > { %7430 = vmatprep.subr.bf16.mxu1 %v8344_v46 }
0x1846   : > { %7439 = vmatmul.mubr.msk.bf16.vlgmr.msra.gmra.mrb[120].mxu0 %vm2104_vm12, %v5364_v38 }
0x1847   : > { %7450 = vmatprep.mubr.msk.bf16.mxu0 %vm8345_vm7, %v8344_v46 }
0x187d   : > { %v4994_v21 = vpop.f32.mrb[104].mxu0 }
0x187e   : > { %v7392_v54 = vpop.f32.mrb[105].mxu0 }
0x187f   : > { %v4997_v37 = vpop.f32.mrb[106].mxu0 }
0x1880   : > { %v7393_v11 = vpop.f32.mrb[107].mxu0 }
0x1885   : > { %v5090_v56 = vpop.f32.mrb[108].mxu0 }
0x1886   : > { %v7404_v18 = vpop.f32.mrb[109].mxu0 }
0x1887   : > { %v5093_v10 = vpop.f32.mrb[110].mxu0 }
0x1888   : > { %v7405_v58 = vpop.f32.mrb[111].mxu0 }
0x1909   : > { %v5257_v42 = vpop.f32.mrb[112].mxu0 }
0x190a   : > { %v7422_v6 = vpop.f32.mrb[113].mxu0  ;;  %v5413_v2 = vsel %vm2289_vm11, %v5257_v42, -inf }
0x190b   : > { %5414 = vmax.xlane.f32.xlu0 %v5413_v2  ;;  %v5260_v48 = vpop.f32.mrb[114].mxu0 }
0x190c   : > { %v7423_v52 = vpop.f32.mrb[115].mxu0 }
0x190e   : > { %v5042_v61 = vpop.f32.mrb[96].mxu1 }
0x190f   : > { %v5144_v33 = vpack.c.bf16 %v5042_v61, %v4994_v21  ;;  %v7398_v59 = vpop.f32.mrb[97].mxu1 }
0x1910   : > { %v5045_v51 = vpop.f32.mrb[98].mxu1 }
0x1911   : > { %v7399_v22 = vpop.f32.mrb[99].mxu1  ;;  %7414 = vmatprep.mubr.msk.bf16.mxu1 %vm2104_vm12, %v5144_v33  ;;  %v5307_v36 = vpop.f32.mrb[116].mxu0 }
0x1912   : > { %v7428_v50 = vpop.f32.mrb[117].mxu0  ;;  %v5416_v4 = vsel %vm2289_vm11, %v5307_v36, -inf }
0x1913   : > { %5417 = vmax.xlane.f32.xlu1 %v5416_v4  ;;  %v5310_v34 = vpop.f32.mrb[118].mxu0 }
0x1914   : > { %v7429_v9 = vpop.f32.mrb[119].mxu0 }
0x1916   : > { %v5138_v27 = vpop.f32.mrb[100].mxu1 }
0x1917   : > { %v5145_v12 = vpack.c.bf16 %v5138_v27, %v5090_v56  ;;  %v7410_v39 = vpop.f32.mrb[101].mxu1 }
0x1918   : > { %v5141_v55 = vpop.f32.mrb[102].mxu1 }
0x1919   : > { %v7411_v5 = vpop.f32.mrb[103].mxu1  ;;  %7415 = vmatmul.mubr.msk.bf16.vlgmr.msra.gmra.mrb[44].mxu1 %vm2104_vm12, %v5145_v12  ;;  %v5407_v43 = vpop.f32.mrb[120].mxu0 }
0x191a   : > { %7431 = vmatpush3.bf16.xpose.msra.mxu1 %v5321_v41  ;;  %v7440_v49 = vpop.f32.mrb[121].mxu0  ;;  %7432 = vmatprep.mubr.msk.bf16.mxu1 %vm8345_vm7, %v8344_v46  ;;  %v5422_v37 = vsel %vm2289_vm11, %v5407_v43, -inf }
0x191b   : > { %v5410_v31 = vpop.f32.mrb[122].mxu0  ;;  %7442 = vmatprep.subr.bf16.mxu1 %v8344_v46 }
0x191c   : > { %v7441_v45 = vpop.f32.mrb[123].mxu0 }
0x1921   : > { %7433 = vmatmul.mubr.msk.bf16.vlgmr.msra.gmra.mrb[104].mxu1 %vm2104_vm12, %v5314_v3 }
0x1922   : > { %7444 = vmatprep.mubr.msk.bf16.mxu1 %vm8345_vm7, %v8344_v46 }
0x1998   : > { %v5415_v60 = vpop.xlane.xlu0 %5414 }
0x1999   : > { %v5425_v57 = vsub.f32 %v5257_v42, %v5415_v60 }
0x199b   : > { %v5429_v14 = vmul.f32 1.442695, %v5425_v57 }
0x19a0   : > { %v5418_v53 = vpop.xlane.xlu1 %5417 }
0x19a1   : > { %v5426_v28 = vsub.f32 %v5307_v36, %v5418_v53 }
0x19a3   : > { %v5431_v8 = vmul.f32 1.442695, %v5426_v28 }
0x19a5   : > { %7915 = vpow2.f32 %v5431_v8 }
0x19a6   : > { %7917 = vpow2.f32 %v5429_v14 }
0x19af   : > { %v10055_v16 = vpop.eup %7915 }
0x19b0   : > { %v5440_v20 = vsel %vm2289_vm11, %v10055_v16, 0.0  ;;  %v7918_v11 = vpop.eup %7917 }
0x19b1   : > { %5441 = vadd.xlane.f32.xlu1 %v5440_v20  ;;  %v5437_v56 = vsel %vm2289_vm11, %v7918_v11, 0.0 }
0x19f4   : > { %v5357_v24 = vpop.f32.mrb[104].mxu1 }
0x19f5   : > { %v7434_v23 = vpop.f32.mrb[105].mxu1  ;;  %v5419_v38 = vsel %vm2289_vm11, %v5357_v24, -inf }
0x19f6   : > { %5420 = vmax.xlane.f32.xlu0 %v5419_v38  ;;  %v5360_v21 = vpop.f32.mrb[106].mxu1 }
0x19f7   : > { %v7435_v54 = vpop.f32.mrb[107].mxu1 }
0x19fa   : > { %5423 = vmax.xlane.f32.xlu0 %v5422_v37  ;;  %v7785_v37 = vld [vmem:[%s10408_s11 + $0x30] sm:$0xff]  }
0x19fe   : > { %5438 = vadd.xlane.f32.xlu0 %v5437_v56 }
0x1a83   : > { %v5421_v18 = vpop.xlane.xlu0 %5420 }
0x1a84   : > { %v5427_v10 = vsub.f32 %v5357_v24, %v5421_v18 }
0x1a86   : > { %v5433_v58 = vmul.f32 1.442695, %v5427_v10 }
0x1a87   : > { %v5424_v13 = vpop.xlane.xlu0 %5423 }
0x1a88   : > { %7919 = vpow2.f32 %v5433_v58  ;;  %v5428_v42 = vsub.f32 %v5407_v43, %v5424_v13 }
0x1a8a   : > { %v5435_v6 = vmul.f32 1.442695, %v5428_v42 }
0x1a8c   : > { %7921 = vpow2.f32 %v5435_v6 }
0x1a92   : > { %v7920_v2 = vpop.eup %7919 }
0x1a93   : > { %v5443_v48 = vsel %vm2289_vm11, %v7920_v2, 0.0 }
0x1a94   : > { %5444 = vadd.xlane.f32.xlu0 %v5443_v48 }
0x1a96   : > { %v10063_v52 = vpop.eup %7921 }
0x1a97   : > { %v5446_v61 = vsel %vm2289_vm11, %v10063_v52, 0.0 }
0x1a98   : > { %5447 = vadd.xlane.f32.xlu1 %v5446_v61 }
0x1aa9   : > { %5521 = vrot.lane.b32.xlu1 %v9522_v29, %s8351_s17 }
0x1aaa   : > { %5473 = vrot.lane.b32.xlu0 %v9539_v15, %s8351_s17 }
0x1aad   : > { %5569 = vrot.lane.b32.xlu1 %v9577_v44, %s8351_s17 }
0x1aae   : > { %5736 = vrot.lane.b32.xlu0 %v9493_v17, %s8352_s24  ;;  %v5439_v17 = vpop.xlane.xlu0 %5438 }
0x1aaf   : > { %7923 = vrcp.f32 %v5439_v17 }
0x1ab1   : > { %5617 = vrot.lane.b32.xlu1 %v9587_v7, %s8351_s17  ;;  %s8353_s17 = smov [#allocation19]  }
0x1ab2   : > { %5734 = vrot.lane.b32.xlu0 %v9504_v40, %s8352_s24  ;;  %v5442_v40 = vpop.xlane.xlu1 %5441 }
0x1ab3   : > { %7925 = vrcp.f32 %v5442_v40 }
0x1ab5   : > { %5786 = vrot.lane.b32.xlu1 %v9502_v19, %s8352_s24 }
0x1ab6   : > { %5836 = vrot.lane.b32.xlu0 %v9517_v32, %s8352_s24 }
0x1ab9   : > { %5784 = vrot.lane.b32.xlu1 %v9520_v25, %s8352_s24  ;;  %v7924_v19 = vpop.eup %7923 }
0x1aba   : > { %5834 = vrot.lane.b32.xlu0 %v9542_v62, %s8352_s24  ;;  %v5453_v33 = vmul.f32 %v7924_v19, %v5439_v17 }
0x1abc   : > { %v5457_v51 = vsub.f32 2.0, %v5453_v33 }
0x1abd   : > { %5886 = vrot.lane.b32.xlu1 %v9506_v26, %s8352_s24  ;;  %v7926_v59 = vpop.eup %7925 }
0x1abe   : > { %v5454_v32 = vmul.f32 %v7926_v59, %v5442_v40  ;;  %v5461_v25 = vmul.f32 %v7924_v19, %v5457_v51 }
0x1ac0   : > { %v5458_v22 = vsub.f32 2.0, %v5454_v32  ;;  %v5465_v50 = vmul.f32 %v7918_v11, %v5461_v25 }
0x1ac1   : > { %5884 = vrot.lane.b32.xlu1 %v9524_v63, %s8352_s24 }
0x1ac2   : > { %v5462_v62 = vmul.f32 %v7926_v59, %v5458_v22  ;;  %v5469_v9 = vpack.c.bf16 %v5465_v50, %v5465_v50 }
0x1ac4   : > { %v5466_v34 = vmul.f32 %v10055_v16, %v5462_v62 }
0x1ac6   : > { %v5470_v39 = vpack.c.bf16 %v5466_v34, %v5466_v34 }
0x1b21   : > { %v5445_v36 = vpop.xlane.xlu0 %5444 }
0x1b22   : > { %7927 = vrcp.f32 %v5445_v36 }
0x1b25   : > { %v5448_v4 = vpop.xlane.xlu1 %5447  ;;  %v5474_v26 = vpop.permute.xlu0 %5473 }
0x1b26   : > { %7929 = vrcp.f32 %v5448_v4  ;;  %v5479_v63 = vsel %vm2353_vm13, %v5474_v26, 0 }
0x1b27   : > { %7443 = vmatpush3.bf16.msra.mxu1 %v5479_v63 }
0x1b28   : > { %7454 = vmatprep.subr.bf16.mxu1 %v8344_v46 }
0x1b29   : > { %v5522_v47 = vpop.permute.xlu1 %5521  ;;  %v5737_v16 = vpop.permute.xlu0 %5736 }
0x1b2a   : > { %v5527_v27 = vsel %vm2353_vm13, %v5522_v47, 0  ;;  %7445 = vmatmul.mubr.msk.bf16.vlgmr.msra.gmra.mrb[108].mxu1 %vm2289_vm11, %v5469_v9  ;;  %v5742_v23 = vsel %vm2104_vm12, %v5737_v16, 0 }
0x1b2b   : > { %7449 = vmatpush3.bf16.msra.mxu0 %v5527_v27  ;;  %7456 = vmatprep.mubr.msk.bf16.mxu1 %vm8345_vm7, %v8344_v46 }
0x1b2c   : > { %v7928_v12 = vpop.eup %7927  ;;  %7460 = vmatprep.subr.bf16.mxu0 %v8344_v46 }
0x1b2d   : > { %v5455_v55 = vmul.f32 %v7928_v12, %v5445_v36  ;;  %v5570_v41 = vpop.permute.xlu1 %5569  ;;  %v5735_v24 = vpop.permute.xlu0 %5734 }
0x1b2e   : > { %v5575_v5 = vsel %vm2353_vm13, %v5570_v41, 0  ;;  %7451 = vmatmul.mubr.msk.bf16.vlgmr.msra.gmra.mrb[124].mxu0 %vm2289_vm11, %v5470_v39 }
0x1b2f   : > { %v5459_v43 = vsub.f32 2.0, %v5455_v55  ;;  %7455 = vmatpush3.bf16.msra.mxu1 %v5575_v5  ;;  %7462 = vmatprep.mubr.msk.bf16.mxu0 %vm8345_vm7, %v8344_v46 }
0x1b30   : > { %v7930_v49 = vpop.eup %7929  ;;  %7466 = vmatprep.subr.bf16.mxu1 %v7785_v37 }
0x1b31   : > { %v5463_v31 = vmul.f32 %v7928_v12, %v5459_v43  ;;  %v5456_v45 = vmul.f32 %v7930_v49, %v5448_v4  ;;  %v5618_v3 = vpop.permute.xlu1 %5617  ;;  %v5837_v38 = vpop.permute.xlu0 %5836 }
0x1b32   : > { %v5623_v53 = vsel %vm2353_vm13, %v5618_v3, 0  ;;  %v5842_v21 = vsel %vm2104_vm12, %v5837_v38, 0 }
0x1b33   : > { %v5467_v28 = vmul.f32 %v7920_v2, %v5463_v31  ;;  %v5460_v8 = vsub.f32 2.0, %v5456_v45  ;;  %7461 = vmatpush3.bf16.msra.mxu0 %v5623_v53 }
0x1b34   : > { %7472 = vmatprep.subr.bf16.mxu0 %v8344_v46 }
0x1b35   : > { %v5471_v20 = vpack.c.bf16 %v5467_v28, %v5467_v28  ;;  %v5464_v60 = vmul.f32 %v7930_v49, %v5460_v8  ;;  %v5835_v54 = vpop.permute.xlu0 %5834  ;;  %v5787_v48 = vpop.permute.xlu1 %5786 }
0x1b36   : > { %v5792_v22 = vsel %vm2104_vm12, %v5787_v48, 0 }
0x1b37   : > { %v5468_v57 = vmul.f32 %v10063_v52, %v5464_v60  ;;  %7457 = vmatmul.mubr.msk.bf16.vlgmr.msra.gmra.mrb[112].mxu1 %vm2289_vm11, %v5471_v20 }
0x1b38   : > { %7467 = vmatpush3.bf16.msra.mxu1 %v7785_v37 }
0x1b39   : > { %v5472_v14 = vpack.c.bf16 %v5468_v57, %v5468_v57  ;;  %7478 = vmatprep.subr.bf16.mxu1 %v8344_v46  ;;  %v5785_v32 = vpop.permute.xlu1 %5784 }
0x1b3b   : > { %7463 = vmatmul.mubr.msk.bf16.vlgmr.msra.gmra.mrb[128].mxu0 %vm2289_vm11, %v5472_v14 }
0x1b3c   : > { %7473 = vmatpush3.bf16.xpose.msra.mxu0 %v5742_v23  ;;  %7474 = vmatprep.mubr.msk.bf16.mxu0 %vm8345_vm7, %v8344_v46 }
0x1b3d   : > { %7484 = vmatprep.subr.bf16.mxu0 %v8344_v46  ;;  %v5887_v36 = vpop.permute.xlu1 %5886 }
0x1b3e   : > { %v5892_v63 = vsel %vm2104_vm12, %v5887_v36, 0 }
0x1b41   : > { %v5885_v12 = vpop.permute.xlu1 %5884 }
0x1b43   : > { %7475 = vmatmul.mubr.msk.bf16.vlgmr.msra.gmra.mrb[132].mxu0 %vm2104_vm12, %v5735_v24 }
0x1b44   : > { %7485 = vmatpush3.bf16.xpose.msra.mxu0 %v5842_v21  ;;  %7486 = vmatprep.mubr.msk.bf16.mxu0 %vm8345_vm7, %v8344_v46 }
0x1b45   : > { %7496 = vmatprep.subr.bf16.mxu0 %v8344_v46 }
0x1b4b   : > { %7487 = vmatmul.mubr.msk.bf16.vlgmr.msra.gmra.mrb[136].mxu0 %vm2104_vm12, %v5835_v54 }
0x1b4c   : > { %7498 = vmatprep.mubr.msk.bf16.mxu0 %vm8345_vm7, %v8344_v46 }
0x1bfd   : > { %v5515_v11 = vpop.f32.mrb[108].mxu1 }
0x1bfe   : > { %v7446_v56 = vpop.f32.mrb[109].mxu1 }
0x1bff   : > { %v5518_v18 = vpop.f32.mrb[110].mxu1 }
0x1c00   : > { %v7447_v10 = vpop.f32.mrb[111].mxu1 }
0x1c01   : > { %v5563_v58 = vpop.f32.mrb[124].mxu0 }
0x1c02   : > { %v5665_v13 = vpack.c.bf16 %v5563_v58, %v5515_v11  ;;  %v7452_v42 = vpop.f32.mrb[125].mxu0 }
0x1c03   : > { %v5566_v6 = vpop.f32.mrb[126].mxu0 }
0x1c04   : > { %v7453_v2 = vpop.f32.mrb[127].mxu0  ;;  %7468 = vmatprep.mubr.msk.bf16.mxu1 %vm2104_vm12, %v5665_v13 }
0x1c0a   : > { %v5611_v52 = vpop.f32.mrb[112].mxu1 }
0x1c0b   : > { %v7458_v61 = vpop.f32.mrb[113].mxu1 }
0x1c0c   : > { %v5614_v17 = vpop.f32.mrb[114].mxu1 }
0x1c0d   : > { %v7459_v40 = vpop.f32.mrb[115].mxu1 }
0x1c0e   : > { %v5659_v19 = vpop.f32.mrb[128].mxu0 }
0x1c0f   : > { %v5666_v33 = vpack.c.bf16 %v5659_v19, %v5611_v52  ;;  %v7464_v59 = vpop.f32.mrb[129].mxu0 }
0x1c10   : > { %v5662_v51 = vpop.f32.mrb[130].mxu0 }
0x1c11   : > { %v7465_v25 = vpop.f32.mrb[131].mxu0  ;;  %7469 = vmatmul.mubr.msk.bf16.vlgmr.msra.gmra.mrb[44].mxu1 %vm2104_vm12, %v5666_v33 }
0x1c12   : > { %7479 = vmatpush3.bf16.xpose.msra.mxu1 %v5792_v22  ;;  %7480 = vmatprep.mubr.msk.bf16.mxu1 %vm8345_vm7, %v8344_v46 }
0x1c13   : > { %7490 = vmatprep.subr.bf16.mxu1 %v8344_v46 }
0x1c16   : > { %v5778_v62 = vpop.f32.mrb[132].mxu0 }
0x1c17   : > { %v7476_v50 = vpop.f32.mrb[133].mxu0  ;;  %v5934_v4 = vsel %vm2289_vm11, %v5778_v62, -inf }
0x1c18   : > { %5935 = vmax.xlane.f32.xlu0 %v5934_v4  ;;  %v5781_v26 = vpop.f32.mrb[134].mxu0 }
0x1c19   : > { %v7477_v34 = vpop.f32.mrb[135].mxu0  ;;  %7481 = vmatmul.mubr.msk.bf16.vlgmr.msra.gmra.mrb[116].mxu1 %vm2104_vm12, %v5785_v32 }
0x1c1a   : > { %7491 = vmatpush3.bf16.xpose.msra.mxu1 %v5892_v63  ;;  %7492 = vmatprep.mubr.msk.bf16.mxu1 %vm8345_vm7, %v8344_v46 }
0x1c1b   : > { %7502 = vmatprep.subr.bf16.mxu1 %v8344_v46 }
0x1c1e   : > { %v5878_v9 = vpop.f32.mrb[136].mxu0 }
0x1c1f   : > { %v7488_v47 = vpop.f32.mrb[137].mxu0  ;;  %v5940_v27 = vsel %vm2289_vm11, %v5878_v9, -inf }
0x1c20   : > { %5941 = vmax.xlane.f32.xlu0 %v5940_v27  ;;  %v5881_v39 = vpop.f32.mrb[138].mxu0 }
0x1c21   : > { %v7489_v55 = vpop.f32.mrb[139].mxu0  ;;  %7493 = vmatmul.mubr.msk.bf16.vlgmr.msra.gmra.mrb[120].mxu1 %vm2104_vm12, %v5885_v12 }
0x1c22   : > { %7504 = vmatprep.mubr.msk.bf16.mxu1 %vm8345_vm7, %v8344_v46 }
0x1ca5   : > { %v5936_v41 = vpop.xlane.xlu0 %5935 }
0x1ca6   : > { %v5946_v5 = vsub.f32 %v5778_v62, %v5936_v41 }
0x1ca8   : > { %v5950_v49 = vmul.f32 1.442695, %v5946_v5 }
0x1caa   : > { %7931 = vpow2.f32 %v5950_v49 }
0x1cad   : > { %v5942_v43 = vpop.xlane.xlu0 %5941 }
0x1cae   : > { %v5948_v31 = vsub.f32 %v5878_v9, %v5942_v43 }
0x1cb0   : > { %v5954_v45 = vmul.f32 1.442695, %v5948_v31 }
0x1cb2   : > { %7933 = vpow2.f32 %v5954_v45 }
0x1cb4   : > { %v7932_v14 = vpop.eup %7931 }
0x1cb5   : > { %v5958_v38 = vsel %vm2289_vm11, %v7932_v14, 0.0 }
0x1cbc   : > { %v7934_v21 = vpop.eup %7933 }
0x1cbd   : > { %v5964_v54 = vsel %vm2289_vm11, %v7934_v21, 0.0 }
0x1cec   : > { %v5828_v3 = vpop.f32.mrb[116].mxu1 }
0x1ced   : > { %v7482_v53 = vpop.f32.mrb[117].mxu1  ;;  %v5937_v28 = vsel %vm2289_vm11, %v5828_v3, -inf }
0x1cee   : > { %5938 = vmax.xlane.f32.xlu1 %v5937_v28  ;;  %v5831_v8 = vpop.f32.mrb[118].mxu1 }
0x1cef   : > { %v7483_v16 = vpop.f32.mrb[119].mxu1 }
0x1cf4   : > { %v5928_v20 = vpop.f32.mrb[120].mxu1 }
0x1cf5   : > { %v7494_v60 = vpop.f32.mrb[121].mxu1  ;;  %v5943_v57 = vsel %vm2289_vm11, %v5928_v20, -inf }
0x1cf6   : > { %5944 = vmax.xlane.f32.xlu0 %v5943_v57  ;;  %v5931_v24 = vpop.f32.mrb[122].mxu1 }
0x1cf7   : > { %v7495_v23 = vpop.f32.mrb[123].mxu1  ;;  %v7786_v24 = vld [vmem:[%s10408_s11 + $0x38] sm:$0xff]  }
0x1cfa   : > { %5959 = vadd.xlane.f32.xlu0 %v5958_v38 }
0x1cfe   : > { %5965 = vadd.xlane.f32.xlu0 %v5964_v54 }
0x1cff   : > { %6042 = vrot.lane.b32.xlu1 %v9522_v29, %s8352_s24 }
0x1d03   : > { %6090 = vrot.lane.b32.xlu1 %v9577_v44, %s8352_s24 }
0x1d14   : > { %5994 = vrot.lane.b32.xlu0 %v9539_v15, %s8352_s24 }
0x1d7b   : > { %v5939_v37 = vpop.xlane.xlu1 %5938 }
0x1d7c   : > { %v5947_v11 = vsub.f32 %v5828_v3, %v5939_v37 }
0x1d7e   : > { %v5952_v56 = vmul.f32 1.442695, %v5947_v11 }
0x1d7f   : > { %v6043_v18 = vpop.permute.xlu1 %6042 }
0x1d80   : > { %7935 = vpow2.f32 %v5952_v56  ;;  %v6048_v10 = vsel %vm2353_vm13, %v6043_v18, 0 }
0x1d81   : > { %7503 = vmatpush3.bf16.msra.mxu1 %v6048_v10 }
0x1d82   : > { %7514 = vmatprep.subr.bf16.mxu1 %v8344_v46 }
0x1d83   : > { %v5945_v58 = vpop.xlane.xlu0 %5944  ;;  %v6091_v25 = vpop.permute.xlu1 %6090 }
0x1d84   : > { %v5949_v13 = vsub.f32 %v5928_v20, %v5945_v58  ;;  %v6096_v50 = vsel %vm2353_vm13, %v6091_v25, 0 }
0x1d86   : > { %v5956_v42 = vmul.f32 1.442695, %v5949_v13  ;;  %v6823_v13 = vld [vmem:[%s10409_s20] ss:$0 sm:$0xff]  ;;  %s10412_s20 = sld [smem:[#allocation36_spill]] }
0x1d87   : > { %v5960_v29 = vpop.xlane.xlu0 %5959 }
0x1d88   : > { %7937 = vpow2.f32 %v5956_v42 }
0x1d89   : > { %7939 = vrcp.f32 %v5960_v29 }
0x1d8a   : > { %v7936_v44 = vpop.eup %7935 }
0x1d8b   : > { %v5966_v6 = vpop.xlane.xlu0 %5965  ;;  %v5961_v15 = vsel %vm2289_vm11, %v7936_v44, 0.0 }
0x1d8c   : > { %7941 = vrcp.f32 %v5966_v6  ;;  %5962 = vadd.xlane.f32.xlu1 %v5961_v15 }
0x1d8f   : > { %v5995_v2 = vpop.permute.xlu0 %5994 }
0x1d90   : > { %v6000_v48 = vsel %vm2353_vm13, %v5995_v2, 0 }
0x1d91   : > { %7497 = vmatpush3.bf16.msra.mxu0 %v6000_v48 }
0x1d92   : > { %v7938_v52 = vpop.eup %7937  ;;  %7508 = vmatprep.subr.bf16.mxu0 %v8344_v46 }
0x1d93   : > { %v7940_v61 = vpop.eup %7939  ;;  %v5967_v17 = vsel %vm2289_vm11, %v7938_v52, 0.0 }
0x1d94   : > { %v5974_v40 = vmul.f32 %v7940_v61, %v5960_v29  ;;  %5968 = vadd.xlane.f32.xlu1 %v5967_v17 }
0x1d96   : > { %v7942_v19 = vpop.eup %7941  ;;  %v5978_v33 = vsub.f32 2.0, %v5974_v40 }
0x1d97   : > { %v5976_v59 = vmul.f32 %v7942_v19, %v5966_v6 }
0x1d98   : > { %v5982_v32 = vmul.f32 %v7940_v61, %v5978_v33 }
0x1d99   : > { %v5980_v51 = vsub.f32 2.0, %v5976_v59 }
0x1d9a   : > { %v5986_v22 = vmul.f32 %v7932_v14, %v5982_v32 }
0x1d9b   : > { %v5984_v62 = vmul.f32 %v7942_v19, %v5980_v51 }
0x1d9c   : > { %v5990_v36 = vpack.c.bf16 %v5986_v22, %v5986_v22 }
0x1d9d   : > { %v5988_v4 = vmul.f32 %v7934_v21, %v5984_v62 }
0x1d9e   : > { %7499 = vmatmul.mubr.msk.bf16.vlgmr.msra.gmra.mrb[140].mxu0 %vm2289_vm11, %v5990_v36 }
0x1d9f   : > { %7509 = vmatpush3.bf16.msra.mxu0 %v6096_v50  ;;  %7510 = vmatprep.mubr.msk.bf16.mxu0 %vm8345_vm7, %v8344_v46  ;;  %v5992_v26 = vpack.c.bf16 %v5988_v4, %v5988_v4 }
0x1da5   : > { %6138 = vrot.lane.b32.xlu1 %v9587_v7, %s8352_s24  ;;  %s6484_s24 = sshll.u32 %s734_s15, 4  ;;  %s10209_s24 = int_to_ptr.vmem [resolvable:$true] %s6484_s24 }
0x1da6   : > { %7511 = vmatmul.mubr.msk.bf16.vlgmr.msra.gmra.mrb[144].mxu0 %vm2289_vm11, %v5992_v26  ;;  %s8237_s19 = scalar_lea.vmem %s10209_s24, 512 }
0x1da7   : > { %p8238_p3 = scmp.ne.s32.totalorder %s10209_s24, %s8237_s19 }
0x1da9   : > { %p8239_p8 = pnand %p8238_p3, %p10414_p2 }
0x1dab   : > { %p8240_p6 = pneg %p8239_p8 }
0x1e19   : > { %v5963_v63 = vpop.xlane.xlu1 %5962 }
0x1e1a   : > { %7943 = vrcp.f32 %v5963_v63 }
0x1e21   : > { %v5969_v34 = vpop.xlane.xlu1 %5968 }
0x1e22   : > { %7945 = vrcp.f32 %v5969_v34 }
0x1e24   : > { %v7944_v9 = vpop.eup %7943 }
0x1e25   : > { %v5975_v47 = vmul.f32 %v7944_v9, %v5963_v63  ;;  %v6139_v41 = vpop.permute.xlu1 %6138 }
0x1e26   : > { %v6144_v31 = vsel %vm2353_vm13, %v6139_v41, 0 }
0x1e27   : > { %v5979_v27 = vsub.f32 2.0, %v5975_v47  ;;  %v7790_v47 = vld [vmem:[#allocation17 + $0x18] sm:$0xff]  }
0x1e29   : > { %v5983_v12 = vmul.f32 %v7944_v9, %v5979_v27  ;;  %v7789_v9 = vld [vmem:[#allocation17 + $0x10] sm:$0xff]   ;;  %v7791_v27 = vld [vmem:[#allocation17 + $0x20] sm:$0xff]  }
0x1e2b   : > { %v5987_v39 = vmul.f32 %v7936_v44, %v5983_v12  ;;  %v7792_v12 = vld [vmem:[#allocation17 + $0x28] sm:$0xff]  }
0x1e2c   : > { %v7946_v55 = vpop.eup %7945 }
0x1e2d   : > { %v5991_v5 = vpack.c.bf16 %v5987_v39, %v5987_v39  ;;  %v5977_v43 = vmul.f32 %v7946_v55, %v5969_v34  ;;  %v7788_v34 = vld [vmem:[#allocation17 + $0x8] sm:$0xff]   ;;  %v7793_v39 = vld [vmem:[#allocation17 + $0x30] sm:$0xff]  }
0x1e2f   : > { %v5981_v49 = vsub.f32 2.0, %v5977_v43  ;;  %7505 = vmatmul.mubr.msk.bf16.vlgmr.msra.gmra.mrb[124].mxu1 %vm2289_vm11, %v5991_v5 }
0x1e30   : > { %7515 = vmatpush3.bf16.msra.mxu1 %v6144_v31  ;;  %7516 = vmatprep.mubr.msk.bf16.mxu1 %vm8345_vm7, %v8344_v46 }
0x1e31   : > { %v5985_v7 = vmul.f32 %v7946_v55, %v5981_v49  ;;  %7520 = vmatprep.subr.bf16.mxu1 %v7786_v24  ;;  %v7794_v55 = vld [vmem:[#allocation17 + $0x38] sm:$0xff]  }
0x1e33   : > { %v5989_v45 = vmul.f32 %v7938_v52, %v5985_v7 }
0x1e35   : > { %v5993_v3 = vpack.c.bf16 %v5989_v45, %v5989_v45 }
0x1e37   : > { %7517 = vmatmul.mubr.msk.bf16.vlgmr.msra.gmra.mrb[128].mxu1 %vm2289_vm11, %v5993_v3 }
0x1e38   : > { %7521 = vmatpush3.bf16.msra.mxu1 %v7786_v24 }
0x1e71   : > { %v6036_v53 = vpop.f32.mrb[140].mxu0 }
0x1e72   : > { %v7500_v28 = vpop.f32.mrb[141].mxu0 }
0x1e73   : > { %v6039_v8 = vpop.f32.mrb[142].mxu0 }
0x1e74   : > { %v7501_v16 = vpop.f32.mrb[143].mxu0 }
0x1e79   : > { %v6132_v20 = vpop.f32.mrb[144].mxu0 }
0x1e7a   : > { %v7512_v60 = vpop.f32.mrb[145].mxu0 }
0x1e7b   : > { %v6135_v57 = vpop.f32.mrb[146].mxu0  ;;  %v6824_v60 = vld [vmem:[%s10410_s12] ss:$0 sm:$0xff]  ;;  %s6841_s12 = sshll.u32 %s8472_s1, 9  ;;  %s6471_s1 = scalar_lea.sflag [#allocation4], %s8779_s14 }
0x1e7c   : > { %v7513_v14 = vpop.f32.mrb[147].mxu0 }
0x1f02   : > { %v6084_v46 = vpop.f32.mrb[124].mxu1 }
0x1f03   : > { %v6186_v23 = vpack.c.bf16 %v6084_v46, %v6036_v53  ;;  %v7506_v38 = vpop.f32.mrb[125].mxu1 }
0x1f04   : > { %v6087_v21 = vpop.f32.mrb[126].mxu1  ;;  %v6825_v38 = vld [vmem:[%s10411_s13] ss:$0 sm:$0xff]  ;;  %s10216_s13 = scalar_lea.hbm %s10413_s4, %s6841_s12 }
0x1f05   : > { %v7507_v54 = vpop.f32.mrb[127].mxu1  ;;  %7522 = vmatprep.mubr.msk.bf16.mxu1 %vm2104_vm12, %v6186_v23 }
0x1f0a   : > { %v6180_v37 = vpop.f32.mrb[128].mxu1 }
0x1f0b   : > { %v6187_v11 = vpack.c.bf16 %v6180_v37, %v6132_v20  ;;  %v7518_v56 = vpop.f32.mrb[129].mxu1 }
0x1f0c   : > { %v6183_v18 = vpop.f32.mrb[130].mxu1 }
0x1f0d   : > { %v7519_v10 = vpop.f32.mrb[131].mxu1  ;;  %7523 = vmatmul.mubr.msk.bf16.vlgmr.msra.gmra.mrb[44].mxu1 %vm2104_vm12, %v6187_v11 }
0x1fe0   : > { %v7524_v58 = vpop.f32.mrb[44].mxu1 }
0x1fe1   : > { %v6236_v42 = vpop.f32.mrb[45].mxu1  ;;  %v6257_v15 = vadd.f32 %v7524_v58, %v9449_v1  ;;  %v7787_v1 = vld [vmem:[#allocation17] sm:$0xff]  }
0x1fe2   : > { %v6255_v29 = vadd.f32 %v6236_v42, %v9442_v35  ;;  %v7525_v44 = vpop.f32.mrb[46].mxu1  ;;  %7526 = vmatprep.subr.bf16.mxu0 %v7787_v1 }
0x1fe3   : > { %v6239_v6 = vpop.f32.mrb[47].mxu1  ;;  %v10184_v61 = vadd.f32 %v6823_v13, %v6257_v15  ;;  %v6258_v17 = vadd.f32 %v7525_v44, %v9453_v30  ;;  %7527 = vmatpush3.bf16.msra.mxu0 %v7787_v1 }
0x1fe4   : > { %v10178_v2 = vadd.f32 %v6823_v13, %v6255_v29  ;;  %v6256_v48 = vadd.f32 %v6239_v6, %v9445_v0  ;;  %7528 = vmatprep.subr.bf16.mxu0 %v7788_v34  ;;  %v6826_v6 = vld [vmem:[%s10412_s20] ss:$0 sm:$0xff]  ;;  %s8241_s20 = sshll.u32 %s8353_s17, 4  ;;  %s8242_s20 = int_to_ptr.vmem [resolvable:$false] %s8241_s20 }
0x1fe5   : > { %v10189_v35 = vadd.f32 %v6823_v13, %v6258_v17  ;;  %s8243_s0 = scalar_lea.vmem %s8242_s20, 1024  ;;  %p8244_p10 = scmp.lt.s32.totalorder %s10209_s24, %s8242_s20 }
0x1fe6   : > { %v10181_v52 = vadd.f32 %v6823_v13, %v6256_v48  ;;  %6272 = vadd.xlane.f32.xlu0 %v10178_v2  ;;  %p8245_p11 = scmp.lt.s32.totalorder %s8243_s0, %s8237_s19 }
0x1fe7   : > { %7529 = vmatpush3.bf16.msra.mxu0 %v7788_v34 }
0x1fe8   : > { %6274 = vadd.xlane.f32.xlu1 %v10181_v52  ;;  %7530 = vmatprep.subr.bf16.mxu0 %v7789_v9  ;;  %p8246_p0 = por %p8245_p11, %p8244_p10 }
0x1fea   : > { %6276 = vadd.xlane.f32.xlu0 %v10184_v61  ;;  %p8247_p5 = pnand %p8246_p0, %p8240_p6 }
0x1feb   : > { %7531 = vmatpush3.bf16.msra.mxu0 %v7789_v9 }
0x1fec   : > { %7532 = vmatprep.subr.bf16.mxu0 %v7790_v47 }
0x1fee   : > { %6278 = vadd.xlane.f32.xlu0 %v10189_v35 }
0x1fef   : > { %7533 = vmatpush3.bf16.msra.mxu0 %v7790_v47 }
0x1ff0   : > { %7534 = vmatprep.subr.bf16.mxu0 %v7791_v27 }
0x1ff3   : > { %7535 = vmatpush3.bf16.msra.mxu0 %v7791_v27 }
0x1ff4   : > { %7536 = vmatprep.subr.bf16.mxu0 %v7792_v12 }
0x1ff7   : > { %7537 = vmatpush3.bf16.msra.mxu0 %v7792_v12 }
0x1ff8   : > { %7538 = vmatprep.subr.bf16.mxu0 %v7793_v39 }
0x1ffb   : > { %7539 = vmatpush3.bf16.msra.mxu0 %v7793_v39 }
0x1ffc   : > { %7540 = vmatprep.subr.bf16.mxu0 %v7794_v55 }
0x1fff   : > { %7541 = vmatpush3.bf16.msra.mxu0 %v7794_v55 }
0x2073   : > { %v6273_v0 = vpop.xlane.xlu0 %6272 }
0x2074   : > { %v6280_v40 = vmul.f32 0.0078125, %v6273_v0 }
0x2075   : > { %v6275_v19 = vpop.xlane.xlu1 %6274 }
0x2076   : > { %v6284_v33 = vsub.f32 %v10178_v2, %v6280_v40  ;;  %v6281_v59 = vmul.f32 0.0078125, %v6275_v19 }
0x2077   : > { %v6277_v32 = vpop.xlane.xlu0 %6276 }
0x2078   : > { %v6285_v30 = vsub.f32 %v10181_v52, %v6281_v59  ;;  %v6282_v51 = vmul.f32 0.0078125, %v6277_v32  ;;  %v6288_v22 = vmul.f32 %v6284_v33, %v6284_v33 }
0x207a   : > { %v6286_v25 = vsub.f32 %v10184_v61, %v6282_v51  ;;  %6292 = vadd.xlane.f32.xlu0 %v6288_v22  ;;  %v6289_v36 = vmul.f32 %v6285_v30, %v6285_v30 }
0x207b   : > { %v6279_v62 = vpop.xlane.xlu0 %6278 }
0x207c   : > { %v6283_v50 = vmul.f32 0.0078125, %v6279_v62  ;;  %6294 = vadd.xlane.f32.xlu1 %v6289_v36  ;;  %v6290_v4 = vmul.f32 %v6286_v25, %v6286_v25 }
0x207e   : > { %v6287_v26 = vsub.f32 %v10189_v35, %v6283_v50  ;;  %6296 = vadd.xlane.f32.xlu0 %v6290_v4 }
0x2080   : > { %v6291_v63 = vmul.f32 %v6287_v26, %v6287_v26 }
0x2082   : > { %6298 = vadd.xlane.f32.xlu1 %v6291_v63 }
0x2107   : > { %v6293_v41 = vpop.xlane.xlu0 %6292 }
0x2108   : > { %v6300_v5 = vmul.f32 0.0078125, %v6293_v41 }
0x2109   : > { %v6295_v43 = vpop.xlane.xlu1 %6294 }
0x210a   : > { %v6304_v49 = vadd.f32 1e-05, %v6300_v5  ;;  %v6301_v31 = vmul.f32 0.0078125, %v6295_v43 }
0x210b   : > { %v6297_v7 = vpop.xlane.xlu0 %6296 }
0x210c   : > { %7947 = vrsqrt.f32 %v6304_v49  ;;  %v6305_v45 = vadd.f32 1e-05, %v6301_v31  ;;  %v6302_v3 = vmul.f32 0.0078125, %v6297_v7 }
0x210e   : > { %7949 = vrsqrt.f32 %v6305_v45  ;;  %v6306_v53 = vadd.f32 1e-05, %v6302_v3 }
0x210f   : > { %v6299_v28 = vpop.xlane.xlu1 %6298 }
0x2110   : > { %7951 = vrsqrt.f32 %v6306_v53  ;;  %v6303_v8 = vmul.f32 0.0078125, %v6299_v28 }
0x2112   : > { %v6307_v16 = vadd.f32 1e-05, %v6303_v8 }
0x2114   : > { %7953 = vrsqrt.f32 %v6307_v16 }
0x2116   : > { %v7948_v20 = vpop.eup %7947 }
0x2117   : > { %v6312_v57 = vmul.f32 %v7948_v20, %v6284_v33 }
0x2118   : > { %v7950_v14 = vpop.eup %7949 }
0x2119   : > { %v6313_v24 = vmul.f32 %v7950_v14, %v6285_v30  ;;  %v6322_v46 = vmul.f32 %v6824_v60, %v6312_v57 }
0x211a   : > { %v7952_v23 = vpop.eup %7951 }
0x211b   : > { %v6314_v21 = vmul.f32 %v7952_v23, %v6286_v25  ;;  %v6323_v54 = vmul.f32 %v6824_v60, %v6313_v24  ;;  %v6332_v37 = vadd.f32 %v6825_v38, %v6322_v46 }
0x211d   : > { %v6333_v11 = vadd.f32 %v6825_v38, %v6323_v54  ;;  %v6324_v58 = vmul.f32 %v6824_v60, %v6314_v21 }
0x211e   : > { %v7954_v56 = vpop.eup %7953 }
0x211f   : > { %v6315_v18 = vmul.f32 %v7954_v56, %v6287_v26  ;;  %v6336_v10 = vpack.c.bf16 %v6333_v11, %v6332_v37  ;;  %v6334_v42 = vadd.f32 %v6825_v38, %v6324_v58 }
0x2121   : > { %7542 = vmatprep.mubr.bf16.mxu0 %v6336_v10  ;;  %v6325_v13 = vmul.f32 %v6824_v60, %v6315_v18 }
0x2123   : > { %v6335_v29 = vadd.f32 %v6825_v38, %v6325_v13 }
0x2125   : > { %v6337_v44 = vpack.c.bf16 %v6335_v29, %v6334_v42 }
0x2127   : > { %7543 = vmatmul.mubr.bf16.vlgmr.msra.gmra.mrb[148].mxu0 %v6337_v44 }
0x21fa   : > { %v7544_v15 = vpop.f32.mrb[148].mxu0 }
0x21fb   : > { %v6452_v48 = vadd.f32 %v7544_v15, %v6826_v6  ;;  %v6443_v17 = vpop.f32.mrb[149].mxu0 }
0x21fc   : > { %v6444_v1 = vadd.f32 %v6826_v6, %v6443_v17  ;;  %v7545_v0 = vpop.f32.mrb[150].mxu0 }
0x21fd   : > { %v6460_v40 = vmax.f32 %v6452_v48, 0.0  ;;  %v6455_v19 = vadd.f32 %v7545_v0, %v6826_v6  ;;  %v6446_v33 = vpop.f32.mrb[151].mxu0 }
0x21fe   : > { %v6458_v59 = vmax.f32 %v6444_v1, 0.0  ;;  %v6447_v32 = vadd.f32 %v6826_v6, %v6446_v33 }
0x21ff   : > { %v6464_v30 = vadd.f32 %v6460_v40, %v10184_v61  ;;  %v6461_v51 = vmax.f32 %v6455_v19, 0.0 }
0x2200   : > { %v6462_v22 = vadd.f32 %v6458_v59, %v10178_v2  ;;  %v6459_v25 = vmax.f32 %v6447_v32, 0.0 }
0x2201   : > { %6468 = vst [vmem:[%s734_s15 + $0x10] sm:$0xff] %v6464_v30  ;;  %v6465_v36 = vadd.f32 %v6461_v51, %v10189_v35 }
0x2202   : > { %6466 = vst [vmem:[%s734_s15] sm:$0xff] %v6462_v22  ;;  %v6463_v61 = vadd.f32 %v6459_v25, %v10181_v52 }
0x2203   : > { %6469 = vst [vmem:[%s734_s15 + $0x18] sm:$0xff] %v6465_v36 }
0x2204   : > { %6467 = vst [vmem:[%s734_s15 + $0x8] sm:$0xff] %v6463_v61 }
0x2205   : > { %8250 = shalt.err (!%p8247_p5)
}
0x2206   : > { %s8251_s15 = scalar_lea.hbm %s10216_s13, 512  ;;  %s8255_s2 = scalar_lea.hbm %s10413_s4, 1024 }
0x2207   : > { %p8252_p9 = scmp.ne.s32.totalorder %s10216_s13, %s8251_s15  ;;  %p8256_p12 = scmp.lt.u32.totalorder %s10216_s13, %s10413_s4 }
0x2208   : > { %p8257_p13 = scmp.lt.u32.totalorder %s8255_s2, %s8251_s15  ;;  %p8259_p3 = scmp.lt.u32.totalorder %s8251_s15, %s10216_s13 }
0x2209   : > { %p8253_p7 = pnand %p8252_p9, %p10414_p2 }
0x220a   : > { %p8258_p1 = por %p8257_p13, %p8256_p12 }
0x220b   : > { %p8254_p4 = pneg %p8253_p7 }
0x220c   : > { %p8260_p8 = por %p8259_p3, %p8258_p1 }
0x220e   : > { %p8261_p6 = pnand %p8260_p8, %p8254_p4 }
0x2210   : > { %8264 = shalt.err (!%p8261_p6)
}
0x2211   : > { %s8354_s0 = smov 128   ;;  %s8355_s19 = smov 8  }
0x2212   : > { %7612 = dma.vmem_to_hbm [thread:$0]  (%p10414_p2), %s10209_s24, 512, %s10216_s13, %s6471_s1, %s8354_s0, %s8354_s0, %s8355_s19  }
0x2213 PF: > { %s6499_s12 = sand.u32 1, %s8311_s27   ;;  %p10415_p10 = scmp.ne.s32.totalorder %s10345_s22, 0 }
0x2214   : > { %p10416_p11 = scmp.ge.s32.totalorder %s8323_s30, 2  ;;  %s6500_s15 = scalar_lea.sflag [#allocation4], %s6499_s12 }
0x2216   : > { %p7647_p0 = pnand %p10416_p11, %p10415_p10 }
0x2218   : > { %8306 = dma.done.wait (!%p7647_p0), %s6500_s15, 512  }
0x2219   : > { %8308 = vsyncadd (!%p7647_p0), %s6500_s15, 4294966784  ;;  %p36_p5 = scmp.ge.s32.totalorder %s8706_s21, 4   ;;  %s10417_s27 = smov %s8315_s28 }
0x221a   : > { %s10418_s28 = smov %s8319_s29  ;;  %s10419_s29 = smov %s8718_s26 }
0x221b   : > { %s10420_s30 = smov %s8706_s21  ;;  %38 = sbr.rel (!%p36_p5) target bundleno = 22 (0x16), region = 182 }
0x2222   :  { %6505 = vsyncpa [#allocation3], 1 }
0x2223   :  { %6507 = vsyncpa [#allocation3 + $0x1], 1 }
0x2224   :  { %6508 = vsyncpa [#allocation6], 1 }
0x2225   :  { %6509 = vsyncpa [#allocation9], 1 }
0x2226   :  { %6510 = vsyncpa [#allocation12], 1 }
0x2227   :  { %6511 = vsyncpa [#allocation15], 1 }
0x2228   :  { %6512 = vsyncpa [#allocation18], 1 }
0x2229   :  { %6513 = vsyncpa [#allocation4], 1 }
0x222a   :  { %6515 = vsyncpa [#allocation4 + $0x1], 1 }

</bundles_post_ra>
